<compile_context>
chip_gen: v7x
topology: tpu7x:2x2x1
jax: 0.10.0
libtpu: 0.0.40
codegen_flags: <defaults>
</compile_context>

<pallas_src>
import functools

import jax
import jax.numpy as jnp
import numpy as np
from jax import lax
from jax.experimental import pallas as pl
from jax.experimental.pallas import tpu as pltpu


# ----------------------------------------------------------------------------
# In-kernel math helpers
# ----------------------------------------------------------------------------
_GELU_C = 0.7978845608028654  # sqrt(2/pi)


def _gelu_tanh(x):
    # tanh-form GELU: routes the transcendental to the (otherwise idle) EUP.
    # |err| vs exact erf-GELU <= ~1e-3, covered by the test tolerance.
    # TODO(synk): switch to lax.erf if/when its Mosaic lowering is guaranteed.
    return 0.5 * x * (1.0 + jnp.tanh(_GELU_C * (x + 0.044715 * x * x * x)))


def _group_norm_rows(x, sb, t, groups, gamma, beta, eps):
    """Per-sample GroupNorm on a (sb*t, F) slab.

    Rows are (sample, timestep), sample-major; columns are (channel, *rest)
    ordered so each group is a contiguous column range of width F//groups.
    Statistics are computed per (sample, group), matching nn.GroupNorm applied
    to a (B, Ch, T, ...) tensor.  gamma/beta: (1, F) per-column affine.
    """
    R, F = x.shape
    fg = F // groups
    n = float(t * fg)
    x3 = x.reshape(sb, t, F)                       # split rows per sample
    col = lax.broadcasted_iota(jnp.int32, (1, 1, F), 2)
    inv_map = jnp.zeros((sb, 1, F), jnp.float32)
    mu_map = jnp.zeros((sb, 1, F), jnp.float32)
    for g in range(groups):                        # static unroll (groups == 4)
        xg = x3[:, :, g * fg:(g + 1) * fg]         # contiguous column slice
        s1 = jnp.sum(jnp.sum(xg, axis=2, keepdims=True), axis=1, keepdims=True)
        s2 = jnp.sum(jnp.sum(xg * xg, axis=2, keepdims=True),
                     axis=1, keepdims=True)
        mu = s1 / n                                # (sb, 1, 1)
        var = jnp.maximum(s2 / n - mu * mu, 0.0)
        inv = lax.rsqrt(var + eps)
        in_g = jnp.logical_and(col >= g * fg, col < (g + 1) * fg)
        inv_map = jnp.where(in_g, inv, inv_map)    # cheap: only (sb,1,F) maps
        mu_map = jnp.where(in_g, mu, mu_map)
    scale = inv_map * gamma.reshape(1, 1, F)
    shift = beta.reshape(1, 1, F) - mu_map * scale
    return (x3 * scale + shift).reshape(R, F)      # one fused normalize pass


# ----------------------------------------------------------------------------
# Pallas kernel: one grid step == sb samples (sb*T rows), everything fused
# ----------------------------------------------------------------------------
def _fnirs_encoder_kernel(x_ref, w1_ref, b1_ref, gn1w_ref, gn1b_ref,
                          w2_ref, b2_ref, gn2w_ref, gn2b_ref,
                          wemb_ref, bemb_ref, out_ref, *, sb, t, groups, eps):
    # conv1 (temporal conv along S) as one lane-dense MXU matmul:
    #   (sb*t, C*Sp_pad) @ (C*Sp_pad, H*C*S), single-pass bf16, f32 accumulate
    h = jnp.dot(x_ref[...].astype(jnp.bfloat16), w1_ref[...],
                preferred_element_type=jnp.float32) + b1_ref[...]
    h = _gelu_tanh(h)
    h = _group_norm_rows(h, sb, t, groups, gn1w_ref[...], gn1b_ref[...], eps)

    # conv2 (contract hid x in_channels at every (t, s)):
    #   (sb*t, H*C*S) @ (H*C*S, O*S)
    y = jnp.dot(h.astype(jnp.bfloat16), w2_ref[...],
                preferred_element_type=jnp.float32) + b2_ref[...]
    y = _gelu_tanh(y)
    y = _group_norm_rows(y, sb, t, groups, gn2w_ref[...], gn2b_ref[...], eps)

    # flatten(2) + Linear: columns already in PyTorch (o, s) order; output
    # columns zero-padded to a 128-lane multiple for unmasked stores.
    out_ref[...] = (jnp.dot(y.astype(jnp.bfloat16), wemb_ref[...],
                            preferred_element_type=jnp.float32)
                    + bemb_ref[...])


# ----------------------------------------------------------------------------
# Host-side operand preparation (layout / weight expansion, done once)
# ----------------------------------------------------------------------------
def _round_up(v, m):
    return -(-v // m) * m


def _choose_samples_per_block(B, T, target_rows=256):
    """Samples per grid step: fill ~target_rows MXU rows, keep grid >= 2."""
    sb = max(1, min(B, target_rows // max(T, 1)))
    # keep at least 2 grid steps so both v7x TensorCores get work when B > 1
    while sb > 1 and -(-B // sb) < 2:
        sb = max(1, sb // 2)
    return sb


def _build_kernel_operands(x, params, *, kernel_size, sb):
    B, T, C, S = x.shape
    K = kernel_size
    assert K % 2 == 1, "kernel_size must be odd for 'same' temporal padding"
    pad = K // 2
    Sp = S + 2 * pad

    w1 = np.asarray(params["conv1_w"], np.float32).reshape(-1, K)       # (H, K)
    Hh = w1.shape[0]
    w2_full = np.asarray(params["conv2_w"], np.float32)
    O = w2_full.shape[0]
    w2 = w2_full.reshape(O, Hh, C)                                      # (O,H,C)
    E = int(params["emb_w"].shape[0])

    F1 = Hh * C * S            # conv1 output columns, order (h, c, s)
    F2 = O * S                 # conv2 output columns, order (o, s)
    Cin = C * Sp
    Cin_pad = _round_up(Cin, 128)    # lane-dense input block
    E_pad = _round_up(E, 128)        # lane-dense output block

    # conv1 -> block-structured (Cin_pad, F1) matrix:
    #   bigW1[c*Sp + s + k, h*C*S + c*S + s] = w1[h, k]
    h_i, c_i, s_i, k_i = np.meshgrid(np.arange(Hh), np.arange(C),
                                     np.arange(S), np.arange(K), indexing="ij")
    rows1 = (c_i * Sp + s_i + k_i).ravel()
    cols1 = (h_i * (C * S) + c_i * S + s_i).ravel()
    bigW1 = np.zeros((Cin_pad, F1), np.float32)
    bigW1[rows1, cols1] = w1[h_i.ravel(), k_i.ravel()]

    # conv2 -> block-structured (F1, F2) matrix:
    #   bigW2[h*C*S + c*S + s, o*S + s] = w2[o, h, c]
    o_i, h_i, c_i, s_i = np.meshgrid(np.arange(O), np.arange(Hh),
                                     np.arange(C), np.arange(S), indexing="ij")
    rows2 = (h_i * (C * S) + c_i * S + s_i).ravel()
    cols2 = (o_i * S + s_i).ravel()
    bigW2 = np.zeros((F1, F2), np.float32)
    bigW2[rows2, cols2] = w2[o_i.ravel(), h_i.ravel(), c_i.ravel()]

    # embedding weight transposed + zero-padded to lane-dense column count
    wembT = np.zeros((F2, E_pad), np.float32)
    wembT[:, :E] = np.asarray(params["emb_w"], np.float32).T
    bemb = np.zeros((1, E_pad), np.float32)
    bemb[0, :E] = np.asarray(params["emb_b"], np.float32)

    # biases / GroupNorm affine expanded to per-column vectors (hoisted once)
    b1c = jnp.repeat(params["conv1_b"].astype(jnp.float32), C * S)[None, :]
    g1c = jnp.repeat(params["gn1_w"].astype(jnp.float32), C * S)[None, :]
    be1c = jnp.repeat(params["gn1_b"].astype(jnp.float32), C * S)[None, :]
    b2c = jnp.repeat(params["conv2_b"].astype(jnp.float32), S)[None, :]
    g2c = jnp.repeat(params["gn2_w"].astype(jnp.float32), S)[None, :]
    be2c = jnp.repeat(params["gn2_b"].astype(jnp.float32), S)[None, :]

    # input: pad batch to a multiple of sb, pad S for 'same' conv, one row per
    # (b, t) with columns (c, s_padded), zero-padded to a 128-lane multiple.
    B_pad = _round_up(B, sb)
    xp = jnp.pad(x.astype(jnp.float32),
                 ((0, B_pad - B), (0, 0), (0, 0), (pad, pad)))
    x2 = xp.reshape(B_pad * T, Cin)
    x2 = jnp.pad(x2, ((0, 0), (0, Cin_pad - Cin)))

    ops = dict(
        x2=x2,
        w1=jnp.asarray(bigW1, dtype=jnp.bfloat16),
        w2=jnp.asarray(bigW2, dtype=jnp.bfloat16),
        wemb=jnp.asarray(wembT, dtype=jnp.bfloat16),
        b1=b1c, g1=g1c, be1=be1c, b2=b2c, g2=g2c, be2=be2c,
        bemb=jnp.asarray(bemb),
    )
    dims = dict(B=B, B_pad=B_pad, T=T, E=E, E_pad=E_pad,
                Cin_pad=Cin_pad, F1=F1, F2=F2)
    return ops, dims


def fnirs_temporal_encoder_forward(x, params, *, kernel_size, groups=4,
                                   eps=1e-5, target_rows=256):
    """x: (B, T, in_channels, in_size) float32; returns (B, T, emb_dim)."""
    B, T, C, S = x.shape
    assert T % 8 == 0, "T must be a multiple of 8 (f32 sublane tile)"
    # TODO(synk): generalize to T % 8 != 0 by padding rows + masking GN stats.

    sb = _choose_samples_per_block(B, T, target_rows)
    ops, d = _build_kernel_operands(x, params, kernel_size=kernel_size, sb=sb)
    RB = sb * T                                   # rows per grid step
    nblk = d["B_pad"] // sb
    F1, F2 = d["F1"], d["F2"]
    Cin_pad, E_pad = d["Cin_pad"], d["E_pad"]

    kernel = functools.partial(_fnirs_encoder_kernel, sb=sb, t=T,
                               groups=groups, eps=eps)
    const = lambda b: (0, 0)   # constant-index weight blocks: DMA'd once

    out = pl.pallas_call(
        kernel,
        out_shape=jax.ShapeDtypeStruct((d["B_pad"] * T, E_pad), jnp.float32),
        grid=(nblk,),
        in_specs=[
            pl.BlockSpec((RB, Cin_pad), lambda b: (b, 0)),   # x rows of block b
            pl.BlockSpec((Cin_pad, F1), const),              # expanded conv1 W
            pl.BlockSpec((1, F1), const),                    # conv1 bias cols
            pl.BlockSpec((1, F1), const),                    # GN1 gamma cols
            pl.BlockSpec((1, F1), const),                    # GN1 beta cols
            pl.BlockSpec((F1, F2), const),                   # expanded conv2 W
            pl.BlockSpec((1, F2), const),                    # conv2 bias cols
            pl.BlockSpec((1, F2), const),                    # GN2 gamma cols
            pl.BlockSpec((1, F2), const),                    # GN2 beta cols
            pl.BlockSpec((F2, E_pad), const),                # embedding W^T
            pl.BlockSpec((1, E_pad), const),                 # embedding bias
        ],
        out_specs=pl.BlockSpec((RB, E_pad), lambda b: (b, 0)),
        compiler_params=pltpu.CompilerParams(
            dimension_semantics=("parallel",)),
    )(ops["x2"], ops["w1"], ops["b1"], ops["g1"], ops["be1"],
      ops["w2"], ops["b2"], ops["g2"], ops["be2"], ops["wemb"], ops["bemb"])

    return out[:B * T, :d["E"]].reshape(B, T, d["E"])


# ----------------------------------------------------------------------------
# Pure-JAX reference (mirrors the PyTorch module exactly, f32 / exact GELU)
# ----------------------------------------------------------------------------
def _group_norm_ref(x, groups, gamma, beta, eps=1e-5):
    B, Ch = x.shape[0], x.shape[1]
    xg = x.reshape(B, groups, -1)
    mu = jnp.mean(xg, axis=2, keepdims=True)
    var = jnp.mean((xg - mu) ** 2, axis=2, keepdims=True)
    xn = ((xg - mu) / jnp.sqrt(var + eps)).reshape(x.shape)
    shape = (1, Ch) + (1,) * (x.ndim - 2)
    return xn * gamma.reshape(shape) + beta.reshape(shape)


def reference_forward(x, params, *, kernel_size, groups=4, eps=1e-5):
    B, T, C, S = x.shape
    K = kernel_size
    w1 = params["conv1_w"].reshape(-1, K)                     # (H, K)
    Hh = w1.shape[0]
    w2 = params["conv2_w"].reshape(params["conv2_w"].shape[0], Hh, C)  # (O,H,C)
    O = w2.shape[0]

    xp = jnp.pad(x, ((0, 0), (0, 0), (0, 0), (K // 2, K // 2)))
    win = jnp.stack([xp[..., k:k + S] for k in range(K)], axis=-1)  # (B,T,C,S,K)
    y1 = (jnp.einsum("btcsk,hk->bhtcs", win, w1, precision="highest")
          + params["conv1_b"].reshape(1, Hh, 1, 1, 1))
    y1 = jax.nn.gelu(y1, approximate=False)
    y1 = _group_norm_ref(y1, groups, params["gn1_w"], params["gn1_b"], eps)

    y2 = (jnp.einsum("bhtcs,ohc->bots", y1, w2, precision="highest")
          + params["conv2_b"].reshape(1, O, 1, 1))
    y2 = jax.nn.gelu(y2, approximate=False)
    y2 = _group_norm_ref(y2, groups, params["gn2_w"], params["gn2_b"], eps)

    feat = jnp.transpose(y2, (0, 2, 1, 3)).reshape(B, T, O * S)
    return jnp.dot(feat, params["emb_w"].T, precision="highest") + params["emb_b"]


# ----------------------------------------------------------------------------
# Deterministic parameter construction (PyTorch-shaped tensors)
# ----------------------------------------------------------------------------
def make_params(key, in_channels, in_size, kernel_size, hid_dim, out_dim,
                emb_dim):
    C, S, K, Hh, O, E = in_channels, in_size, kernel_size, hid_dim, out_dim, emb_dim
    ks = jax.random.split(key, 10)

    def u(k, shape, bound):
        return jax.random.uniform(k, shape, jnp.float32, minval=-bound,
                                  maxval=bound)

    return {
        "conv1_w": u(ks[0], (Hh, 1, 1, 1, K), 1.0 / np.sqrt(K)),
        "conv1_b": u(ks[1], (Hh,), 1.0 / np.sqrt(K)),
        "gn1_w": 1.0 + 0.1 * jax.random.normal(ks[2], (Hh,), jnp.float32),
        "gn1_b": 0.1 * jax.random.normal(ks[3], (Hh,), jnp.float32),
        "conv2_w": u(ks[4], (O, Hh, 1, C, 1), 1.0 / np.sqrt(Hh * C)),
        "conv2_b": u(ks[5], (O,), 1.0 / np.sqrt(Hh * C)),
        "gn2_w": 1.0 + 0.1 * jax.random.normal(ks[6], (O,), jnp.float32),
        "gn2_b": 0.1 * jax.random.normal(ks[7], (O,), jnp.float32),
        "emb_w": u(ks[8], (E, O * S), 1.0 / np.sqrt(O * S)),
        "emb_b": u(ks[9], (E,), 1.0 / np.sqrt(O * S)),
    }


if __name__ == "__main__":
    # small shapes consistent with the module; B=8 so the row-batched path
    # (sb=4 samples / 32 rows per grid step, grid length 2) is exercised.
    B, T = 8, 8                       # batch, sequence length
    in_channels, in_size = 4, 16      # fNIRS channels, samples per segment
    kernel_size, hid_dim, out_dim, emb_dim, groups = 5, 16, 16, 32, 4

    root = jax.random.PRNGKey(0)
    kx, kp = jax.random.split(root)
    x = jax.random.normal(kx, (B, T, in_channels, in_size), jnp.float32)
    params = make_params(kp, in_channels, in_size, kernel_size, hid_dim,
                         out_dim, emb_dim)

    out = fnirs_temporal_encoder_forward(
        x, params, kernel_size=kernel_size, groups=groups)
    out = jax.block_until_ready(out)

    ref = reference_forward(x, params, kernel_size=kernel_size, groups=groups)

    # Tolerance budget: single-pass bf16 matmul inputs (~0.4% relative per
    # layer, amplified by the two GroupNorms) + tanh-form GELU (<=~1e-3 abs)
    # give a typical output error of ~1e-2 on O(0.5)-scale outputs.
    # Structural / layout bugs would show up as O(0.3+) errors.
    np.testing.assert_allclose(np.asarray(out), np.asarray(ref),
                               atol=5e-2, rtol=5e-2)
    print("KERNEL_OK")
</pallas_src>

<mosaic_0001>
module attributes {stable_mosaic.version = 11 : i64} {
  func.func @_fnirs_encoder_kernel(%arg0: i32, %arg1: memref<32x128xf32, #tpu.memory_space<vmem>>, %arg2: memref<128x1024xbf16, #tpu.memory_space<vmem>>, %arg3: memref<1x1024xf32, #tpu.memory_space<vmem>>, %arg4: memref<1x1024xf32, #tpu.memory_space<vmem>>, %arg5: memref<1x1024xf32, #tpu.memory_space<vmem>>, %arg6: memref<1024x256xbf16, #tpu.memory_space<vmem>>, %arg7: memref<1x256xf32, #tpu.memory_space<vmem>>, %arg8: memref<1x256xf32, #tpu.memory_space<vmem>>, %arg9: memref<1x256xf32, #tpu.memory_space<vmem>>, %arg10: memref<256x128xbf16, #tpu.memory_space<vmem>>, %arg11: memref<1x128xf32, #tpu.memory_space<vmem>>, %arg12: memref<32x128xf32, #tpu.memory_space<vmem>>) attributes {dimension_semantics = [#tpu.dimension_semantics<parallel>], iteration_bounds = array<i64: 2>, scalar_prefetch = 0 : i64, scratch_operands = 0 : i64, tpu.core_type = #tpu.core_type<tc>, window_params = [{transform_indices = @transform_0, window_bounds = array<i64: 32, 128>}, {pipeline_mode = #tpu.pipeline_mode<synchronous>, transform_indices = @transform_1, window_bounds = array<i64: 128, 1024>}, {pipeline_mode = #tpu.pipeline_mode<synchronous>, transform_indices = @transform_2, window_bounds = array<i64: 1, 1024>}, {pipeline_mode = #tpu.pipeline_mode<synchronous>, transform_indices = @transform_3, window_bounds = array<i64: 1, 1024>}, {pipeline_mode = #tpu.pipeline_mode<synchronous>, transform_indices = @transform_4, window_bounds = array<i64: 1, 1024>}, {pipeline_mode = #tpu.pipeline_mode<synchronous>, transform_indices = @transform_5, window_bounds = array<i64: 1024, 256>}, {pipeline_mode = #tpu.pipeline_mode<synchronous>, transform_indices = @transform_6, window_bounds = array<i64: 1, 256>}, {pipeline_mode = #tpu.pipeline_mode<synchronous>, transform_indices = @transform_7, window_bounds = array<i64: 1, 256>}, {pipeline_mode = #tpu.pipeline_mode<synchronous>, transform_indices = @transform_8, window_bounds = array<i64: 1, 256>}, {pipeline_mode = #tpu.pipeline_mode<synchronous>, transform_indices = @transform_9, window_bounds = array<i64: 256, 128>}, {pipeline_mode = #tpu.pipeline_mode<synchronous>, transform_indices = @transform_10, window_bounds = array<i64: 1, 128>}, {transform_indices = @transform_11, window_bounds = array<i64: 32, 128>}]} {
    %c0 = arith.constant 0 : index
    %c0_0 = arith.constant 0 : index
    %0 = vector.load %arg1[%c0, %c0_0] : memref<32x128xf32, #tpu.memory_space<vmem>>, vector<32x128xf32>
    %1 = arith.truncf %0 : vector<32x128xf32> to vector<32x128xbf16>
    %c0_1 = arith.constant 0 : index
    %c0_2 = arith.constant 0 : index
    %2 = vector.load %arg2[%c0_1, %c0_2] : memref<128x1024xbf16, #tpu.memory_space<vmem>>, vector<128x1024xbf16>
    %cst = arith.constant dense<0.000000e+00> : vector<32x1024xf32>
    %3 = tpu.matmul %1, %2, %cst {dimension_numbers = #tpu.dot_dimension_numbers<[1], [0], [0], [1], [0, 0, 1, 1], [], []>} : vector<32x128xbf16>, vector<128x1024xbf16>, vector<32x1024xf32> -> vector<32x1024xf32>
    %c0_3 = arith.constant 0 : index
    %c0_4 = arith.constant 0 : index
    %4 = vector.load %arg3[%c0_3, %c0_4] : memref<1x1024xf32, #tpu.memory_space<vmem>>, vector<1x1024xf32>
    %5 = vector.broadcast %4 : vector<1x1024xf32> to vector<32x1024xf32>
    %6 = arith.addf %3, %5 : vector<32x1024xf32>
    %cst_5 = arith.constant 5.000000e-01 : f32
    %7 = vector.broadcast %cst_5 : f32 to vector<32x1024xf32>
    %8 = arith.mulf %7, %6 : vector<32x1024xf32>
    %cst_6 = arith.constant 4.471500e-02 : f32
    %9 = vector.broadcast %cst_6 : f32 to vector<32x1024xf32>
    %10 = arith.mulf %9, %6 : vector<32x1024xf32>
    %11 = arith.mulf %10, %6 : vector<32x1024xf32>
    %12 = arith.mulf %11, %6 : vector<32x1024xf32>
    %13 = arith.addf %6, %12 : vector<32x1024xf32>
    %cst_7 = arith.constant 0.797884583 : f32
    %14 = vector.broadcast %cst_7 : f32 to vector<32x1024xf32>
    %15 = arith.mulf %14, %13 : vector<32x1024xf32>
    %16 = math.tanh %15 : vector<32x1024xf32>
    %cst_8 = arith.constant 1.000000e+00 : f32
    %17 = vector.broadcast %cst_8 : f32 to vector<32x1024xf32>
    %18 = arith.addf %17, %16 : vector<32x1024xf32>
    %19 = arith.mulf %8, %18 : vector<32x1024xf32>
    %c0_9 = arith.constant 0 : index
    %c0_10 = arith.constant 0 : index
    %20 = vector.load %arg4[%c0_9, %c0_10] : memref<1x1024xf32, #tpu.memory_space<vmem>>, vector<1x1024xf32>
    %c0_11 = arith.constant 0 : index
    %c0_12 = arith.constant 0 : index
    %21 = vector.load %arg5[%c0_11, %c0_12] : memref<1x1024xf32, #tpu.memory_space<vmem>>, vector<1x1024xf32>
    %22 = vector.shape_cast %19 : vector<32x1024xf32> to vector<4x8x1024xf32>
    %23 = tpu.iota {dimensions = array<i32: 2>} : vector<1x1x1024xi32>
    %cst_13 = arith.constant 0.000000e+00 : f32
    %24 = vector.broadcast %cst_13 : f32 to vector<4x1x1024xf32>
    %cst_14 = arith.constant 0.000000e+00 : f32
    %25 = vector.broadcast %cst_14 : f32 to vector<4x1x1024xf32>
    %26 = vector.extract_strided_slice %22 {offsets = [0, 0, 0], sizes = [4, 8, 256], strides = [1, 1, 1]} : vector<4x8x1024xf32> to vector<4x8x256xf32>
    %cst_15 = arith.constant dense<0.000000e+00> : vector<4x8xf32>
    %27 = vector.multi_reduction <add>, %26, %cst_15 [2] : vector<4x8x256xf32> to vector<4x8xf32>
    %28 = vector.shape_cast %27 : vector<4x8xf32> to vector<4x8x1xf32>
    %cst_16 = arith.constant dense<0.000000e+00> : vector<4x1xf32>
    %29 = vector.multi_reduction <add>, %28, %cst_16 [1] : vector<4x8x1xf32> to vector<4x1xf32>
    %30 = vector.shape_cast %29 : vector<4x1xf32> to vector<4x1x1xf32>
    %31 = arith.mulf %26, %26 : vector<4x8x256xf32>
    %cst_17 = arith.constant dense<0.000000e+00> : vector<4x8xf32>
    %32 = vector.multi_reduction <add>, %31, %cst_17 [2] : vector<4x8x256xf32> to vector<4x8xf32>
    %33 = vector.shape_cast %32 : vector<4x8xf32> to vector<4x8x1xf32>
    %cst_18 = arith.constant dense<0.000000e+00> : vector<4x1xf32>
    %34 = vector.multi_reduction <add>, %33, %cst_18 [1] : vector<4x8x1xf32> to vector<4x1xf32>
    %35 = vector.shape_cast %34 : vector<4x1xf32> to vector<4x1x1xf32>
    %cst_19 = arith.constant 2.048000e+03 : f32
    %36 = vector.broadcast %cst_19 : f32 to vector<4x1x1xf32>
    %37 = arith.divf %30, %36 : vector<4x1x1xf32>
    %cst_20 = arith.constant 2.048000e+03 : f32
    %38 = vector.broadcast %cst_20 : f32 to vector<4x1x1xf32>
    %39 = arith.divf %35, %38 : vector<4x1x1xf32>
    %40 = arith.mulf %37, %37 : vector<4x1x1xf32>
    %41 = arith.subf %39, %40 : vector<4x1x1xf32>
    %cst_21 = arith.constant 0.000000e+00 : f32
    %42 = vector.broadcast %cst_21 : f32 to vector<4x1x1xf32>
    %43 = arith.maximumf %41, %42 : vector<4x1x1xf32>
    %cst_22 = arith.constant 9.99999974E-6 : f32
    %44 = vector.broadcast %cst_22 : f32 to vector<4x1x1xf32>
    %45 = arith.addf %43, %44 : vector<4x1x1xf32>
    %46 = math.rsqrt %45 : vector<4x1x1xf32>
    %c0_i32 = arith.constant 0 : i32
    %47 = vector.broadcast %c0_i32 : i32 to vector<1x1x1024xi32>
    %48 = arith.cmpi sge, %23, %47 : vector<1x1x1024xi32>
    %c256_i32 = arith.constant 256 : i32
    %49 = vector.broadcast %c256_i32 : i32 to vector<1x1x1024xi32>
    %50 = arith.cmpi slt, %23, %49 : vector<1x1x1024xi32>
    %51 = arith.andi %48, %50 : vector<1x1x1024xi1>
    %52 = vector.shape_cast %51 : vector<1x1x1024xi1> to vector<1x1x1024xi1>
    %53 = vector.broadcast %52 : vector<1x1x1024xi1> to vector<4x1x1024xi1>
    %54 = vector.shape_cast %46 : vector<4x1x1xf32> to vector<4x1x1xf32>
    %55 = vector.broadcast %54 : vector<4x1x1xf32> to vector<4x1x1024xf32>
    %56 = arith.select %53, %55, %24 : vector<4x1x1024xi1>, vector<4x1x1024xf32>
    %57 = vector.shape_cast %51 : vector<1x1x1024xi1> to vector<1x1x1024xi1>
    %58 = vector.broadcast %57 : vector<1x1x1024xi1> to vector<4x1x1024xi1>
    %59 = vector.shape_cast %37 : vector<4x1x1xf32> to vector<4x1x1xf32>
    %60 = vector.broadcast %59 : vector<4x1x1xf32> to vector<4x1x1024xf32>
    %61 = arith.select %58, %60, %25 : vector<4x1x1024xi1>, vector<4x1x1024xf32>
    %62 = vector.extract_strided_slice %22 {offsets = [0, 0, 256], sizes = [4, 8, 256], strides = [1, 1, 1]} : vector<4x8x1024xf32> to vector<4x8x256xf32>
    %cst_23 = arith.constant dense<0.000000e+00> : vector<4x8xf32>
    %63 = vector.multi_reduction <add>, %62, %cst_23 [2] : vector<4x8x256xf32> to vector<4x8xf32>
    %64 = vector.shape_cast %63 : vector<4x8xf32> to vector<4x8x1xf32>
    %cst_24 = arith.constant dense<0.000000e+00> : vector<4x1xf32>
    %65 = vector.multi_reduction <add>, %64, %cst_24 [1] : vector<4x8x1xf32> to vector<4x1xf32>
    %66 = vector.shape_cast %65 : vector<4x1xf32> to vector<4x1x1xf32>
    %67 = arith.mulf %62, %62 : vector<4x8x256xf32>
    %cst_25 = arith.constant dense<0.000000e+00> : vector<4x8xf32>
    %68 = vector.multi_reduction <add>, %67, %cst_25 [2] : vector<4x8x256xf32> to vector<4x8xf32>
    %69 = vector.shape_cast %68 : vector<4x8xf32> to vector<4x8x1xf32>
    %cst_26 = arith.constant dense<0.000000e+00> : vector<4x1xf32>
    %70 = vector.multi_reduction <add>, %69, %cst_26 [1] : vector<4x8x1xf32> to vector<4x1xf32>
    %71 = vector.shape_cast %70 : vector<4x1xf32> to vector<4x1x1xf32>
    %cst_27 = arith.constant 2.048000e+03 : f32
    %72 = vector.broadcast %cst_27 : f32 to vector<4x1x1xf32>
    %73 = arith.divf %66, %72 : vector<4x1x1xf32>
    %cst_28 = arith.constant 2.048000e+03 : f32
    %74 = vector.broadcast %cst_28 : f32 to vector<4x1x1xf32>
    %75 = arith.divf %71, %74 : vector<4x1x1xf32>
    %76 = arith.mulf %73, %73 : vector<4x1x1xf32>
    %77 = arith.subf %75, %76 : vector<4x1x1xf32>
    %cst_29 = arith.constant 0.000000e+00 : f32
    %78 = vector.broadcast %cst_29 : f32 to vector<4x1x1xf32>
    %79 = arith.maximumf %77, %78 : vector<4x1x1xf32>
    %cst_30 = arith.constant 9.99999974E-6 : f32
    %80 = vector.broadcast %cst_30 : f32 to vector<4x1x1xf32>
    %81 = arith.addf %79, %80 : vector<4x1x1xf32>
    %82 = math.rsqrt %81 : vector<4x1x1xf32>
    %c256_i32_31 = arith.constant 256 : i32
    %83 = vector.broadcast %c256_i32_31 : i32 to vector<1x1x1024xi32>
    %84 = arith.cmpi sge, %23, %83 : vector<1x1x1024xi32>
    %c512_i32 = arith.constant 512 : i32
    %85 = vector.broadcast %c512_i32 : i32 to vector<1x1x1024xi32>
    %86 = arith.cmpi slt, %23, %85 : vector<1x1x1024xi32>
    %87 = arith.andi %84, %86 : vector<1x1x1024xi1>
    %88 = vector.shape_cast %87 : vector<1x1x1024xi1> to vector<1x1x1024xi1>
    %89 = vector.broadcast %88 : vector<1x1x1024xi1> to vector<4x1x1024xi1>
    %90 = vector.shape_cast %82 : vector<4x1x1xf32> to vector<4x1x1xf32>
    %91 = vector.broadcast %90 : vector<4x1x1xf32> to vector<4x1x1024xf32>
    %92 = arith.select %89, %91, %56 : vector<4x1x1024xi1>, vector<4x1x1024xf32>
    %93 = vector.shape_cast %87 : vector<1x1x1024xi1> to vector<1x1x1024xi1>
    %94 = vector.broadcast %93 : vector<1x1x1024xi1> to vector<4x1x1024xi1>
    %95 = vector.shape_cast %73 : vector<4x1x1xf32> to vector<4x1x1xf32>
    %96 = vector.broadcast %95 : vector<4x1x1xf32> to vector<4x1x1024xf32>
    %97 = arith.select %94, %96, %61 : vector<4x1x1024xi1>, vector<4x1x1024xf32>
    %98 = vector.extract_strided_slice %22 {offsets = [0, 0, 512], sizes = [4, 8, 256], strides = [1, 1, 1]} : vector<4x8x1024xf32> to vector<4x8x256xf32>
    %cst_32 = arith.constant dense<0.000000e+00> : vector<4x8xf32>
    %99 = vector.multi_reduction <add>, %98, %cst_32 [2] : vector<4x8x256xf32> to vector<4x8xf32>
    %100 = vector.shape_cast %99 : vector<4x8xf32> to vector<4x8x1xf32>
    %cst_33 = arith.constant dense<0.000000e+00> : vector<4x1xf32>
    %101 = vector.multi_reduction <add>, %100, %cst_33 [1] : vector<4x8x1xf32> to vector<4x1xf32>
    %102 = vector.shape_cast %101 : vector<4x1xf32> to vector<4x1x1xf32>
    %103 = arith.mulf %98, %98 : vector<4x8x256xf32>
    %cst_34 = arith.constant dense<0.000000e+00> : vector<4x8xf32>
    %104 = vector.multi_reduction <add>, %103, %cst_34 [2] : vector<4x8x256xf32> to vector<4x8xf32>
    %105 = vector.shape_cast %104 : vector<4x8xf32> to vector<4x8x1xf32>
    %cst_35 = arith.constant dense<0.000000e+00> : vector<4x1xf32>
    %106 = vector.multi_reduction <add>, %105, %cst_35 [1] : vector<4x8x1xf32> to vector<4x1xf32>
    %107 = vector.shape_cast %106 : vector<4x1xf32> to vector<4x1x1xf32>
    %cst_36 = arith.constant 2.048000e+03 : f32
    %108 = vector.broadcast %cst_36 : f32 to vector<4x1x1xf32>
    %109 = arith.divf %102, %108 : vector<4x1x1xf32>
    %cst_37 = arith.constant 2.048000e+03 : f32
    %110 = vector.broadcast %cst_37 : f32 to vector<4x1x1xf32>
    %111 = arith.divf %107, %110 : vector<4x1x1xf32>
    %112 = arith.mulf %109, %109 : vector<4x1x1xf32>
    %113 = arith.subf %111, %112 : vector<4x1x1xf32>
    %cst_38 = arith.constant 0.000000e+00 : f32
    %114 = vector.broadcast %cst_38 : f32 to vector<4x1x1xf32>
    %115 = arith.maximumf %113, %114 : vector<4x1x1xf32>
    %cst_39 = arith.constant 9.99999974E-6 : f32
    %116 = vector.broadcast %cst_39 : f32 to vector<4x1x1xf32>
    %117 = arith.addf %115, %116 : vector<4x1x1xf32>
    %118 = math.rsqrt %117 : vector<4x1x1xf32>
    %c512_i32_40 = arith.constant 512 : i32
    %119 = vector.broadcast %c512_i32_40 : i32 to vector<1x1x1024xi32>
    %120 = arith.cmpi sge, %23, %119 : vector<1x1x1024xi32>
    %c768_i32 = arith.constant 768 : i32
    %121 = vector.broadcast %c768_i32 : i32 to vector<1x1x1024xi32>
    %122 = arith.cmpi slt, %23, %121 : vector<1x1x1024xi32>
    %123 = arith.andi %120, %122 : vector<1x1x1024xi1>
    %124 = vector.shape_cast %123 : vector<1x1x1024xi1> to vector<1x1x1024xi1>
    %125 = vector.broadcast %124 : vector<1x1x1024xi1> to vector<4x1x1024xi1>
    %126 = vector.shape_cast %118 : vector<4x1x1xf32> to vector<4x1x1xf32>
    %127 = vector.broadcast %126 : vector<4x1x1xf32> to vector<4x1x1024xf32>
    %128 = arith.select %125, %127, %92 : vector<4x1x1024xi1>, vector<4x1x1024xf32>
    %129 = vector.shape_cast %123 : vector<1x1x1024xi1> to vector<1x1x1024xi1>
    %130 = vector.broadcast %129 : vector<1x1x1024xi1> to vector<4x1x1024xi1>
    %131 = vector.shape_cast %109 : vector<4x1x1xf32> to vector<4x1x1xf32>
    %132 = vector.broadcast %131 : vector<4x1x1xf32> to vector<4x1x1024xf32>
    %133 = arith.select %130, %132, %97 : vector<4x1x1024xi1>, vector<4x1x1024xf32>
    %134 = vector.extract_strided_slice %22 {offsets = [0, 0, 768], sizes = [4, 8, 256], strides = [1, 1, 1]} : vector<4x8x1024xf32> to vector<4x8x256xf32>
    %cst_41 = arith.constant dense<0.000000e+00> : vector<4x8xf32>
    %135 = vector.multi_reduction <add>, %134, %cst_41 [2] : vector<4x8x256xf32> to vector<4x8xf32>
    %136 = vector.shape_cast %135 : vector<4x8xf32> to vector<4x8x1xf32>
    %cst_42 = arith.constant dense<0.000000e+00> : vector<4x1xf32>
    %137 = vector.multi_reduction <add>, %136, %cst_42 [1] : vector<4x8x1xf32> to vector<4x1xf32>
    %138 = vector.shape_cast %137 : vector<4x1xf32> to vector<4x1x1xf32>
    %139 = arith.mulf %134, %134 : vector<4x8x256xf32>
    %cst_43 = arith.constant dense<0.000000e+00> : vector<4x8xf32>
    %140 = vector.multi_reduction <add>, %139, %cst_43 [2] : vector<4x8x256xf32> to vector<4x8xf32>
    %141 = vector.shape_cast %140 : vector<4x8xf32> to vector<4x8x1xf32>
    %cst_44 = arith.constant dense<0.000000e+00> : vector<4x1xf32>
    %142 = vector.multi_reduction <add>, %141, %cst_44 [1] : vector<4x8x1xf32> to vector<4x1xf32>
    %143 = vector.shape_cast %142 : vector<4x1xf32> to vector<4x1x1xf32>
    %cst_45 = arith.constant 2.048000e+03 : f32
    %144 = vector.broadcast %cst_45 : f32 to vector<4x1x1xf32>
    %145 = arith.divf %138, %144 : vector<4x1x1xf32>
    %cst_46 = arith.constant 2.048000e+03 : f32
    %146 = vector.broadcast %cst_46 : f32 to vector<4x1x1xf32>
    %147 = arith.divf %143, %146 : vector<4x1x1xf32>
    %148 = arith.mulf %145, %145 : vector<4x1x1xf32>
    %149 = arith.subf %147, %148 : vector<4x1x1xf32>
    %cst_47 = arith.constant 0.000000e+00 : f32
    %150 = vector.broadcast %cst_47 : f32 to vector<4x1x1xf32>
    %151 = arith.maximumf %149, %150 : vector<4x1x1xf32>
    %cst_48 = arith.constant 9.99999974E-6 : f32
    %152 = vector.broadcast %cst_48 : f32 to vector<4x1x1xf32>
    %153 = arith.addf %151, %152 : vector<4x1x1xf32>
    %154 = math.rsqrt %153 : vector<4x1x1xf32>
    %c768_i32_49 = arith.constant 768 : i32
    %155 = vector.broadcast %c768_i32_49 : i32 to vector<1x1x1024xi32>
    %156 = arith.cmpi sge, %23, %155 : vector<1x1x1024xi32>
    %c1024_i32 = arith.constant 1024 : i32
    %157 = vector.broadcast %c1024_i32 : i32 to vector<1x1x1024xi32>
    %158 = arith.cmpi slt, %23, %157 : vector<1x1x1024xi32>
    %159 = arith.andi %156, %158 : vector<1x1x1024xi1>
    %160 = vector.shape_cast %159 : vector<1x1x1024xi1> to vector<1x1x1024xi1>
    %161 = vector.broadcast %160 : vector<1x1x1024xi1> to vector<4x1x1024xi1>
    %162 = vector.shape_cast %154 : vector<4x1x1xf32> to vector<4x1x1xf32>
    %163 = vector.broadcast %162 : vector<4x1x1xf32> to vector<4x1x1024xf32>
    %164 = arith.select %161, %163, %128 : vector<4x1x1024xi1>, vector<4x1x1024xf32>
    %165 = vector.shape_cast %159 : vector<1x1x1024xi1> to vector<1x1x1024xi1>
    %166 = vector.broadcast %165 : vector<1x1x1024xi1> to vector<4x1x1024xi1>
    %167 = vector.shape_cast %145 : vector<4x1x1xf32> to vector<4x1x1xf32>
    %168 = vector.broadcast %167 : vector<4x1x1xf32> to vector<4x1x1024xf32>
    %169 = arith.select %166, %168, %133 : vector<4x1x1024xi1>, vector<4x1x1024xf32>
    %170 = vector.shape_cast %20 : vector<1x1024xf32> to vector<1x1x1024xf32>
    %171 = vector.broadcast %170 : vector<1x1x1024xf32> to vector<4x1x1024xf32>
    %172 = arith.mulf %164, %171 : vector<4x1x1024xf32>
    %173 = vector.shape_cast %21 : vector<1x1024xf32> to vector<1x1x1024xf32>
    %174 = arith.mulf %169, %172 : vector<4x1x1024xf32>
    %175 = vector.broadcast %173 : vector<1x1x1024xf32> to vector<4x1x1024xf32>
    %176 = arith.subf %175, %174 : vector<4x1x1024xf32>
    %177 = vector.broadcast %172 : vector<4x1x1024xf32> to vector<4x8x1024xf32>
    %178 = arith.mulf %22, %177 : vector<4x8x1024xf32>
    %179 = vector.broadcast %176 : vector<4x1x1024xf32> to vector<4x8x1024xf32>
    %180 = arith.addf %178, %179 : vector<4x8x1024xf32>
    %181 = vector.shape_cast %180 : vector<4x8x1024xf32> to vector<32x1024xf32>
    %182 = arith.truncf %181 : vector<32x1024xf32> to vector<32x1024xbf16>
    %c0_50 = arith.constant 0 : index
    %c0_51 = arith.constant 0 : index
    %183 = vector.load %arg6[%c0_50, %c0_51] : memref<1024x256xbf16, #tpu.memory_space<vmem>>, vector<1024x256xbf16>
    %cst_52 = arith.constant dense<0.000000e+00> : vector<32x256xf32>
    %184 = tpu.matmul %182, %183, %cst_52 {dimension_numbers = #tpu.dot_dimension_numbers<[1], [0], [0], [1], [0, 0, 1, 1], [], []>} : vector<32x1024xbf16>, vector<1024x256xbf16>, vector<32x256xf32> -> vector<32x256xf32>
    %c0_53 = arith.constant 0 : index
    %c0_54 = arith.constant 0 : index
    %185 = vector.load %arg7[%c0_53, %c0_54] : memref<1x256xf32, #tpu.memory_space<vmem>>, vector<1x256xf32>
    %186 = vector.broadcast %185 : vector<1x256xf32> to vector<32x256xf32>
    %187 = arith.addf %184, %186 : vector<32x256xf32>
    %cst_55 = arith.constant 5.000000e-01 : f32
    %188 = vector.broadcast %cst_55 : f32 to vector<32x256xf32>
    %189 = arith.mulf %188, %187 : vector<32x256xf32>
    %cst_56 = arith.constant 4.471500e-02 : f32
    %190 = vector.broadcast %cst_56 : f32 to vector<32x256xf32>
    %191 = arith.mulf %190, %187 : vector<32x256xf32>
    %192 = arith.mulf %191, %187 : vector<32x256xf32>
    %193 = arith.mulf %192, %187 : vector<32x256xf32>
    %194 = arith.addf %187, %193 : vector<32x256xf32>
    %cst_57 = arith.constant 0.797884583 : f32
    %195 = vector.broadcast %cst_57 : f32 to vector<32x256xf32>
    %196 = arith.mulf %195, %194 : vector<32x256xf32>
    %197 = math.tanh %196 : vector<32x256xf32>
    %cst_58 = arith.constant 1.000000e+00 : f32
    %198 = vector.broadcast %cst_58 : f32 to vector<32x256xf32>
    %199 = arith.addf %198, %197 : vector<32x256xf32>
    %200 = arith.mulf %189, %199 : vector<32x256xf32>
    %c0_59 = arith.constant 0 : index
    %c0_60 = arith.constant 0 : index
    %201 = vector.load %arg8[%c0_59, %c0_60] : memref<1x256xf32, #tpu.memory_space<vmem>>, vector<1x256xf32>
    %c0_61 = arith.constant 0 : index
    %c0_62 = arith.constant 0 : index
    %202 = vector.load %arg9[%c0_61, %c0_62] : memref<1x256xf32, #tpu.memory_space<vmem>>, vector<1x256xf32>
    %203 = vector.shape_cast %200 : vector<32x256xf32> to vector<4x8x256xf32>
    %204 = tpu.iota {dimensions = array<i32: 2>} : vector<1x1x256xi32>
    %cst_63 = arith.constant 0.000000e+00 : f32
    %205 = vector.broadcast %cst_63 : f32 to vector<4x1x256xf32>
    %cst_64 = arith.constant 0.000000e+00 : f32
    %206 = vector.broadcast %cst_64 : f32 to vector<4x1x256xf32>
    %207 = vector.extract_strided_slice %203 {offsets = [0, 0, 0], sizes = [4, 8, 64], strides = [1, 1, 1]} : vector<4x8x256xf32> to vector<4x8x64xf32>
    %cst_65 = arith.constant dense<0.000000e+00> : vector<4x8xf32>
    %208 = vector.multi_reduction <add>, %207, %cst_65 [2] : vector<4x8x64xf32> to vector<4x8xf32>
    %209 = vector.shape_cast %208 : vector<4x8xf32> to vector<4x8x1xf32>
    %cst_66 = arith.constant dense<0.000000e+00> : vector<4x1xf32>
    %210 = vector.multi_reduction <add>, %209, %cst_66 [1] : vector<4x8x1xf32> to vector<4x1xf32>
    %211 = vector.shape_cast %210 : vector<4x1xf32> to vector<4x1x1xf32>
    %212 = arith.mulf %207, %207 : vector<4x8x64xf32>
    %cst_67 = arith.constant dense<0.000000e+00> : vector<4x8xf32>
    %213 = vector.multi_reduction <add>, %212, %cst_67 [2] : vector<4x8x64xf32> to vector<4x8xf32>
    %214 = vector.shape_cast %213 : vector<4x8xf32> to vector<4x8x1xf32>
    %cst_68 = arith.constant dense<0.000000e+00> : vector<4x1xf32>
    %215 = vector.multi_reduction <add>, %214, %cst_68 [1] : vector<4x8x1xf32> to vector<4x1xf32>
    %216 = vector.shape_cast %215 : vector<4x1xf32> to vector<4x1x1xf32>
    %cst_69 = arith.constant 5.120000e+02 : f32
    %217 = vector.broadcast %cst_69 : f32 to vector<4x1x1xf32>
    %218 = arith.divf %211, %217 : vector<4x1x1xf32>
    %cst_70 = arith.constant 5.120000e+02 : f32
    %219 = vector.broadcast %cst_70 : f32 to vector<4x1x1xf32>
    %220 = arith.divf %216, %219 : vector<4x1x1xf32>
    %221 = arith.mulf %218, %218 : vector<4x1x1xf32>
    %222 = arith.subf %220, %221 : vector<4x1x1xf32>
    %cst_71 = arith.constant 0.000000e+00 : f32
    %223 = vector.broadcast %cst_71 : f32 to vector<4x1x1xf32>
    %224 = arith.maximumf %222, %223 : vector<4x1x1xf32>
    %cst_72 = arith.constant 9.99999974E-6 : f32
    %225 = vector.broadcast %cst_72 : f32 to vector<4x1x1xf32>
    %226 = arith.addf %224, %225 : vector<4x1x1xf32>
    %227 = math.rsqrt %226 : vector<4x1x1xf32>
    %c0_i32_73 = arith.constant 0 : i32
    %228 = vector.broadcast %c0_i32_73 : i32 to vector<1x1x256xi32>
    %229 = arith.cmpi sge, %204, %228 : vector<1x1x256xi32>
    %c64_i32 = arith.constant 64 : i32
    %230 = vector.broadcast %c64_i32 : i32 to vector<1x1x256xi32>
    %231 = arith.cmpi slt, %204, %230 : vector<1x1x256xi32>
    %232 = arith.andi %229, %231 : vector<1x1x256xi1>
    %233 = vector.shape_cast %232 : vector<1x1x256xi1> to vector<1x1x256xi1>
    %234 = vector.broadcast %233 : vector<1x1x256xi1> to vector<4x1x256xi1>
    %235 = vector.shape_cast %227 : vector<4x1x1xf32> to vector<4x1x1xf32>
    %236 = vector.broadcast %235 : vector<4x1x1xf32> to vector<4x1x256xf32>
    %237 = arith.select %234, %236, %205 : vector<4x1x256xi1>, vector<4x1x256xf32>
    %238 = vector.shape_cast %232 : vector<1x1x256xi1> to vector<1x1x256xi1>
    %239 = vector.broadcast %238 : vector<1x1x256xi1> to vector<4x1x256xi1>
    %240 = vector.shape_cast %218 : vector<4x1x1xf32> to vector<4x1x1xf32>
    %241 = vector.broadcast %240 : vector<4x1x1xf32> to vector<4x1x256xf32>
    %242 = arith.select %239, %241, %206 : vector<4x1x256xi1>, vector<4x1x256xf32>
    %243 = vector.extract_strided_slice %203 {offsets = [0, 0, 64], sizes = [4, 8, 64], strides = [1, 1, 1]} : vector<4x8x256xf32> to vector<4x8x64xf32>
    %cst_74 = arith.constant dense<0.000000e+00> : vector<4x8xf32>
    %244 = vector.multi_reduction <add>, %243, %cst_74 [2] : vector<4x8x64xf32> to vector<4x8xf32>
    %245 = vector.shape_cast %244 : vector<4x8xf32> to vector<4x8x1xf32>
    %cst_75 = arith.constant dense<0.000000e+00> : vector<4x1xf32>
    %246 = vector.multi_reduction <add>, %245, %cst_75 [1] : vector<4x8x1xf32> to vector<4x1xf32>
    %247 = vector.shape_cast %246 : vector<4x1xf32> to vector<4x1x1xf32>
    %248 = arith.mulf %243, %243 : vector<4x8x64xf32>
    %cst_76 = arith.constant dense<0.000000e+00> : vector<4x8xf32>
    %249 = vector.multi_reduction <add>, %248, %cst_76 [2] : vector<4x8x64xf32> to vector<4x8xf32>
    %250 = vector.shape_cast %249 : vector<4x8xf32> to vector<4x8x1xf32>
    %cst_77 = arith.constant dense<0.000000e+00> : vector<4x1xf32>
    %251 = vector.multi_reduction <add>, %250, %cst_77 [1] : vector<4x8x1xf32> to vector<4x1xf32>
    %252 = vector.shape_cast %251 : vector<4x1xf32> to vector<4x1x1xf32>
    %cst_78 = arith.constant 5.120000e+02 : f32
    %253 = vector.broadcast %cst_78 : f32 to vector<4x1x1xf32>
    %254 = arith.divf %247, %253 : vector<4x1x1xf32>
    %cst_79 = arith.constant 5.120000e+02 : f32
    %255 = vector.broadcast %cst_79 : f32 to vector<4x1x1xf32>
    %256 = arith.divf %252, %255 : vector<4x1x1xf32>
    %257 = arith.mulf %254, %254 : vector<4x1x1xf32>
    %258 = arith.subf %256, %257 : vector<4x1x1xf32>
    %cst_80 = arith.constant 0.000000e+00 : f32
    %259 = vector.broadcast %cst_80 : f32 to vector<4x1x1xf32>
    %260 = arith.maximumf %258, %259 : vector<4x1x1xf32>
    %cst_81 = arith.constant 9.99999974E-6 : f32
    %261 = vector.broadcast %cst_81 : f32 to vector<4x1x1xf32>
    %262 = arith.addf %260, %261 : vector<4x1x1xf32>
    %263 = math.rsqrt %262 : vector<4x1x1xf32>
    %c64_i32_82 = arith.constant 64 : i32
    %264 = vector.broadcast %c64_i32_82 : i32 to vector<1x1x256xi32>
    %265 = arith.cmpi sge, %204, %264 : vector<1x1x256xi32>
    %c128_i32 = arith.constant 128 : i32
    %266 = vector.broadcast %c128_i32 : i32 to vector<1x1x256xi32>
    %267 = arith.cmpi slt, %204, %266 : vector<1x1x256xi32>
    %268 = arith.andi %265, %267 : vector<1x1x256xi1>
    %269 = vector.shape_cast %268 : vector<1x1x256xi1> to vector<1x1x256xi1>
    %270 = vector.broadcast %269 : vector<1x1x256xi1> to vector<4x1x256xi1>
    %271 = vector.shape_cast %263 : vector<4x1x1xf32> to vector<4x1x1xf32>
    %272 = vector.broadcast %271 : vector<4x1x1xf32> to vector<4x1x256xf32>
    %273 = arith.select %270, %272, %237 : vector<4x1x256xi1>, vector<4x1x256xf32>
    %274 = vector.shape_cast %268 : vector<1x1x256xi1> to vector<1x1x256xi1>
    %275 = vector.broadcast %274 : vector<1x1x256xi1> to vector<4x1x256xi1>
    %276 = vector.shape_cast %254 : vector<4x1x1xf32> to vector<4x1x1xf32>
    %277 = vector.broadcast %276 : vector<4x1x1xf32> to vector<4x1x256xf32>
    %278 = arith.select %275, %277, %242 : vector<4x1x256xi1>, vector<4x1x256xf32>
    %279 = vector.extract_strided_slice %203 {offsets = [0, 0, 128], sizes = [4, 8, 64], strides = [1, 1, 1]} : vector<4x8x256xf32> to vector<4x8x64xf32>
    %cst_83 = arith.constant dense<0.000000e+00> : vector<4x8xf32>
    %280 = vector.multi_reduction <add>, %279, %cst_83 [2] : vector<4x8x64xf32> to vector<4x8xf32>
    %281 = vector.shape_cast %280 : vector<4x8xf32> to vector<4x8x1xf32>
    %cst_84 = arith.constant dense<0.000000e+00> : vector<4x1xf32>
    %282 = vector.multi_reduction <add>, %281, %cst_84 [1] : vector<4x8x1xf32> to vector<4x1xf32>
    %283 = vector.shape_cast %282 : vector<4x1xf32> to vector<4x1x1xf32>
    %284 = arith.mulf %279, %279 : vector<4x8x64xf32>
    %cst_85 = arith.constant dense<0.000000e+00> : vector<4x8xf32>
    %285 = vector.multi_reduction <add>, %284, %cst_85 [2] : vector<4x8x64xf32> to vector<4x8xf32>
    %286 = vector.shape_cast %285 : vector<4x8xf32> to vector<4x8x1xf32>
    %cst_86 = arith.constant dense<0.000000e+00> : vector<4x1xf32>
    %287 = vector.multi_reduction <add>, %286, %cst_86 [1] : vector<4x8x1xf32> to vector<4x1xf32>
    %288 = vector.shape_cast %287 : vector<4x1xf32> to vector<4x1x1xf32>
    %cst_87 = arith.constant 5.120000e+02 : f32
    %289 = vector.broadcast %cst_87 : f32 to vector<4x1x1xf32>
    %290 = arith.divf %283, %289 : vector<4x1x1xf32>
    %cst_88 = arith.constant 5.120000e+02 : f32
    %291 = vector.broadcast %cst_88 : f32 to vector<4x1x1xf32>
    %292 = arith.divf %288, %291 : vector<4x1x1xf32>
    %293 = arith.mulf %290, %290 : vector<4x1x1xf32>
    %294 = arith.subf %292, %293 : vector<4x1x1xf32>
    %cst_89 = arith.constant 0.000000e+00 : f32
    %295 = vector.broadcast %cst_89 : f32 to vector<4x1x1xf32>
    %296 = arith.maximumf %294, %295 : vector<4x1x1xf32>
    %cst_90 = arith.constant 9.99999974E-6 : f32
    %297 = vector.broadcast %cst_90 : f32 to vector<4x1x1xf32>
    %298 = arith.addf %296, %297 : vector<4x1x1xf32>
    %299 = math.rsqrt %298 : vector<4x1x1xf32>
    %c128_i32_91 = arith.constant 128 : i32
    %300 = vector.broadcast %c128_i32_91 : i32 to vector<1x1x256xi32>
    %301 = arith.cmpi sge, %204, %300 : vector<1x1x256xi32>
    %c192_i32 = arith.constant 192 : i32
    %302 = vector.broadcast %c192_i32 : i32 to vector<1x1x256xi32>
    %303 = arith.cmpi slt, %204, %302 : vector<1x1x256xi32>
    %304 = arith.andi %301, %303 : vector<1x1x256xi1>
    %305 = vector.shape_cast %304 : vector<1x1x256xi1> to vector<1x1x256xi1>
    %306 = vector.broadcast %305 : vector<1x1x256xi1> to vector<4x1x256xi1>
    %307 = vector.shape_cast %299 : vector<4x1x1xf32> to vector<4x1x1xf32>
    %308 = vector.broadcast %307 : vector<4x1x1xf32> to vector<4x1x256xf32>
    %309 = arith.select %306, %308, %273 : vector<4x1x256xi1>, vector<4x1x256xf32>
    %310 = vector.shape_cast %304 : vector<1x1x256xi1> to vector<1x1x256xi1>
    %311 = vector.broadcast %310 : vector<1x1x256xi1> to vector<4x1x256xi1>
    %312 = vector.shape_cast %290 : vector<4x1x1xf32> to vector<4x1x1xf32>
    %313 = vector.broadcast %312 : vector<4x1x1xf32> to vector<4x1x256xf32>
    %314 = arith.select %311, %313, %278 : vector<4x1x256xi1>, vector<4x1x256xf32>
    %315 = vector.extract_strided_slice %203 {offsets = [0, 0, 192], sizes = [4, 8, 64], strides = [1, 1, 1]} : vector<4x8x256xf32> to vector<4x8x64xf32>
    %cst_92 = arith.constant dense<0.000000e+00> : vector<4x8xf32>
    %316 = vector.multi_reduction <add>, %315, %cst_92 [2] : vector<4x8x64xf32> to vector<4x8xf32>
    %317 = vector.shape_cast %316 : vector<4x8xf32> to vector<4x8x1xf32>
    %cst_93 = arith.constant dense<0.000000e+00> : vector<4x1xf32>
    %318 = vector.multi_reduction <add>, %317, %cst_93 [1] : vector<4x8x1xf32> to vector<4x1xf32>
    %319 = vector.shape_cast %318 : vector<4x1xf32> to vector<4x1x1xf32>
    %320 = arith.mulf %315, %315 : vector<4x8x64xf32>
    %cst_94 = arith.constant dense<0.000000e+00> : vector<4x8xf32>
    %321 = vector.multi_reduction <add>, %320, %cst_94 [2] : vector<4x8x64xf32> to vector<4x8xf32>
    %322 = vector.shape_cast %321 : vector<4x8xf32> to vector<4x8x1xf32>
    %cst_95 = arith.constant dense<0.000000e+00> : vector<4x1xf32>
    %323 = vector.multi_reduction <add>, %322, %cst_95 [1] : vector<4x8x1xf32> to vector<4x1xf32>
    %324 = vector.shape_cast %323 : vector<4x1xf32> to vector<4x1x1xf32>
    %cst_96 = arith.constant 5.120000e+02 : f32
    %325 = vector.broadcast %cst_96 : f32 to vector<4x1x1xf32>
    %326 = arith.divf %319, %325 : vector<4x1x1xf32>
    %cst_97 = arith.constant 5.120000e+02 : f32
    %327 = vector.broadcast %cst_97 : f32 to vector<4x1x1xf32>
    %328 = arith.divf %324, %327 : vector<4x1x1xf32>
    %329 = arith.mulf %326, %326 : vector<4x1x1xf32>
    %330 = arith.subf %328, %329 : vector<4x1x1xf32>
    %cst_98 = arith.constant 0.000000e+00 : f32
    %331 = vector.broadcast %cst_98 : f32 to vector<4x1x1xf32>
    %332 = arith.maximumf %330, %331 : vector<4x1x1xf32>
    %cst_99 = arith.constant 9.99999974E-6 : f32
    %333 = vector.broadcast %cst_99 : f32 to vector<4x1x1xf32>
    %334 = arith.addf %332, %333 : vector<4x1x1xf32>
    %335 = math.rsqrt %334 : vector<4x1x1xf32>
    %c192_i32_100 = arith.constant 192 : i32
    %336 = vector.broadcast %c192_i32_100 : i32 to vector<1x1x256xi32>
    %337 = arith.cmpi sge, %204, %336 : vector<1x1x256xi32>
    %c256_i32_101 = arith.constant 256 : i32
    %338 = vector.broadcast %c256_i32_101 : i32 to vector<1x1x256xi32>
    %339 = arith.cmpi slt, %204, %338 : vector<1x1x256xi32>
    %340 = arith.andi %337, %339 : vector<1x1x256xi1>
    %341 = vector.shape_cast %340 : vector<1x1x256xi1> to vector<1x1x256xi1>
    %342 = vector.broadcast %341 : vector<1x1x256xi1> to vector<4x1x256xi1>
    %343 = vector.shape_cast %335 : vector<4x1x1xf32> to vector<4x1x1xf32>
    %344 = vector.broadcast %343 : vector<4x1x1xf32> to vector<4x1x256xf32>
    %345 = arith.select %342, %344, %309 : vector<4x1x256xi1>, vector<4x1x256xf32>
    %346 = vector.shape_cast %340 : vector<1x1x256xi1> to vector<1x1x256xi1>
    %347 = vector.broadcast %346 : vector<1x1x256xi1> to vector<4x1x256xi1>
    %348 = vector.shape_cast %326 : vector<4x1x1xf32> to vector<4x1x1xf32>
    %349 = vector.broadcast %348 : vector<4x1x1xf32> to vector<4x1x256xf32>
    %350 = arith.select %347, %349, %314 : vector<4x1x256xi1>, vector<4x1x256xf32>
    %351 = vector.shape_cast %201 : vector<1x256xf32> to vector<1x1x256xf32>
    %352 = vector.broadcast %351 : vector<1x1x256xf32> to vector<4x1x256xf32>
    %353 = arith.mulf %345, %352 : vector<4x1x256xf32>
    %354 = vector.shape_cast %202 : vector<1x256xf32> to vector<1x1x256xf32>
    %355 = arith.mulf %350, %353 : vector<4x1x256xf32>
    %356 = vector.broadcast %354 : vector<1x1x256xf32> to vector<4x1x256xf32>
    %357 = arith.subf %356, %355 : vector<4x1x256xf32>
    %358 = vector.broadcast %353 : vector<4x1x256xf32> to vector<4x8x256xf32>
    %359 = arith.mulf %203, %358 : vector<4x8x256xf32>
    %360 = vector.broadcast %357 : vector<4x1x256xf32> to vector<4x8x256xf32>
    %361 = arith.addf %359, %360 : vector<4x8x256xf32>
    %362 = vector.shape_cast %361 : vector<4x8x256xf32> to vector<32x256xf32>
    %363 = arith.truncf %362 : vector<32x256xf32> to vector<32x256xbf16>
    %c0_102 = arith.constant 0 : index
    %c0_103 = arith.constant 0 : index
    %364 = vector.load %arg10[%c0_102, %c0_103] : memref<256x128xbf16, #tpu.memory_space<vmem>>, vector<256x128xbf16>
    %cst_104 = arith.constant dense<0.000000e+00> : vector<32x128xf32>
    %365 = tpu.matmul %363, %364, %cst_104 {dimension_numbers = #tpu.dot_dimension_numbers<[1], [0], [0], [1], [0, 0, 1, 1], [], []>} : vector<32x256xbf16>, vector<256x128xbf16>, vector<32x128xf32> -> vector<32x128xf32>
    %c0_105 = arith.constant 0 : index
    %c0_106 = arith.constant 0 : index
    %366 = vector.load %arg11[%c0_105, %c0_106] : memref<1x128xf32, #tpu.memory_space<vmem>>, vector<1x128xf32>
    %367 = vector.broadcast %366 : vector<1x128xf32> to vector<32x128xf32>
    %368 = arith.addf %365, %367 : vector<32x128xf32>
    %c0_107 = arith.constant 0 : index
    %c0_108 = arith.constant 0 : index
    %369 = vector.load %arg12[%c0_107, %c0_108] : memref<32x128xf32, #tpu.memory_space<vmem>>, vector<32x128xf32>
    tpu.vector_store %arg12[%c0_107, %c0_108], %368 {strides = array<i32>} : memref<32x128xf32, #tpu.memory_space<vmem>>, vector<32x128xf32>,
    return
  }
  func.func @transform_0(%arg0: i32) -> (i32, i32) {
    %c0_i32 = arith.constant 0 : i32
    %c0_i32_0 = arith.constant 0 : i32
    return %arg0, %c0_i32 : i32, i32
  }
  func.func @transform_1(%arg0: i32) -> (i32, i32) {
    %c0_i32 = arith.constant 0 : i32
    %c0_i32_0 = arith.constant 0 : i32
    %c0_i32_1 = arith.constant 0 : i32
    return %c0_i32, %c0_i32_0 : i32, i32
  }
  func.func @transform_2(%arg0: i32) -> (i32, i32) {
    %c0_i32 = arith.constant 0 : i32
    %c0_i32_0 = arith.constant 0 : i32
    %c0_i32_1 = arith.constant 0 : i32
    return %c0_i32, %c0_i32_0 : i32, i32
  }
  func.func @transform_3(%arg0: i32) -> (i32, i32) {
    %c0_i32 = arith.constant 0 : i32
    %c0_i32_0 = arith.constant 0 : i32
    %c0_i32_1 = arith.constant 0 : i32
    return %c0_i32, %c0_i32_0 : i32, i32
  }
  func.func @transform_4(%arg0: i32) -> (i32, i32) {
    %c0_i32 = arith.constant 0 : i32
    %c0_i32_0 = arith.constant 0 : i32
    %c0_i32_1 = arith.constant 0 : i32
    return %c0_i32, %c0_i32_0 : i32, i32
  }
  func.func @transform_5(%arg0: i32) -> (i32, i32) {
    %c0_i32 = arith.constant 0 : i32
    %c0_i32_0 = arith.constant 0 : i32
    %c0_i32_1 = arith.constant 0 : i32
    return %c0_i32, %c0_i32_0 : i32, i32
  }
  func.func @transform_6(%arg0: i32) -> (i32, i32) {
    %c0_i32 = arith.constant 0 : i32
    %c0_i32_0 = arith.constant 0 : i32
    %c0_i32_1 = arith.constant 0 : i32
    return %c0_i32, %c0_i32_0 : i32, i32
  }
  func.func @transform_7(%arg0: i32) -> (i32, i32) {
    %c0_i32 = arith.constant 0 : i32
    %c0_i32_0 = arith.constant 0 : i32
    %c0_i32_1 = arith.constant 0 : i32
    return %c0_i32, %c0_i32_0 : i32, i32
  }
  func.func @transform_8(%arg0: i32) -> (i32, i32) {
    %c0_i32 = arith.constant 0 : i32
    %c0_i32_0 = arith.constant 0 : i32
    %c0_i32_1 = arith.constant 0 : i32
    return %c0_i32, %c0_i32_0 : i32, i32
  }
  func.func @transform_9(%arg0: i32) -> (i32, i32) {
    %c0_i32 = arith.constant 0 : i32
    %c0_i32_0 = arith.constant 0 : i32
    %c0_i32_1 = arith.constant 0 : i32
    return %c0_i32, %c0_i32_0 : i32, i32
  }
  func.func @transform_10(%arg0: i32) -> (i32, i32) {
    %c0_i32 = arith.constant 0 : i32
    %c0_i32_0 = arith.constant 0 : i32
    %c0_i32_1 = arith.constant 0 : i32
    return %c0_i32, %c0_i32_0 : i32, i32
  }
  func.func @transform_11(%arg0: i32) -> (i32, i32) {
    %c0_i32 = arith.constant 0 : i32
    %c0_i32_0 = arith.constant 0 : i32
    return %arg0, %c0_i32 : i32, i32
  }
}

</mosaic_0001>

<bundles_post_ra>
// kernel: tpu_custom_call.1
= control target key start
LH: loop header
LB: loop body
LE: loop exit
PB: predicated region body
PF: predicated region fallthrough
CT: control target
= control target key end

     0   :  { %s8002_s0 = inlined_call_operand.hbm [shape: f32[64,128], index: 0, kind: input, shape index: {}]   ;;  %s8003_s1 = inlined_call_operand.hbm [shape: bf16[128,1024], index: 1, kind: input, shape index: {}]   ;;  %s8004_s2 = inlined_call_operand.hbm [shape: f32[1,1024], index: 2, kind: input, shape index: {}]   ;;  %s8005_s3 = inlined_call_operand.vmem [shape: f32[1,1024], index: 3, kind: input, shape index: {}]   ;;  %s8006_s4 = inlined_call_operand.hbm [shape: f32[1,1024], index: 4, kind: input, shape index: {}]   ;;  %s8007_s5 = inlined_call_operand.hbm [shape: bf16[1024,256], index: 5, kind: input, shape index: {}]   ;;  %s8008_s6 = inlined_call_operand.vmem [shape: f32[1,256], index: 6, kind: input, shape index: {}]   ;;  %s8009_s7 = inlined_call_operand.vmem [shape: f32[1,256], index: 7, kind: input, shape index: {}]   ;;  %s8010_s8 = inlined_call_operand.vmem [shape: f32[1,256], index: 8, kind: input, shape index: {}]   ;;  %s8011_s9 = inlined_call_operand.hbm [shape: bf16[256,128], index: 9, kind: input, shape index: {}]   ;;  %s8012_s10 = inlined_call_operand.vmem [shape: f32[1,128], index: 10, kind: input, shape index: {}]   ;;  %s8013_s11 = inlined_call_operand.hbm [shape: f32[64,128], index: 11, kind: output, shape index: {}]  }
   0x1   :  { %8072 = sst [smem:[#allocation60_spill]] %s8010_s8 }
   0x2   :  { %8073 = sst [smem:[#allocation61_spill]] %s8012_s10 }
   0x3   :  { %8074 = sst [smem:[#allocation62_spill]] %s8013_s11 }
   0x4   :  { %16 = vsyncpa [#allocation3], 0 }
   0x5   :  { %18 = vsyncpa [#allocation3 + $0x1], 0 }
   0x6   :  { %19 = vsyncpa [#allocation6], 0 }
   0x7   :  { %20 = vsyncpa [#allocation9], 0 }
   0x8   :  { %21 = vsyncpa [#allocation12], 0 }
   0x9   :  { %22 = vsyncpa [#allocation4], 0 }
   0xa   :  { %24 = vsyncpa [#allocation4 + $0x1], 0  ;;  %s6227_s17 = smov 0   ;;  %s6229_s18 = smov 0  }
   0xb   :  { %s6231_s19 = smov 0   ;;  %s6233_s20 = smov 0  }
   0xc LB: > { %s6149_s21 = smov [#allocation5]   ;;  %s6248_s23 = sadd.s32 4294967295, %s6147_s20   ;;  %s6147_s20 = sphi %s6233_s20, %s8186_s20   ;;  %s6143_s19 = sphi %s6231_s19, %s8185_s19   ;;  %s6139_s18 = sphi %s6229_s18, %s8184_s18   ;;  %s6135_s17 = sphi %s6227_s17, %s8183_s17  }
   0xd   : > { %s309_s22 = sshll.u32 %s6149_s21, 4  ;;  %p5145_p0 = scmp.ge.s32.totalorder %s6147_s20, 1  ;;  %s6253_s22 = int_to_ptr.vmem [resolvable:$true] %s309_s22 }
   0xe   : > { %p8015_p1 = scmp.eq.s32.totalorder %s6248_s23, 0  ;;  %p297_p2 = scmp.lt.s32.totalorder %s6147_s20, 3 }
   0xf   : > { %s6150_s25 = smov [#allocation8]   ;;  %s6151_s28 = smov [#allocation7]  }
  0x10   : > { %p6255_p3 = pnand %p5145_p0, %p297_p2  ;;  %s337_s26 = sshll.u32 %s6150_s25, 4  ;;  %s6268_s26 = int_to_ptr.vmem [resolvable:$true] %s337_s26 }
  0x11   : > { %s323_s29 = sshll.u32 %s6151_s28, 4  ;;  %s5899_s13 = scalar_lea.hbm %s8003_s1, 8192  ;;  %s6270_s29 = int_to_ptr.vmem [resolvable:$true] %s323_s29 }
  0x12   : > { %s8075_s24 = scalar_select %p6255_p3, 1, 0 }
  0x13   : > { %p5463_p5 = pneg %p6255_p3  ;;  %p5900_p7 = scmp.ne.s32.totalorder %s8003_s1, %s5899_s13 }
  0x14   : > { %p5906_p11 = scmp.lt.u32.totalorder %s5899_s13, %s8003_s1 }
  0x15   : > { %p6264_p6 = pnand %p5463_p5, %p8015_p1 }
  0x17   : > { %p6280_p8 = pneg %p6264_p6 }
  0x19   : > { %p5902_p9 = pnand %p6280_p8, %p5900_p7 }
  0x1b   : > { %p5903_p10 = pneg %p5902_p9 }
  0x1d   : > { %p5908_p12 = pnand %p5906_p11, %p5903_p10 }
  0x1f   : > { %5911 = shalt.err (!%p5908_p12)
}
  0x20   : > { %s5912_s28 = scalar_lea.vmem %s6253_s22, 8192  ;;  %p5920_p5 = scmp.lt.s32.totalorder %s6253_s22, %s6253_s22 }
  0x21   : > { %p5913_p13 = scmp.ne.s32.totalorder %s6253_s22, %s5912_s28  ;;  %p5921_p4 = scmp.lt.s32.totalorder %s5912_s28, %s5912_s28 }
  0x23   : > { %p5915_p0 = pnand %p5913_p13, %p6280_p8  ;;  %p5922_p7 = por %p5921_p4, %p5920_p5 }
  0x25   : > { %p5916_p2 = pneg %p5915_p0 }
  0x27   : > { %p5923_p9 = pnand %p5922_p7, %p5916_p2 }
  0x29   : > { %5926 = shalt.err (!%p5923_p9)
}
  0x2a   : > { %s6152_s30 = smov 512   ;;  %s6153_s12 = smov 32  }
  0x2b   : > { %5466 = dma.hbm_to_vmem [thread:$0]  (!%p6264_p6), %s8003_s1, 8192, %s6253_s22, [#allocation6], %s6152_s30, %s6152_s30, %s6153_s12  }
  0x2c   : > { %s5927_s25 = scalar_lea.hbm %s8006_s4, 128 }
  0x2d   : > { %p5928_p4 = scmp.ne.s32.totalorder %s8006_s4, %s5927_s25  ;;  %p5934_p12 = scmp.lt.u32.totalorder %s5927_s25, %s8006_s4 }
  0x2f   : > { %p5930_p10 = pnand %p5928_p4, %p6280_p8 }
  0x31   : > { %p5931_p11 = pneg %p5930_p10 }
  0x33   : > { %p5936_p13 = pnand %p5934_p12, %p5931_p11 }
  0x35   : > { %5939 = shalt.err (!%p5936_p13)
}
  0x36   : > { %s5940_s22 = scalar_lea.vmem %s6268_s26, 128  ;;  %p5948_p7 = scmp.lt.s32.totalorder %s6268_s26, %s6268_s26 }
  0x37   : > { %p5941_p0 = scmp.ne.s32.totalorder %s6268_s26, %s5940_s22  ;;  %p5949_p9 = scmp.lt.s32.totalorder %s5940_s22, %s5940_s22 }
  0x39   : > { %p5943_p2 = pnand %p5941_p0, %p6280_p8  ;;  %p5950_p4 = por %p5949_p9, %p5948_p7 }
  0x3b   : > { %p5944_p5 = pneg %p5943_p2 }
  0x3d   : > { %p5951_p10 = pnand %p5950_p4, %p5944_p5 }
  0x3f   : > { %5954 = shalt.err (!%p5951_p10)
}
  0x40   : > { %5472 = dma.hbm_to_vmem [thread:$0]  (!%p6264_p6), %s8006_s4, 128, %s6268_s26, [#allocation9]  }
  0x41   : > { %s5955_s12 = scalar_lea.hbm %s8004_s2, 128 }
  0x42   : > { %p5956_p11 = scmp.ne.s32.totalorder %s8004_s2, %s5955_s12  ;;  %p5962_p0 = scmp.lt.u32.totalorder %s5955_s12, %s8004_s2 }
  0x44   : > { %p5958_p12 = pnand %p5956_p11, %p6280_p8 }
  0x46   : > { %p5959_p13 = pneg %p5958_p12 }
  0x48   : > { %p5964_p2 = pnand %p5962_p0, %p5959_p13 }
  0x4a   : > { %5967 = shalt.err (!%p5964_p2)
}
  0x4b   : > { %s5968_s26 = scalar_lea.vmem %s6270_s29, 128  ;;  %p5976_p4 = scmp.lt.s32.totalorder %s6270_s29, %s6270_s29 }
  0x4c   : > { %p5969_p5 = scmp.ne.s32.totalorder %s6270_s29, %s5968_s26  ;;  %p5977_p10 = scmp.lt.s32.totalorder %s5968_s26, %s5968_s26 }
  0x4e   : > { %p5971_p7 = pnand %p5969_p5, %p6280_p8  ;;  %p5978_p11 = por %p5977_p10, %p5976_p4 }
  0x50   : > { %p5972_p9 = pneg %p5971_p7 }
  0x52   : > { %p5979_p12 = pnand %p5978_p11, %p5972_p9 }
  0x54   : > { %5982 = shalt.err (!%p5979_p12)
}
  0x55   : > { %5469 = dma.hbm_to_vmem [thread:$0]  (!%p6264_p6), %s8004_s2, 128, %s6270_s29, [#allocation6]  }
  0x56   : > { %s6154_s22 = smov [#allocation10]   ;;  %s5983_s30 = scalar_lea.hbm %s8007_s5, 16384 }
  0x57   : > { %s347_s8 = sshll.u32 %s6154_s22, 4  ;;  %p5984_p13 = scmp.ne.s32.totalorder %s8007_s5, %s5983_s30  ;;  %s348_s8 = int_to_ptr.vmem [resolvable:$true] %s347_s8 }
  0x58   : > { %p5990_p5 = scmp.lt.u32.totalorder %s5983_s30, %s8007_s5 }
  0x59   : > { %p5986_p0 = pnand %p5984_p13, %p6280_p8 }
  0x5b   : > { %p5987_p2 = pneg %p5986_p0 }
  0x5d   : > { %p5992_p7 = pnand %p5990_p5, %p5987_p2 }
  0x5f   : > { %5995 = shalt.err (!%p5992_p7)
}
  0x60   : > { %s5996_s29 = scalar_lea.vmem %s348_s8, 16384  ;;  %p6004_p11 = scmp.lt.s32.totalorder %s348_s8, %s348_s8 }
  0x61   : > { %p5997_p9 = scmp.ne.s32.totalorder %s348_s8, %s5996_s29  ;;  %p6005_p12 = scmp.lt.s32.totalorder %s5996_s29, %s5996_s29 }
  0x63   : > { %p5999_p4 = pnand %p5997_p9, %p6280_p8  ;;  %p6006_p1 = por %p6005_p12, %p6004_p11 }
  0x65   : > { %p6000_p10 = pneg %p5999_p4 }
  0x67   : > { %p6007_p3 = pnand %p6006_p1, %p6000_p10 }
  0x69   : > { %6010 = shalt.err (!%p6007_p3)
}
  0x6a   : > { %s8017_s21 = smov 128   ;;  %s8018_s26 = smov 8  }
  0x6b   : > { %5475 = dma.hbm_to_vmem [thread:$0]  (!%p6264_p6), %s8007_s5, 16384, %s348_s8, [#allocation9], %s8017_s21, %s8017_s21, %s8018_s26  }
  0x6c   : > { %s6157_s22 = smov [#allocation11]   ;;  %s6011_s12 = scalar_lea.hbm %s8011_s9, 2048 }
  0x6d   : > { %s369_s10 = sshll.u32 %s6157_s22, 4  ;;  %p6012_p1 = scmp.ne.s32.totalorder %s8011_s9, %s6011_s12  ;;  %s370_s10 = int_to_ptr.vmem [resolvable:$true] %s369_s10 }
  0x6e   : > { %p6018_p0 = scmp.lt.u32.totalorder %s6011_s12, %s8011_s9 }
  0x6f   : > { %p6014_p3 = pnand %p6012_p1, %p6280_p8 }
  0x71   : > { %p6015_p13 = pneg %p6014_p3 }
  0x73   : > { %p6020_p2 = pnand %p6018_p0, %p6015_p13 }
  0x75   : > { %6023 = shalt.err (!%p6020_p2)
}
  0x76   : > { %s6024_s8 = scalar_lea.vmem %s370_s10, 2048  ;;  %p6032_p4 = scmp.lt.s32.totalorder %s370_s10, %s370_s10 }
  0x77   : > { %p6025_p5 = scmp.ne.s32.totalorder %s370_s10, %s6024_s8  ;;  %p6033_p10 = scmp.lt.s32.totalorder %s6024_s8, %s6024_s8 }
  0x79   : > { %p6027_p7 = pnand %p6025_p5, %p6280_p8  ;;  %p6034_p11 = por %p6033_p10, %p6032_p4 }
  0x7b   : > { %p6028_p9 = pneg %p6027_p7 }
  0x7d   : > { %p6035_p12 = pnand %p6034_p11, %p6028_p9 }
  0x7f   : > { %6038 = shalt.err (!%p6035_p12)
}
  0x80   : > { %s6158_s25 = smov 64   ;;  %s6159_s16 = smov 4  }
  0x81   : > { %5478 = dma.hbm_to_vmem [thread:$0]  (!%p6264_p6), %s8011_s9, 2048, %s370_s10, [#allocation12], %s6158_s25, %s6158_s25, %s6159_s16  }
  0x82   : > { %s5144_s11 = sadd.s32 4294967294, %s6147_s20   ;;  %s6388_s30 = sadd.s32 1, %s6147_s20  }
  0x83   : > { %s37_s12 = sadd.s32 1, %s6143_s19  ;;  %s34_s13 = ssub.s32 %s6147_s20, %s6388_s30 }
  0x84   : > { %p44_p8 = scmp.ne.s32.totalorder %s6143_s19, %s6139_s18  ;;  %p35_p1 = scmp.eq.s32.totalorder %s34_s13, 0 }
  0x85   : > { %p45_p3 = scmp.eq.s32.totalorder %s6147_s20, 0  ;;  %p50_p13 = scmp.ne.s32.totalorder %s6139_s18, %s6135_s17 }
  0x86   : > { %p284_p0 = scmp.eq.s32.totalorder %s6248_s23, 1  ;;  %p8078_p5 = scmp.eq.s32.totalorder %s6248_s23, 0 }
  0x87   : > { %s6400_s14 = scalar_select %p35_p1, %s6143_s19, %s37_s12  }
  0x88   : > { %p46_p2 = por %p45_p3, %p44_p8  ;;  %p6404_p7 = por %p8078_p5, %p50_p13 }
  0x89   : > { %p6408_p6 = por %p284_p0, %p44_p8  ;;  %p290_p9 = scmp.eq.s32.totalorder %s5144_s11, 1 }
  0x8a   : > { %p5492_p4 = scmp.lt.s32.totalorder %s6147_s20, 2  ;;  %s386_s15 = sand.u32 1, %s6143_s19  }
  0x8b   : > { %s8080_s10 = scalar_select %p6408_p6, 1, 0 }
  0x8c   : > { %p6414_p10 = por %p290_p9, %p50_p13  ;;  %s5152_s8 = sshll.u32 %s386_s15, 5 }
  0x8d   : > { %s5377_s25 = sshll.u32 %s6147_s20, 9  ;;  %s390_s12 = scalar_lea.vmem [#allocation2], %s5152_s8 }
  0x8e   : > { %s8081_s29 = scalar_select %p6414_p10, 1, 0 }
  0x8f   : > { %s6422_s22 = scalar_lea.hbm %s8002_s0, %s5377_s25  ;;  %s397_s13 = sshll.u32 %s390_s12, 4  ;;  %s6428_s13 = int_to_ptr.vmem [resolvable:$true] %s397_s13 }
  0x90   : > { %p6424_p11 = pnand %p5492_p4, %p46_p2  ;;  %s6430_s21 = scalar_lea.sflag [#allocation3], %s386_s15 }
  0x91   : > { %s6039_s26 = scalar_lea.hbm %s6422_s22, 512  ;;  %s6044_s16 = scalar_lea.hbm %s8002_s0, 1024 }
  0x92   : > { %p6040_p12 = scmp.ne.s32.totalorder %s6422_s22, %s6039_s26  ;;  %p6041_p8 = pneg %p6424_p11 }
  0x93   : > { %p6045_p13 = scmp.lt.u32.totalorder %s6422_s22, %s8002_s0  ;;  %p6046_p0 = scmp.lt.u32.totalorder %s6044_s16, %s6039_s26 }
  0x94   : > { %p6042_p1 = pnand %p6041_p8, %p6040_p12  ;;  %p6048_p5 = scmp.lt.u32.totalorder %s6039_s26, %s6422_s22 }
  0x95   : > { %p6047_p2 = por %p6046_p0, %p6045_p13 }
  0x96   : > { %p6043_p3 = pneg %p6042_p1 }
  0x97   : > { %p6049_p9 = por %p6048_p5, %p6047_p2 }
  0x99   : > { %p6050_p4 = pnand %p6049_p9, %p6043_p3 }
  0x9b   : > { %6053 = shalt.err (!%p6050_p4)
}
  0x9c   : > { %s6054_s15 = scalar_lea.vmem %s6428_s13, 512  ;;  %s6160_s8 = smov [#allocation2]  }
  0x9d   : > { %p6055_p12 = scmp.ne.s32.totalorder %s6428_s13, %s6054_s15  ;;  %s6059_s25 = sshll.u32 %s6160_s8, 4  ;;  %s6060_s25 = int_to_ptr.vmem [resolvable:$false] %s6059_s25 }
  0x9e   : > { %s6061_s28 = scalar_lea.vmem %s6060_s25, 1024  ;;  %p6062_p6 = scmp.lt.s32.totalorder %s6428_s13, %s6060_s25 }
  0x9f   : > { %p6057_p1 = pnand %p6055_p12, %p6041_p8  ;;  %p6063_p13 = scmp.lt.s32.totalorder %s6061_s28, %s6054_s15 }
  0xa1   : > { %p6058_p10 = pneg %p6057_p1  ;;  %p6064_p0 = por %p6063_p13, %p6062_p6 }
  0xa3   : > { %p6065_p2 = pnand %p6064_p0, %p6058_p10 }
  0xa5   : > { %6068 = shalt.err (!%p6065_p2)
}
  0xa6   : > { %s8083_s26 = smov 8   ;;  %s8084_s16 = smov 128  }
  0xa7   : > { %5482 = dma.hbm_to_vmem [thread:$0]  (!%p6424_p11), %s6422_s22, 512, %s6428_s13, %s6430_s21, %s8084_s16, %s8084_s16, %s8083_s26  }
  0xa8   : > { %p8085_p8 = scmp.ne.s32.totalorder %s8075_s24, 0 }
  0xaa   : > { %409 = sbr.rel (%p8085_p8) target bundleno = 1898 (0x76a), region = 64 }
  0xb1   : > { %s6464_s12 = sand.u32 1, %s6139_s18  }
  0xb2   : > { %s5156_s15 = sshll.u32 %s6464_s12, 5  ;;  %s412_s8 = scalar_lea.sflag [#allocation3], %s6464_s12 }
  0xb3   : > { %s6470_s11 = scalar_lea.vmem [#allocation2], %s5156_s15 }
  0xb4   : > { %6114 = dma.done.wait (%p6404_p7), %s412_s8, 512  }
  0xb5   : > { %6116 = vsyncadd (%p6404_p7), %s412_s8, 4294966784  ;;  %p8086_p6 = scmp.eq.s32.totalorder %s6248_s23, 0 }
  0xb7   : > { %6118 = dma.done.wait (%p8086_p6), [#allocation6], 8320   ;;  %p8087_p10 = pmov %p8086_p6 }
  0xb8   : > { %p8088_p11 = pmov %p8086_p6 }
  0xb9   : > { %6120 = vsyncadd (%p8087_p10), [#allocation6], 4294958976 }
  0xba   : > { %6122 = dma.done.wait (%p8088_p11), [#allocation9], 16512   ;;  %p8089_p3 = pmov %p8086_p6 }
  0xbc   : > { %6124 = vsyncadd (%p8089_p3), [#allocation9], 4294950784  ;;  %p8090_p5 = pmov %p8089_p3 }
  0xbd   : > { %p8091_p9 = pmov %p8089_p3 }
  0xbe   : > { %6126 = dma.done.wait (%p8090_p5), [#allocation12], 2048  }
  0xbf   : > { %6128 = vsyncadd (%p8091_p9), [#allocation12], 4294965248  ;;  %v6161_v0 = vmov 0   ;;  %v483_v1 = vld [vmem:[#allocation5] sm:$0xff]  ;;  %v485_v3 = vld [vmem:[#allocation5 + $0x10] sm:$0xff]  ;;  %s6163_s13 = smov 64  }
  0xc0   : > { %941 = vmatprep.mubr.bf16.mxu1 %v6161_v0  ;;  %1047 = vmatprep.mubr.bf16.mxu0 %v6161_v0  ;;  %v487_v2 = vld [vmem:[#allocation5 + $0x20] sm:$0xff]  ;;  %v489_v5 = vld [vmem:[#allocation5 + $0x30] sm:$0xff]  ;;  %v484_v60 = vld [vmem:[#allocation5 + $0x8] sm:$0xff]  ;;  %vm4048_vm0 = vcmask 523264   ;;  %s8177_s8 = sld [smem:[#allocation60_spill]]  ;;  %s8178_s21 = sld [smem:[#allocation61_spill]] }
  0xc1   : > { %v5164_v4 = vcombine.high %v483_v1, %v487_v2  ;;  %v5163_v6 = vcombine.low %v483_v1, %v487_v2  ;;  %v491_v7 = vld [vmem:[#allocation5 + $0x40] sm:$0xff]  ;;  %v5168_v9 = vcombine.high %v485_v3, %v489_v5  ;;  %v5167_v10 = vcombine.low %v485_v3, %v489_v5  ;;  %v493_v12 = vld [vmem:[#allocation5 + $0x50] sm:$0xff]  ;;  %v488_v61 = vld [vmem:[#allocation5 + $0x28] sm:$0xff]  ;;  %s473_s27 = scalar_lea.vmem [#allocation13], %s5156_s15  ;;  %s8179_s28 = sld [smem:[#allocation62_spill]] }
  0xc2   : > { %v495_v8 = vld [vmem:[#allocation5 + $0x60] sm:$0xff]  ;;  %v497_v13 = vld [vmem:[#allocation5 + $0x70] sm:$0xff]  ;;  %v478_v3 = vld [vmem:[%s6470_s11 + $0x8] sm:$0xff]  ;;  %s5023_s22 = sshll.u32 %s473_s27, 4  ;;  %s5010_s16 = scalar_lea.sflag [#allocation4], %s6464_s12  ;;  %s7953_s22 = int_to_ptr.vmem [resolvable:$true] %s5023_s22 }
  0xc3   : > { %v5172_v11 = vcombine.high %v491_v7, %v495_v8  ;;  %v499_v14 = vld [vmem:[#allocation5 + $0x80] sm:$0xff]  ;;  %909 = vmatprep.subr.bf16.mxu1 %v5164_v4  ;;  %v5176_v15 = vcombine.high %v493_v12, %v497_v13  ;;  %v501_v17 = vld [vmem:[#allocation5 + $0x90] sm:$0xff]  ;;  %1015 = vmatprep.subr.bf16.mxu0 %v5168_v9  ;;  %v5171_v19 = vcombine.low %v491_v7, %v495_v8  ;;  %v492_v5 = vld [vmem:[#allocation5 + $0x48] sm:$0xff]  ;;  %p8180_p4 = scmp.ne.s32.totalorder %s8080_s10, 0 }
  0xc4   : > { %v503_v16 = vld [vmem:[#allocation5 + $0xa0] sm:$0xff]  ;;  %v505_v18 = vld [vmem:[#allocation5 + $0xb0] sm:$0xff]  ;;  %910 = vmatpush1.bf16.msra.mxu1 %v5163_v6  ;;  %1016 = vmatpush1.bf16.msra.mxu0 %v5167_v10  ;;  %v5175_v20 = vcombine.low %v493_v12, %v497_v13  ;;  %v496_v6 = vld [vmem:[#allocation5 + $0x68] sm:$0xff]  ;;  %v5166_v8 = vcombine.high %v484_v60, %v488_v61  ;;  %v5165_v10 = vcombine.low %v484_v60, %v488_v61 }
  0xc5   : > { %911 = vmatprep.subr.bf16.mxu1 %v5172_v11  ;;  %v5180_v21 = vcombine.high %v499_v14, %v503_v16  ;;  %1017 = vmatprep.subr.bf16.mxu0 %v5176_v15  ;;  %v5184_v22 = vcombine.high %v501_v17, %v505_v18  ;;  %v507_v23 = vld [vmem:[#allocation5 + $0xc0] sm:$0xff]  ;;  %v509_v25 = vld [vmem:[#allocation5 + $0xd0] sm:$0xff]  ;;  %v5179_v27 = vcombine.low %v499_v14, %v503_v16  ;;  %v500_v11 = vld [vmem:[#allocation5 + $0x88] sm:$0xff] }
  0xc6   : > { %v511_v24 = vld [vmem:[#allocation5 + $0xe0] sm:$0xff]  ;;  %v513_v26 = vld [vmem:[#allocation5 + $0xf0] sm:$0xff]  ;;  %v5183_v28 = vcombine.low %v501_v17, %v505_v18  ;;  %v504_v12 = vld [vmem:[#allocation5 + $0xa8] sm:$0xff]  ;;  %v5174_v13 = vcombine.high %v492_v5, %v496_v6  ;;  %v5173_v16 = vcombine.low %v492_v5, %v496_v6 }
  0xc7   : > { %v5188_v29 = vcombine.high %v507_v23, %v511_v24  ;;  %v5192_v30 = vcombine.high %v509_v25, %v513_v26  ;;  %v515_v31 = vld [vmem:[#allocation5 + $0x100] sm:$0xff]  ;;  %v517_v33 = vld [vmem:[#allocation5 + $0x110] sm:$0xff]  ;;  %v5187_v35 = vcombine.low %v507_v23, %v511_v24  ;;  %v5191_v36 = vcombine.low %v509_v25, %v513_v26  ;;  %v480_v15 = vld [vmem:[%s6470_s11 + $0x18] sm:$0xff] }
  0xc8   : > { %912 = vmatpush1.bf16.msra.mxu1 %v5171_v19  ;;  %1018 = vmatpush1.bf16.msra.mxu0 %v5175_v20  ;;  %v519_v32 = vld [vmem:[#allocation5 + $0x120] sm:$0xff]  ;;  %v521_v34 = vld [vmem:[#allocation5 + $0x130] sm:$0xff]  ;;  %v508_v17 = vld [vmem:[#allocation5 + $0xc8] sm:$0xff]  ;;  %v5182_v19 = vcombine.high %v500_v11, %v504_v12 }
  0xc9   : > { %913 = vmatprep.subr.bf16.mxu1 %v5180_v21  ;;  %1019 = vmatprep.subr.bf16.mxu0 %v5184_v22  ;;  %v5196_v37 = vcombine.high %v515_v31, %v519_v32  ;;  %v5200_v38 = vcombine.high %v517_v33, %v521_v34  ;;  %v523_v39 = vld [vmem:[#allocation5 + $0x140] sm:$0xff]  ;;  %v525_v41 = vld [vmem:[#allocation5 + $0x150] sm:$0xff]  ;;  %v5195_v43 = vcombine.low %v515_v31, %v519_v32  ;;  %v512_v18 = vld [vmem:[#allocation5 + $0xe8] sm:$0xff] }
  0xca   : > { %v527_v40 = vld [vmem:[#allocation5 + $0x160] sm:$0xff]  ;;  %v529_v42 = vld [vmem:[#allocation5 + $0x170] sm:$0xff]  ;;  %v5199_v44 = vcombine.low %v517_v33, %v521_v34  ;;  %v5181_v21 = vcombine.low %v500_v11, %v504_v12  ;;  %v516_v22 = vld [vmem:[#allocation5 + $0x108] sm:$0xff]  ;;  %v5190_v24 = vcombine.high %v508_v17, %v512_v18  ;;  %v5189_v25 = vcombine.low %v508_v17, %v512_v18 }
  0xcb   : > { %v5204_v45 = vcombine.high %v523_v39, %v527_v40  ;;  %v5208_v46 = vcombine.high %v525_v41, %v529_v42  ;;  %v531_v47 = vld [vmem:[#allocation5 + $0x180] sm:$0xff]  ;;  %v533_v49 = vld [vmem:[#allocation5 + $0x190] sm:$0xff]  ;;  %v5203_v51 = vcombine.low %v523_v39, %v527_v40  ;;  %v5207_v52 = vcombine.low %v525_v41, %v529_v42  ;;  %v520_v23 = vld [vmem:[#allocation5 + $0x128] sm:$0xff] }
  0xcc   : > { %914 = vmatpush1.bf16.msra.mxu1 %v5179_v27  ;;  %1020 = vmatpush1.bf16.msra.mxu0 %v5183_v28  ;;  %v535_v48 = vld [vmem:[#allocation5 + $0x1a0] sm:$0xff]  ;;  %v537_v50 = vld [vmem:[#allocation5 + $0x1b0] sm:$0xff]  ;;  %v524_v26 = vld [vmem:[#allocation5 + $0x148] sm:$0xff]  ;;  %v5198_v28 = vcombine.high %v516_v22, %v520_v23 }
  0xcd   : > { %915 = vmatprep.subr.bf16.mxu1 %v5188_v29  ;;  %1021 = vmatprep.subr.bf16.mxu0 %v5192_v30  ;;  %v5212_v53 = vcombine.high %v531_v47, %v535_v48  ;;  %v539_v54 = vld [vmem:[#allocation5 + $0x1c0] sm:$0xff]  ;;  %v5216_v55 = vcombine.high %v533_v49, %v537_v50  ;;  %v541_v57 = vld [vmem:[#allocation5 + $0x1d0] sm:$0xff]  ;;  %v5211_v59 = vcombine.low %v531_v47, %v535_v48  ;;  %v528_v27 = vld [vmem:[#allocation5 + $0x168] sm:$0xff] }
  0xce   : > { %v543_v56 = vld [vmem:[#allocation5 + $0x1e0] sm:$0xff]  ;;  %v545_v58 = vld [vmem:[#allocation5 + $0x1f0] sm:$0xff]  ;;  %v5215_v62 = vcombine.low %v533_v49, %v537_v50  ;;  %v5197_v29 = vcombine.low %v516_v22, %v520_v23  ;;  %v532_v30 = vld [vmem:[#allocation5 + $0x188] sm:$0xff]  ;;  %v5206_v32 = vcombine.high %v524_v26, %v528_v27  ;;  %v5205_v33 = vcombine.low %v524_v26, %v528_v27 }
  0xcf   : > { %v5220_v63 = vcombine.high %v539_v54, %v543_v56  ;;  %v5224_v1 = vcombine.high %v541_v57, %v545_v58  ;;  %v477_v2 = vld [vmem:[%s6470_s11] sm:$0xff]  ;;  %v5219_v4 = vcombine.low %v539_v54, %v543_v56  ;;  %v5223_v7 = vcombine.low %v541_v57, %v545_v58  ;;  %v479_v14 = vld [vmem:[%s6470_s11 + $0x10] sm:$0xff]  ;;  %v536_v31 = vld [vmem:[#allocation5 + $0x1a8] sm:$0xff] }
  0xd0   : > { %916 = vmatpush1.bf16.msra.mxu1 %v5187_v35  ;;  %1022 = vmatpush1.bf16.msra.mxu0 %v5191_v36  ;;  %v6492_v9 = vpack.c.bf16 %v478_v3, %v477_v2  ;;  %v6500_v20 = vpack.c.bf16 %v480_v15, %v479_v14  ;;  %v540_v34 = vld [vmem:[#allocation5 + $0x1c8] sm:$0xff]  ;;  %v5214_v36 = vcombine.high %v532_v30, %v536_v31  ;;  %v490_v39 = vld [vmem:[#allocation5 + $0x38] sm:$0xff] }
  0xd1   : > { %917 = vmatprep.subr.bf16.mxu1 %v5196_v37  ;;  %1023 = vmatprep.subr.bf16.mxu0 %v5200_v38  ;;  %v544_v35 = vld [vmem:[#allocation5 + $0x1e8] sm:$0xff]  ;;  %v5213_v37 = vcombine.low %v532_v30, %v536_v31  ;;  %v486_v38 = vld [vmem:[#allocation5 + $0x18] sm:$0xff] }
  0xd2   : > { %v5222_v40 = vcombine.high %v540_v34, %v544_v35  ;;  %v5221_v41 = vcombine.low %v540_v34, %v544_v35  ;;  %v494_v42 = vld [vmem:[#allocation5 + $0x58] sm:$0xff] }
  0xd3   : > { %v506_v47 = vld [vmem:[#allocation5 + $0xb8] sm:$0xff] }
  0xd4   : > { %918 = vmatpush1.bf16.msra.mxu1 %v5195_v43  ;;  %1024 = vmatpush1.bf16.msra.mxu0 %v5199_v44  ;;  %v498_v43 = vld [vmem:[#allocation5 + $0x78] sm:$0xff]  ;;  %v5170_v44 = vcombine.high %v486_v38, %v490_v39 }
  0xd5   : > { %919 = vmatprep.subr.bf16.mxu1 %v5204_v45  ;;  %1025 = vmatprep.subr.bf16.mxu0 %v5208_v46  ;;  %v5169_v45 = vcombine.low %v486_v38, %v490_v39  ;;  %v502_v46 = vld [vmem:[#allocation5 + $0x98] sm:$0xff]  ;;  %v5178_v48 = vcombine.high %v494_v42, %v498_v43  ;;  %v5177_v49 = vcombine.low %v494_v42, %v498_v43 }
  0xd6   : > { %v510_v50 = vld [vmem:[#allocation5 + $0xd8] sm:$0xff] }
  0xd7   : > { %v518_v54 = vld [vmem:[#allocation5 + $0x118] sm:$0xff] }
  0xd8   : > { %920 = vmatpush1.bf16.msra.mxu1 %v5203_v51  ;;  %1026 = vmatpush1.bf16.msra.mxu0 %v5207_v52  ;;  %v514_v51 = vld [vmem:[#allocation5 + $0xf8] sm:$0xff]  ;;  %v5186_v52 = vcombine.high %v502_v46, %v506_v47 }
  0xd9   : > { %921 = vmatprep.subr.bf16.mxu1 %v5212_v53  ;;  %1027 = vmatprep.subr.bf16.mxu0 %v5216_v55  ;;  %v5185_v53 = vcombine.low %v502_v46, %v506_v47  ;;  %v522_v55 = vld [vmem:[#allocation5 + $0x138] sm:$0xff]  ;;  %v5194_v56 = vcombine.high %v510_v50, %v514_v51  ;;  %v5193_v57 = vcombine.low %v510_v50, %v514_v51 }
  0xda   : > { %v5202_v58 = vcombine.high %v518_v54, %v522_v55  ;;  %v530_v60 = vld [vmem:[#allocation5 + $0x178] sm:$0xff]  ;;  %v5201_v61 = vcombine.low %v518_v54, %v522_v55 }
  0xdb   : > { %v546_v5 = vld [vmem:[#allocation5 + $0x1f8] sm:$0xff] }
  0xdc   : > { %922 = vmatpush1.bf16.msra.mxu1 %v5211_v59  ;;  %1028 = vmatpush1.bf16.msra.mxu0 %v5215_v62  ;;  %v526_v59 = vld [vmem:[#allocation5 + $0x158] sm:$0xff] }
  0xdd   : > { %923 = vmatprep.subr.bf16.mxu1 %v5220_v63  ;;  %1029 = vmatprep.subr.bf16.mxu0 %v5224_v1  ;;  %v5210_v62 = vcombine.high %v526_v59, %v530_v60  ;;  %v534_v63 = vld [vmem:[#allocation5 + $0x198] sm:$0xff]  ;;  %v5209_v2 = vcombine.low %v526_v59, %v530_v60 }
  0xde   : > { %v538_v1 = vld [vmem:[#allocation5 + $0x1b8] sm:$0xff] }
  0xdf   : > { %v5218_v3 = vcombine.high %v534_v63, %v538_v1  ;;  %v5217_v6 = vcombine.low %v534_v63, %v538_v1 }
  0xe0   : > { %924 = vmatpush1.bf16.msra.mxu1 %v5219_v4  ;;  %1030 = vmatpush1.bf16.msra.mxu0 %v5223_v7  ;;  %v542_v4 = vld [vmem:[#allocation5 + $0x1d8] sm:$0xff] }
  0xe1   : > { %962 = vmatprep.subr.bf16.mxu1 %v5166_v8  ;;  %v5226_v7 = vcombine.high %v542_v4, %v546_v5  ;;  %v5225_v8 = vcombine.low %v542_v4, %v546_v5 }
  0xe3   : > { %942 = vmatmul.mubr.bf16.vlgmr.msra.gmra.mrb[0].mxu1 %v6492_v9  ;;  %1048 = vmatmul.mubr.bf16.vlgmr.msra.gmra.mrb[0].mxu0 %v6492_v9 }
  0xe4   : > { %963 = vmatpush1.bf16.msra.mxu1 %v5165_v10  ;;  %951 = vmatprep.mubr.bf16.mxu1 %v6161_v0  ;;  %v8020_v10 = vlaneseq }
  0xe5   : > { %964 = vmatprep.subr.bf16.mxu1 %v5174_v13  ;;  %1057 = vmatprep.mubr.bf16.mxu0 %v6161_v0  ;;  %v6518_v13 = vld [vmem:[#allocation7] sm:$0xff] }
  0xe6   : > { %v6513_v11 = vshrl.u32 %v8020_v10, 7 }
  0xe8   : > { %965 = vmatpush1.bf16.msra.mxu1 %v5173_v16  ;;  %v6516_v12 = vsub.s32 0, %v6513_v11  ;;  %v6521_v14 = vsub.s32 1, %v6513_v11  ;;  %v6524_v15 = vsub.s32 4, %v6513_v11 }
  0xe9   : > { %966 = vmatprep.subr.bf16.mxu1 %v5182_v19 }
  0xea   : > { %8092 = vst [vmem:[#allocation19_spill] sm:$0xff] %v6524_v15  ;;  %v556_v16 = vrot.slane %v6518_v13, %v6521_v14  ;;  %v6535_v18 = vrot.slane %v6518_v13, %v6524_v15 }
  0xeb   : > { %952 = vmatmul.mubr.bf16.gmra.mrb[4].mxu1 %v6500_v20  ;;  %1058 = vmatmul.mubr.bf16.gmra.mrb[4].mxu0 %v6500_v20 }
  0xec   : > { %967 = vmatpush1.bf16.msra.mxu1 %v5181_v21  ;;  %994 = vmatprep.mubr.bf16.mxu1 %v6161_v0 }
  0xed   : > { %968 = vmatprep.subr.bf16.mxu1 %v5190_v24 }
  0xf0   : > { %969 = vmatpush1.bf16.msra.mxu1 %v5189_v25 }
  0xf1   : > { %970 = vmatprep.subr.bf16.mxu1 %v5198_v28 }
  0xf4   : > { %971 = vmatpush1.bf16.msra.mxu1 %v5197_v29 }
  0xf5   : > { %972 = vmatprep.subr.bf16.mxu1 %v5206_v32 }
  0xf8   : > { %973 = vmatpush1.bf16.msra.mxu1 %v5205_v33 }
  0xf9   : > { %974 = vmatprep.subr.bf16.mxu1 %v5214_v36 }
  0xfc   : > { %975 = vmatpush1.bf16.msra.mxu1 %v5213_v37 }
  0xfd   : > { %976 = vmatprep.subr.bf16.mxu1 %v5222_v40 }
 0x100   : > { %977 = vmatpush1.bf16.msra.mxu1 %v5221_v41 }
 0x101   : > { %1068 = vmatprep.subr.bf16.mxu1 %v5170_v44 }
 0x103   : > { %995 = vmatmul.mubr.bf16.vlgmr.msra.gmra.mrb[8].mxu1 %v6492_v9 }
 0x104   : > { %1069 = vmatpush1.bf16.msra.mxu1 %v5169_v45  ;;  %1004 = vmatprep.mubr.bf16.mxu1 %v6161_v0 }
 0x105   : > { %1070 = vmatprep.subr.bf16.mxu1 %v5178_v48 }
 0x108   : > { %1071 = vmatpush1.bf16.msra.mxu1 %v5177_v49 }
 0x109   : > { %1072 = vmatprep.subr.bf16.mxu1 %v5186_v52 }
 0x10b   : > { %1005 = vmatmul.mubr.bf16.gmra.mrb[12].mxu1 %v6500_v20 }
 0x10c   : > { %1073 = vmatpush1.bf16.msra.mxu1 %v5185_v53  ;;  %1100 = vmatprep.mubr.bf16.mxu1 %v6161_v0 }
 0x10d   : > { %1074 = vmatprep.subr.bf16.mxu1 %v5194_v56 }
 0x110   : > { %1075 = vmatpush1.bf16.msra.mxu1 %v5193_v57 }
 0x111   : > { %1076 = vmatprep.subr.bf16.mxu1 %v5202_v58 }
 0x114   : > { %1077 = vmatpush1.bf16.msra.mxu1 %v5201_v61 }
 0x115   : > { %1078 = vmatprep.subr.bf16.mxu1 %v5210_v62 }
 0x118   : > { %1079 = vmatpush1.bf16.msra.mxu1 %v5209_v2 }
 0x119   : > { %1080 = vmatprep.subr.bf16.mxu1 %v5218_v3 }
 0x11c   : > { %1081 = vmatpush1.bf16.msra.mxu1 %v5217_v6 }
 0x11d   : > { %1082 = vmatprep.subr.bf16.mxu1 %v5226_v7 }
 0x120   : > { %1083 = vmatpush1.bf16.msra.mxu1 %v5225_v8 }
 0x123   : > { %1101 = vmatmul.mubr.bf16.vlgmr.msra.gmra.mrb[16].mxu1 %v6492_v9  ;;  %v6529_v9 = vsub.s32 5, %v6513_v11 }
 0x124   : > { %1110 = vmatprep.mubr.bf16.mxu1 %v6161_v0  ;;  %v552_v0 = vrot.slane %v6518_v13, %v6516_v12 }
 0x125   : > { %8093 = vst [vmem:[#allocation20_spill] sm:$0xff] %v6529_v9  ;;  %v6541_v22 = vrot.slane %v6518_v13, %v6529_v9 }
 0x12b   : > { %1111 = vmatmul.mubr.bf16.gmra.mrb[20].mxu1 %v6500_v20 }
 0x1b6   : > { %v943_v17 = vpop.f32.mrb[0].mxu1  ;;  %v1049_v20 = vpop.f32.mrb[0].mxu0 }
 0x1b7   : > { %v6537_v19 = vadd.f32 %v943_v17, %v552_v0  ;;  %v945_v21 = vpop.f32.mrb[1].mxu1  ;;  %v6544_v23 = vadd.f32 %v1049_v20, %v6535_v18  ;;  %v1051_v25 = vpop.f32.mrb[1].mxu0 }
 0x1b8   : > { %v6546_v24 = vadd.f32 %v945_v21, %v556_v16  ;;  %v947_v26 = vpop.f32.mrb[2].mxu1  ;;  %v6550_v28 = vadd.f32 %v1051_v25, %v6541_v22  ;;  %v1053_v30 = vpop.f32.mrb[2].mxu0 }
 0x1b9   : > { %v1153_v27 = vmul.f32 0.044715, %v6537_v19  ;;  %v6552_v29 = vadd.f32 %v947_v26, %v552_v0  ;;  %v949_v31 = vpop.f32.mrb[3].mxu1  ;;  %v1157_v32 = vmul.f32 0.044715, %v6544_v23  ;;  %v6557_v34 = vadd.f32 %v1053_v30, %v6535_v18  ;;  %v1055_v36 = vpop.f32.mrb[3].mxu0 }
 0x1ba   : > { %v1154_v33 = vmul.f32 0.044715, %v6546_v24  ;;  %v6559_v35 = vadd.f32 %v949_v31, %v556_v16  ;;  %v1158_v38 = vmul.f32 0.044715, %v6550_v28  ;;  %v6565_v40 = vadd.f32 %v1055_v36, %v6541_v22 }
 0x1bb   : > { %v1185_v37 = vmul.f32 %v1153_v27, %v6537_v19  ;;  %v1161_v39 = vmul.f32 0.044715, %v6552_v29  ;;  %v1165_v42 = vmul.f32 0.044715, %v6557_v34  ;;  %v1189_v49 = vmul.f32 %v1157_v32, %v6544_v23 }
 0x1bc   : > { %v1186_v41 = vmul.f32 %v1154_v33, %v6546_v24  ;;  %v1162_v43 = vmul.f32 0.044715, %v6559_v35  ;;  %v1166_v45 = vmul.f32 0.044715, %v6565_v40  ;;  %v1190_v50 = vmul.f32 %v1158_v38, %v6550_v28 }
 0x1bd   : > { %v1193_v44 = vmul.f32 %v1161_v39, %v6552_v29  ;;  %v1217_v48 = vmul.f32 %v1185_v37, %v6537_v19  ;;  %v1197_v53 = vmul.f32 %v1165_v42, %v6557_v34  ;;  %v1221_v7 = vmul.f32 %v1189_v49, %v6544_v23 }
 0x1be   : > { %v1194_v46 = vmul.f32 %v1162_v43, %v6559_v35  ;;  %v953_v47 = vpop.f32.mrb[4].mxu1  ;;  %v1218_v56 = vmul.f32 %v1186_v41, %v6546_v24  ;;  %v1059_v58 = vpop.f32.mrb[4].mxu0  ;;  %v1198_v60 = vmul.f32 %v1166_v45, %v6565_v40  ;;  %v1222_v8 = vmul.f32 %v1190_v50, %v6550_v28 }
 0x1bf   : > { %v6576_v51 = vadd.f32 %v953_v47, %v552_v0  ;;  %v955_v52 = vpop.f32.mrb[5].mxu1  ;;  %v1249_v57 = vadd.f32 %v1217_v48, %v6537_v19  ;;  %v1225_v59 = vmul.f32 %v1193_v44, %v6552_v29  ;;  %v1061_v63 = vpop.f32.mrb[5].mxu0  ;;  %v1229_v20 = vmul.f32 %v1197_v53, %v6557_v34 }
 0x1c0   : > { %v6579_v54 = vadd.f32 %v955_v52, %v556_v16  ;;  %v957_v55 = vpop.f32.mrb[6].mxu1  ;;  %v1226_v1 = vmul.f32 %v1194_v46, %v6559_v35  ;;  %v1250_v3 = vadd.f32 %v1218_v56, %v6546_v24  ;;  %v1063_v4 = vpop.f32.mrb[6].mxu0  ;;  %v1230_v21 = vmul.f32 %v1198_v60, %v6565_v40 }
 0x1c1   : > { %v6585_v61 = vadd.f32 %v957_v55, %v552_v0  ;;  %v959_v62 = vpop.f32.mrb[7].mxu1  ;;  %v1281_v5 = vmul.f32 0.7978846, %v1249_v57  ;;  %v1065_v6 = vpop.f32.mrb[7].mxu0  ;;  %v1257_v0 = vadd.f32 %v1225_v59, %v6552_v29  ;;  %v1261_v25 = vadd.f32 %v1229_v20, %v6557_v34 }
 0x1c2   : > { %v6588_v2 = vadd.f32 %v959_v62, %v556_v16  ;;  %v1282_v17 = vmul.f32 0.7978846, %v1250_v3  ;;  %v1258_v16 = vadd.f32 %v1226_v1, %v6559_v35  ;;  %v1262_v26 = vadd.f32 %v1230_v21, %v6565_v40 }
 0x1c3   : > { %5755 = vtanh.f32 %v1281_v5  ;;  %v1293_v27 = vmul.f32 0.7978846, %v1261_v25  ;;  %v1253_v30 = vadd.f32 %v1221_v7, %v6544_v23  ;;  %v1254_v31 = vadd.f32 %v1222_v8, %v6550_v28 }
 0x1c4   : > { %5757 = vtanh.f32 %v1282_v17  ;;  %v1294_v32 = vmul.f32 0.7978846, %v1262_v26  ;;  %v1289_v33 = vmul.f32 0.7978846, %v1257_v0  ;;  %v1290_v38 = vmul.f32 0.7978846, %v1258_v16 }
 0x1c5   : > { %5759 = vtanh.f32 %v1293_v27  ;;  %v1285_v36 = vmul.f32 0.7978846, %v1253_v30  ;;  %v1286_v37 = vmul.f32 0.7978846, %v1254_v31  ;;  %v6602_v39 = vadd.f32 %v1059_v58, %v6535_v18 }
 0x1c6   : > { %5761 = vtanh.f32 %v1294_v32  ;;  %v6605_v41 = vadd.f32 %v1061_v63, %v6541_v22  ;;  %v6608_v42 = vadd.f32 %v1063_v4, %v6535_v18  ;;  %v6611_v43 = vadd.f32 %v1065_v6, %v6541_v22 }
 0x1c7   : > { %5763 = vtanh.f32 %v1285_v36  ;;  %v6614_v45 = vsub.s32 2, %v6513_v11  ;;  %v1121_v47 = vmul.f32 0.5, %v6537_v19  ;;  %v6618_v49 = vsub.s32 3, %v6513_v11 }
 0x1c8   : > { %5765 = vtanh.f32 %v1286_v37  ;;  %v1122_v18 = vmul.f32 0.5, %v6546_v24  ;;  %v1133_v55 = vmul.f32 0.5, %v6557_v34  ;;  %v1134_v19 = vmul.f32 0.5, %v6565_v40 }
 0x1c9   : > { %5767 = vtanh.f32 %v1289_v33  ;;  %v6627_v53 = vrot.slane %v6518_v13, %v6614_v45  ;;  %v6633_v57 = vrot.slane %v6518_v13, %v6618_v49  ;;  %v1125_v60 = vmul.f32 0.5, %v6544_v23 }
 0x1ca   : > { %5769 = vtanh.f32 %v1290_v38  ;;  %v1126_v3 = vmul.f32 0.5, %v6550_v28  ;;  %v1129_v7 = vmul.f32 0.5, %v6552_v29  ;;  %v1130_v28 = vmul.f32 0.5, %v6559_v35 }
 0x1cd   : > { %v5756_v44 = vpop.eup %5755 }
 0x1ce   : > { %v5758_v46 = vpop.eup %5757  ;;  %v1345_v48 = vadd.f32 1.0, %v5756_v44 }
 0x1cf   : > { %v1346_v50 = vadd.f32 1.0, %v5758_v46  ;;  %v5760_v56 = vpop.eup %5759 }
 0x1d0   : > { %v6621_v52 = vmul.f32 %v1345_v48, %v1121_v47  ;;  %v5762_v58 = vpop.eup %5761  ;;  %v1357_v59 = vadd.f32 1.0, %v5760_v56  ;;  %v1169_v48 = vmul.f32 0.044715, %v6576_v51 }
 0x1d1   : > { %v6623_v22 = vmul.f32 %v1346_v50, %v1122_v18  ;;  %v5764_v62 = vpop.eup %5763  ;;  %v1358_v1 = vadd.f32 1.0, %v5762_v58 }
 0x1d2   : > { %v5766_v34 = vpop.eup %5765  ;;  %v6642_v4 = vmul.f32 %v1357_v59, %v1133_v55  ;;  %v1349_v6 = vadd.f32 1.0, %v5764_v62  ;;  %v1170_v55 = vmul.f32 0.044715, %v6579_v54 }
 0x1d3   : > { %v1420_v24 = vadd.f32 %v6623_v22, %v6621_v52  ;;  %v5768_v8 = vpop.eup %5767  ;;  %v6645_v17 = vmul.f32 %v1358_v1, %v1134_v19  ;;  %v1350_v0 = vadd.f32 1.0, %v5766_v34 }
 0x1d4   : > { %8094 = vst [vmem:[#allocation21_spill] sm:$0xff] %v6642_v4  ;;  %v5770_v21 = vpop.eup %5769  ;;  %v6655_v27 = vmul.f32 %v1349_v6, %v1125_v60  ;;  %v1353_v29 = vadd.f32 1.0, %v5768_v8  ;;  %v1457_v6 = vmul.f32 %v6623_v22, %v6623_v22 }
 0x1d5   : > { %1421 = vadd.xlane.f32.xlu0 %v1420_v24  ;;  %8095 = vst [vmem:[#allocation22_spill] sm:$0xff] %v6645_v17  ;;  %v1848_v30 = vadd.f32 %v6645_v17, %v6642_v4  ;;  %v6663_v33 = vmul.f32 %v1350_v0, %v1126_v3  ;;  %v1354_v37 = vadd.f32 1.0, %v5770_v21  ;;  %v1883_v24 = vmul.f32 %v6642_v4, %v6642_v4 }
 0x1d6   : > { %v996_v63 = vpop.f32.mrb[8].mxu1  ;;  %8096 = vst [vmem:[#allocation23_spill] sm:$0xff] %v6655_v27  ;;  %v6667_v38 = vmul.f32 %v1353_v29, %v1129_v7  ;;  %v1884_v1 = vmul.f32 %v6645_v17, %v6645_v17  ;;  %v1201_v7 = vmul.f32 %v1169_v48, %v6576_v51  ;;  %v1881_v21 = vmul.f32 %v6655_v27, %v6655_v27 }
 0x1d7   : > { %v6640_v40 = vadd.f32 %v996_v63, %v6627_v53  ;;  %v998_v5 = vpop.f32.mrb[9].mxu1  ;;  %8097 = vst [vmem:[#allocation24_spill] sm:$0xff] %v6663_v33  ;;  %1849 = vadd.xlane.f32.xlu1 %v1848_v30  ;;  %v1845_v47 = vadd.f32 %v6663_v33, %v6655_v27  ;;  %v6674_v18 = vmul.f32 %v1354_v37, %v1130_v28 }
 0x1d8   : > { %v6648_v23 = vadd.f32 %v998_v5, %v6633_v57  ;;  %v1000_v20 = vpop.f32.mrb[10].mxu1  ;;  %v1458_v50 = vmul.f32 %v6667_v38, %v6667_v38  ;;  %v1456_v5 = vmul.f32 %v6621_v52, %v6621_v52  ;;  %v1892_v29 = vadd.f32 %v1884_v1, %v1883_v24 }
 0x1d9   : > { %v1155_v16 = vmul.f32 0.044715, %v6640_v40  ;;  %v6653_v25 = vadd.f32 %v1000_v20, %v6627_v53  ;;  %v1002_v26 = vpop.f32.mrb[11].mxu1  ;;  %1846 = vadd.xlane.f32.xlu0 %v1845_v47  ;;  %v1459_v62 = vmul.f32 %v6674_v18, %v6674_v18  ;;  %v1423_v3 = vadd.f32 %v6674_v18, %v6667_v38 }
 0x1da   : > { %v1156_v31 = vmul.f32 0.044715, %v6648_v23  ;;  %v6661_v32 = vadd.f32 %v1002_v26, %v6633_v57  ;;  %v1202_v26 = vmul.f32 %v1170_v55, %v6579_v54  ;;  %v1177_v55 = vmul.f32 0.044715, %v6585_v61 }
 0x1db   : > { %v1187_v35 = vmul.f32 %v1155_v16, %v6640_v40  ;;  %v1163_v36 = vmul.f32 0.044715, %v6653_v25  ;;  %v1467_v8 = vadd.f32 %v1459_v62, %v1458_v50  ;;  %v1882_v16 = vmul.f32 %v6663_v33, %v6663_v33 }
 0x1dc   : > { %v1188_v44 = vmul.f32 %v1156_v31, %v6648_v23  ;;  %v1164_v46 = vmul.f32 0.044715, %v6661_v32  ;;  %v1234_v50 = vmul.f32 %v1202_v26, %v6579_v54  ;;  %v1181_v62 = vmul.f32 0.044715, %v6608_v42 }
 0x1dd   : > { %v1195_v56 = vmul.f32 %v1163_v36, %v6653_v25  ;;  %v1219_v59 = vmul.f32 %v1187_v35, %v6640_v40  ;;  %1424 = vadd.xlane.f32.xlu0 %v1423_v3  ;;  %1468 = vadd.xlane.f32.xlu1 %v1467_v8  ;;  %v1464_v35 = vadd.f32 %v1457_v6, %v1456_v5  ;;  %v1182_v1 = vmul.f32 0.044715, %v6611_v43 }
 0x1de   : > { %v1196_v19 = vmul.f32 %v1164_v46, %v6661_v32  ;;  %v1006_v58 = vpop.f32.mrb[12].mxu1  ;;  %v1220_v60 = vmul.f32 %v1188_v44, %v6648_v23  ;;  %v1233_v44 = vmul.f32 %v1201_v7, %v6576_v51  ;;  %v1889_v46 = vadd.f32 %v1882_v16, %v1881_v21 }
 0x1df   : > { %v1008_v63 = vpop.f32.mrb[13].mxu1  ;;  %v1227_v0 = vmul.f32 %v1195_v56, %v6653_v25  ;;  %v1251_v30 = vadd.f32 %v1219_v59, %v6640_v40  ;;  %v1178_v56 = vmul.f32 0.044715, %v6588_v2  ;;  %v1173_v59 = vmul.f32 0.044715, %v6602_v39 }
 0x1e0   : > { %v1010_v34 = vpop.f32.mrb[14].mxu1  ;;  %v1228_v28 = vmul.f32 %v1196_v19, %v6661_v32  ;;  %v1252_v31 = vadd.f32 %v1220_v60, %v6648_v23  ;;  %v1174_v60 = vmul.f32 0.044715, %v6605_v41  ;;  %v6716_v3 = vadd.f32 %v1006_v58, %v6627_v53 }
 0x1e1   : > { %v1012_v20 = vpop.f32.mrb[15].mxu1  ;;  %v1283_v36 = vmul.f32 0.7978846, %v1251_v30  ;;  %1465 = vadd.xlane.f32.xlu0 %v1464_v35  ;;  %v1259_v47 = vadd.f32 %v1227_v0, %v6653_v25  ;;  %1893 = vadd.xlane.f32.xlu1 %v1892_v29  ;;  %v6719_v5 = vsub.s32 6, %v6513_v11  ;;  %v1265_v6 = vadd.f32 %v1233_v44, %v6576_v51 }
 0x1e2   : > { %v1284_v37 = vmul.f32 0.7978846, %v1252_v31  ;;  %v1260_v48 = vadd.f32 %v1228_v28, %v6661_v32  ;;  %v1209_v7 = vmul.f32 %v1177_v55, %v6585_v61  ;;  %v6724_v8 = vsub.s32 7, %v6513_v11 }
 0x1e3   : > { %5771 = vtanh.f32 %v1283_v36  ;;  %v1291_v19 = vmul.f32 0.7978846, %v1259_v47  ;;  %8098 = vst [vmem:[#allocation25_spill] sm:$0xff] %v6719_v5  ;;  %v1266_v0 = vadd.f32 %v1234_v50, %v6579_v54  ;;  %v1210_v28 = vmul.f32 %v1178_v56, %v6588_v2 }
 0x1e4   : > { %5773 = vtanh.f32 %v1284_v37  ;;  %v1292_v24 = vmul.f32 0.7978846, %v1260_v48  ;;  %8099 = vst [vmem:[#allocation26_spill] sm:$0xff] %v6724_v8  ;;  %v6729_v58 = vadd.f32 %v1008_v63, %v6633_v57  ;;  %v1205_v21 = vmul.f32 %v1173_v59, %v6602_v39 }
 0x1e5   : > { %1890 = vadd.xlane.f32.xlu0 %v1889_v46  ;;  %5775 = vtanh.f32 %v1291_v19  ;;  %v6733_v16 = vadd.f32 %v1010_v34, %v6627_v53  ;;  %v1206_v26 = vmul.f32 %v1174_v60, %v6605_v41  ;;  %v1213_v29 = vmul.f32 %v1181_v62, %v6608_v42 }
 0x1e6   : > { %5777 = vtanh.f32 %v1292_v24  ;;  %v1214_v30 = vmul.f32 %v1182_v1, %v6611_v43  ;;  %v1171_v31 = vmul.f32 0.044715, %v6716_v3  ;;  %v1297_v35 = vmul.f32 0.7978846, %v1265_v6 }
 0x1e7   : > { %v1241_v36 = vmul.f32 %v1209_v7, %v6585_v61  ;;  %v6742_v63 = vrot.slane %v6518_v13, %v6719_v5  ;;  %v6746_v37 = vrot.slane %v6518_v13, %v6724_v8  ;;  %v1298_v53 = vmul.f32 0.7978846, %v1266_v0 }
 0x1e8   : > { %v1242_v34 = vmul.f32 %v1210_v28, %v6588_v2  ;;  %v1172_v44 = vmul.f32 0.044715, %v6729_v58  ;;  %v6751_v46 = vadd.f32 %v1012_v20, %v6633_v57  ;;  %v6754_v47 = vmul.f32 %v1205_v21, %v6602_v39 }
 0x1e9   : > { %v1179_v50 = vmul.f32 0.044715, %v6733_v16  ;;  %v6758_v55 = vmul.f32 %v1206_v26, %v6605_v41  ;;  %v6761_v13 = vmul.f32 %v1213_v29, %v6608_v42  ;;  %v6764_v56 = vmul.f32 %v1214_v30, %v6611_v43 }
 0x1ea   : > { %v1203_v24 = vmul.f32 %v1171_v31, %v6716_v3  ;;  %v1123_v57 = vmul.f32 0.5, %v6640_v40  ;;  %5779 = vtanh.f32 %v1297_v35  ;;  %v1124_v59 = vmul.f32 0.5, %v6648_v23 }
 0x1eb   : > { %5781 = vtanh.f32 %v1298_v53  ;;  %v1273_v62 = vadd.f32 %v1241_v36, %v6585_v61  ;;  %v1204_v6 = vmul.f32 %v1172_v44, %v6729_v58  ;;  %v1180_v7 = vmul.f32 0.044715, %v6751_v46 }
 0x1ec   : > { %v1274_v28 = vadd.f32 %v1242_v34, %v6588_v2  ;;  %v1211_v40 = vmul.f32 %v1179_v50, %v6733_v16  ;;  %v1131_v23 = vmul.f32 0.5, %v6653_v25  ;;  %v1235_v30 = vmul.f32 %v1203_v24, %v6716_v3 }
 0x1ed   : > { %v5772_v48 = vpop.eup %5771  ;;  %v1132_v36 = vmul.f32 0.5, %v6661_v32  ;;  %v1212_v24 = vmul.f32 %v1180_v7, %v6751_v46  ;;  %v1269_v33 = vadd.f32 %v6754_v47, %v6602_v39 }
 0x1ee   : > { %v5774_v19 = vpop.eup %5773  ;;  %v1347_v20 = vadd.f32 1.0, %v5772_v48 }
 0x1ef   : > { %v1348_v60 = vadd.f32 1.0, %v5774_v19  ;;  %v5776_v1 = vpop.eup %5775  ;;  %v1236_v19 = vmul.f32 %v1204_v6, %v6729_v58 }
 0x1f0   : > { %v6772_v0 = vmul.f32 %v1347_v20, %v1123_v57  ;;  %v5778_v21 = vpop.eup %5777  ;;  %v1355_v29 = vadd.f32 1.0, %v5776_v1 }
 0x1f1   : > { %v6776_v26 = vmul.f32 %v1348_v60, %v1124_v59  ;;  %v1356_v53 = vadd.f32 1.0, %v5778_v21  ;;  %v1243_v59 = vmul.f32 %v1211_v40, %v6733_v16  ;;  %v1268_v17 = vadd.f32 %v1236_v19, %v6729_v58 }
 0x1f2   : > { %8100 = vst [vmem:[#allocation27_spill] sm:$0xff] %v6772_v0  ;;  %v1669_v35 = vmul.f32 %v6772_v0, %v6772_v0  ;;  %v6790_v50 = vmul.f32 %v1355_v29, %v1131_v23 }
 0x1f3   : > { %v1633_v34 = vadd.f32 %v6776_v26, %v6772_v0  ;;  %v1670_v25 = vmul.f32 %v6776_v26, %v6776_v26  ;;  %v6797_v20 = vmul.f32 %v1356_v53, %v1132_v36 }
 0x1f4   : > { %8101 = vst [vmem:[#allocation28_spill] sm:$0xff] %v6790_v50  ;;  %v1671_v29 = vmul.f32 %v6790_v50, %v6790_v50 }
 0x1f5   : > { %1634 = vadd.xlane.f32.xlu1 %v1633_v34  ;;  %v1677_v1 = vadd.f32 %v1670_v25, %v1669_v35  ;;  %v1636_v35 = vadd.f32 %v6797_v20, %v6790_v50  ;;  %v1672_v53 = vmul.f32 %v6797_v20, %v6797_v20  ;;  %v5780_v34 = vpop.eup %5779 }
 0x1f6   : > { %v1102_v31 = vpop.f32.mrb[16].mxu1  ;;  %v5782_v10 = vpop.eup %5781 }
 0x1f7   : > { %v6786_v44 = vadd.f32 %v1102_v31, %v6742_v63  ;;  %v1104_v48 = vpop.f32.mrb[17].mxu1  ;;  %v1267_v31 = vadd.f32 %v1235_v30, %v6716_v3  ;;  %1678 = vadd.xlane.f32.xlu0 %v1677_v1  ;;  %v1244_v30 = vmul.f32 %v1212_v24, %v6751_v46  ;;  %v1680_v50 = vadd.f32 %v1672_v53, %v1671_v29 }
 0x1f8   : > { %v6795_v57 = vadd.f32 %v1104_v48, %v6746_v37  ;;  %v1106_v32 = vpop.f32.mrb[18].mxu1 }
 0x1f9   : > { %v1159_v60 = vmul.f32 0.044715, %v6786_v44  ;;  %v6802_v21 = vadd.f32 %v1106_v32, %v6742_v63  ;;  %v1108_v23 = vpop.f32.mrb[19].mxu1  ;;  %v1305_v32 = vmul.f32 0.7978846, %v1273_v62  ;;  %1637 = vadd.xlane.f32.xlu1 %v1636_v35  ;;  %v1276_v29 = vadd.f32 %v1244_v30, %v6751_v46 }
 0x1fa   : > { %v1160_v6 = vmul.f32 0.044715, %v6795_v57  ;;  %v6806_v7 = vadd.f32 %v1108_v23, %v6746_v37  ;;  %v1306_v23 = vmul.f32 0.7978846, %v1274_v28  ;;  %v1299_v62 = vmul.f32 0.7978846, %v1267_v31 }
 0x1fb   : > { %v1191_v40 = vmul.f32 %v1159_v60, %v6786_v44  ;;  %v1167_v36 = vmul.f32 0.044715, %v6802_v21  ;;  %5783 = vtanh.f32 %v1305_v32  ;;  %v1300_v32 = vmul.f32 0.7978846, %v1268_v17 }
 0x1fc   : > { %v1192_v48 = vmul.f32 %v1160_v6, %v6795_v57  ;;  %v1168_v25 = vmul.f32 0.044715, %v6806_v7  ;;  %5785 = vtanh.f32 %v1306_v23  ;;  %v1277_v23 = vadd.f32 %v6761_v13, %v6608_v42 }
 0x1fd   : > { %v1223_v60 = vmul.f32 %v1191_v40, %v6786_v44  ;;  %v1199_v1 = vmul.f32 %v1167_v36, %v6802_v21  ;;  %v1275_v36 = vadd.f32 %v1243_v59, %v6733_v16  ;;  %1681 = vadd.xlane.f32.xlu1 %v1680_v50  ;;  %5787 = vtanh.f32 %v1299_v62 }
 0x1fe   : > { %v1224_v4 = vmul.f32 %v1192_v48, %v6795_v57  ;;  %v1200_v27 = vmul.f32 %v1168_v25, %v6806_v7  ;;  %v1112_v6 = vpop.f32.mrb[20].mxu1  ;;  %v1270_v48 = vadd.f32 %v6758_v55, %v6605_v41  ;;  %v1309_v13 = vmul.f32 0.7978846, %v1277_v23 }
 0x1ff   : > { %v1231_v28 = vmul.f32 %v1199_v1, %v6802_v21  ;;  %v1255_v24 = vadd.f32 %v1223_v60, %v6786_v44  ;;  %v1114_v40 = vpop.f32.mrb[21].mxu1  ;;  %v6837_v59 = vadd.f32 %v1112_v6, %v6742_v63  ;;  %v1307_v60 = vmul.f32 0.7978846, %v1275_v36 }
 0x200   : > { %v1232_v35 = vmul.f32 %v1200_v27, %v6806_v7  ;;  %v1256_v47 = vadd.f32 %v1224_v4, %v6795_v57  ;;  %v1116_v0 = vpop.f32.mrb[22].mxu1  ;;  %v6841_v55 = vadd.f32 %v1114_v40, %v6746_v37  ;;  %v1308_v1 = vmul.f32 0.7978846, %v1276_v29 }
 0x201   : > { %v1287_v19 = vmul.f32 0.7978846, %v1255_v24  ;;  %v1263_v31 = vadd.f32 %v1231_v28, %v6802_v21  ;;  %v1118_v25 = vpop.f32.mrb[23].mxu1  ;;  %v6846_v30 = vadd.f32 %v1116_v0, %v6742_v63  ;;  %v1278_v6 = vadd.f32 %v6764_v56, %v6611_v43 }
 0x202   : > { %v1288_v53 = vmul.f32 0.7978846, %v1256_v47  ;;  %v1264_v27 = vadd.f32 %v1232_v35, %v6806_v7  ;;  %v1175_v62 = vmul.f32 0.044715, %v6837_v59  ;;  %v6852_v17 = vadd.f32 %v1118_v25, %v6746_v37 }
 0x203   : > { %5789 = vtanh.f32 %v1287_v19  ;;  %v1295_v4 = vmul.f32 0.7978846, %v1263_v31  ;;  %v1301_v28 = vmul.f32 0.7978846, %v1269_v33  ;;  %v1302_v24 = vmul.f32 0.7978846, %v1270_v48 }
 0x204   : > { %5791 = vtanh.f32 %v1288_v53  ;;  %v1296_v50 = vmul.f32 0.7978846, %v1264_v27  ;;  %v1176_v40 = vmul.f32 0.044715, %v6841_v55  ;;  %v1183_v63 = vmul.f32 0.044715, %v6846_v30 }
 0x205   : > { %5793 = vtanh.f32 %v1295_v4  ;;  %v1361_v0 = vadd.f32 1.0, %v5780_v34  ;;  %v1310_v36 = vmul.f32 0.7978846, %v1278_v6  ;;  %v5784_v35 = vpop.eup %5783  ;;  %v1207_v56 = vmul.f32 %v1175_v62, %v6837_v59 }
 0x206   : > { %5795 = vtanh.f32 %v1296_v50  ;;  %v1184_v47 = vmul.f32 0.044715, %v6852_v17  ;;  %v1137_v37 = vmul.f32 0.5, %v6576_v51  ;;  %v5786_v33 = vpop.eup %5785  ;;  %v1138_v48 = vmul.f32 0.5, %v6579_v54 }
 0x207   : > { %5797 = vtanh.f32 %v1300_v32  ;;  %v1362_v19 = vadd.f32 1.0, %v5782_v10  ;;  %v1145_v31 = vmul.f32 0.5, %v6585_v61  ;;  %v5788_v25 = vpop.eup %5787  ;;  %v1208_v34 = vmul.f32 %v1176_v40, %v6841_v55 }
 0x208   : > { %5799 = vtanh.f32 %v1307_v60  ;;  %v1146_v29 = vmul.f32 0.5, %v6588_v2  ;;  %v6864_v53 = vmul.f32 0.5, %v6602_v39  ;;  %v1215_v51 = vmul.f32 %v1183_v63, %v6846_v30 }
 0x209   : > { %5801 = vtanh.f32 %v1308_v1  ;;  %v6867_v4 = vmul.f32 %v1361_v0, %v1137_v37  ;;  %v6870_v54 = vmul.f32 0.5, %v6605_v41  ;;  %v1127_v61 = vmul.f32 0.5, %v6786_v44 }
 0x20a   : > { %5803 = vtanh.f32 %v1301_v28  ;;  %v1239_v60 = vmul.f32 %v1207_v56, %v6837_v59  ;;  %v1216_v2 = vmul.f32 %v1184_v47, %v6852_v17  ;;  %v1128_v50 = vmul.f32 0.5, %v6795_v57 }
 0x20b   : > { %5805 = vtanh.f32 %v1302_v24  ;;  %8102 = vst [vmem:[#allocation29_spill] sm:$0xff] %v6867_v4  ;;  %v6876_v1 = vmul.f32 %v1362_v19, %v1138_v48  ;;  %v1369_v6 = vadd.f32 1.0, %v5784_v35  ;;  %v1240_v41 = vmul.f32 %v1208_v34, %v6841_v55 }
 0x20c   : > { %5807 = vtanh.f32 %v1309_v13  ;;  %v1135_v24 = vmul.f32 0.5, %v6802_v21  ;;  %v1136_v63 = vmul.f32 0.5, %v6806_v7  ;;  %v1247_v57 = vmul.f32 %v1215_v51, %v6846_v30 }
 0x20d   : > { %v5790_v27 = vpop.eup %5789  ;;  %5809 = vtanh.f32 %v1310_v36  ;;  %8103 = vst [vmem:[#allocation30_spill] sm:$0xff] %v6876_v1  ;;  %v1248_v35 = vmul.f32 %v1216_v2, %v6852_v17  ;;  %v1139_v47 = vmul.f32 0.5, %v6716_v3  ;;  %v1271_v37 = vadd.f32 %v1239_v60, %v6837_v59 }
 0x20e   : > { %v5792_v10 = vpop.eup %5791  ;;  %v1351_v32 = vadd.f32 1.0, %v5790_v27  ;;  %v1426_v51 = vadd.f32 %v6876_v1, %v6867_v4  ;;  %v1140_v3 = vmul.f32 0.5, %v6729_v58  ;;  %v1147_v58 = vmul.f32 0.5, %v6733_v16 }
 0x20f   : > { %v5794_v39 = vpop.eup %5793  ;;  %v1352_v23 = vadd.f32 1.0, %v5792_v10  ;;  %v1370_v10 = vadd.f32 1.0, %v5786_v33  ;;  %v1363_v33 = vadd.f32 1.0, %v5788_v25 }
 0x210   : > { %v5796_v62 = vpop.eup %5795  ;;  %v6878_v28 = vmul.f32 %v1351_v32, %v1127_v61  ;;  %v1359_v44 = vadd.f32 1.0, %v5794_v39  ;;  %v1272_v61 = vadd.f32 %v1240_v41, %v6841_v55  ;;  %v1280_v41 = vadd.f32 %v1248_v35, %v6852_v17 }
 0x211   : > { %v5798_v40 = vpop.eup %5797  ;;  %v6882_v13 = vmul.f32 %v1352_v23, %v1128_v50  ;;  %v1360_v0 = vadd.f32 1.0, %v5796_v62  ;;  %v1279_v50 = vadd.f32 %v1247_v57, %v6846_v30  ;;  %v6910_v62 = vmul.f32 %v1369_v6, %v1145_v31 }
 0x212   : > { %8104 = vst [vmem:[#allocation31_spill] sm:$0xff] %v6878_v28  ;;  %v5800_v36 = vpop.eup %5799  ;;  %v6886_v56 = vmul.f32 %v1359_v44, %v1135_v24  ;;  %v2093_v7 = vmul.f32 %v6878_v28, %v6878_v28  ;;  %v1304_v57 = vmul.f32 0.7978846, %v1272_v61  ;;  %v6917_v16 = vmul.f32 %v1363_v33, %v1139_v47 }
 0x213   : > { %8105 = vst [vmem:[#allocation32_spill] sm:$0xff] %v6882_v13  ;;  %v5802_v48 = vpop.eup %5801  ;;  %v2057_v21 = vadd.f32 %v6882_v13, %v6878_v28  ;;  %v6893_v19 = vmul.f32 %v1360_v0, %v1136_v63  ;;  %v2094_v34 = vmul.f32 %v6882_v13, %v6882_v13  ;;  %8108 = vst [vmem:[#allocation35_spill] sm:$0xff] %v6910_v62  ;;  %v1364_v63 = vadd.f32 1.0, %v5798_v40 }
 0x214   : > { %8106 = vst [vmem:[#allocation33_spill] sm:$0xff] %v6886_v56  ;;  %v5804_v27 = vpop.eup %5803  ;;  %v2095_v2 = vmul.f32 %v6886_v56, %v6886_v56  ;;  %v1148_v0 = vmul.f32 0.5, %v6751_v46  ;;  %v1371_v28 = vadd.f32 1.0, %v5800_v36  ;;  %v1311_v13 = vmul.f32 0.7978846, %v1279_v50  ;;  %8110 = vst [vmem:[#allocation37_spill] sm:$0xff] %v6917_v16 }
 0x215   : > { %8107 = vst [vmem:[#allocation34_spill] sm:$0xff] %v6893_v19  ;;  %v5806_v32 = vpop.eup %5805  ;;  %2058 = vadd.xlane.f32.xlu0 %v2057_v21  ;;  %v2060_v60 = vadd.f32 %v6893_v19, %v6886_v56  ;;  %v2096_v39 = vmul.f32 %v6893_v19, %v6893_v19  ;;  %v2101_v44 = vadd.f32 %v2094_v34, %v2093_v7  ;;  %v1303_v21 = vmul.f32 0.7978846, %v1271_v37 }
 0x216   : > { %v5808_v23 = vpop.eup %5807  ;;  %v6915_v56 = vmul.f32 %v1370_v10, %v1146_v29  ;;  %v1372_v19 = vadd.f32 1.0, %v5802_v48  ;;  %v1365_v6 = vadd.f32 1.0, %v5804_v27  ;;  %v1366_v25 = vadd.f32 1.0, %v5806_v32 }
 0x217   : > { %v5810_v24 = vpop.eup %5809  ;;  %2061 = vadd.xlane.f32.xlu1 %v2060_v60  ;;  %v2104_v31 = vadd.f32 %v2096_v39, %v2095_v2  ;;  %v1149_v35 = vmul.f32 0.5, %v6608_v42  ;;  %v1150_v7 = vmul.f32 0.5, %v6611_v43  ;;  %v1312_v40 = vmul.f32 0.7978846, %v1280_v41 }
 0x218   : > { %8109 = vst [vmem:[#allocation36_spill] sm:$0xff] %v6915_v56  ;;  %v6921_v46 = vmul.f32 %v1364_v63, %v1140_v3  ;;  %v1373_v29 = vadd.f32 1.0, %v5808_v23  ;;  %v1374_v37 = vadd.f32 1.0, %v5810_v24  ;;  %5811 = vtanh.f32 %v1303_v21 }
 0x219   : > { %2102 = vadd.xlane.f32.xlu0 %v2101_v44  ;;  %v1429_v36 = vadd.f32 %v6915_v56, %v6910_v62  ;;  %v6925_v48 = vmul.f32 %v1371_v28, %v1147_v58  ;;  %5813 = vtanh.f32 %v1304_v57  ;;  %v6927_v47 = vmul.f32 %v1372_v19, %v1148_v0 }
 0x21a   : > { %8111 = vst [vmem:[#allocation38_spill] sm:$0xff] %v6921_v46  ;;  %v6930_v42 = vmul.f32 %v1365_v6, %v6864_v53  ;;  %v6933_v43 = vmul.f32 %v1366_v25, %v6870_v54  ;;  %5815 = vtanh.f32 %v1311_v13  ;;  %v1639_v34 = vadd.f32 %v6921_v46, %v6917_v16 }
 0x21b   : > { %2105 = vadd.xlane.f32.xlu1 %v2104_v31  ;;  %8112 = vst [vmem:[#allocation39_spill] sm:$0xff] %v6925_v48  ;;  %8113 = vst [vmem:[#allocation40_spill] sm:$0xff] %v6927_v47  ;;  %5817 = vtanh.f32 %v1312_v40  ;;  %v6937_v27 = vmul.f32 %v1373_v29, %v1149_v35  ;;  %v6939_v28 = vmul.f32 %v1374_v37, %v1150_v7  ;;  %v1143_v24 = vmul.f32 0.5, %v6837_v59 }
 0x21c   : > { %8114 = vst [vmem:[#allocation41_spill] sm:$0xff] %v6930_v42  ;;  %8115 = vst [vmem:[#allocation42_spill] sm:$0xff] %v6933_v43  ;;  %v1642_v19 = vadd.f32 %v6927_v47, %v6925_v48  ;;  %v1851_v53 = vadd.f32 %v6933_v43, %v6930_v42  ;;  %v1460_v13 = vmul.f32 %v6867_v4, %v6867_v4  ;;  %v1144_v44 = vmul.f32 0.5, %v6841_v55 }
 0x21d   : > { %1427 = vadd.xlane.f32.xlu0 %v1426_v51  ;;  %8116 = vst [vmem:[#allocation43_spill] sm:$0xff] %v6937_v27  ;;  %8117 = vst [vmem:[#allocation44_spill] sm:$0xff] %v6939_v28  ;;  %v1854_v54 = vadd.f32 %v6939_v28, %v6937_v27  ;;  %v1461_v51 = vmul.f32 %v6876_v1, %v6876_v1  ;;  %v1462_v10 = vmul.f32 %v6910_v62, %v6910_v62 }
 0x21e   : > { %v1463_v3 = vmul.f32 %v6915_v56, %v6915_v56  ;;  %v1673_v60 = vmul.f32 %v6917_v16, %v6917_v16  ;;  %v1674_v2 = vmul.f32 %v6921_v46, %v6921_v46  ;;  %v1675_v58 = vmul.f32 %v6925_v48, %v6925_v48 }
 0x21f   : > { %1430 = vadd.xlane.f32.xlu1 %v1429_v36  ;;  %v1470_v50 = vadd.f32 %v1461_v51, %v1460_v13  ;;  %v1676_v41 = vmul.f32 %v6927_v47, %v6927_v47  ;;  %v1885_v57 = vmul.f32 %v6930_v42, %v6930_v42  ;;  %v1886_v31 = vmul.f32 %v6933_v43, %v6933_v43 }
 0x220   : > { %v1473_v33 = vadd.f32 %v1463_v3, %v1462_v10  ;;  %v1683_v21 = vadd.f32 %v1674_v2, %v1673_v60  ;;  %v1151_v6 = vmul.f32 0.5, %v6846_v30  ;;  %v1152_v25 = vmul.f32 0.5, %v6852_v17  ;;  %v5549_v60 = vld [vmem:[#allocation10 + $0x104] ss:$8 sps:$4 sm:$0xff]   ;;  %v5550_v2 = vld [vmem:[#allocation10] ss:$8 sps:$4 sm:$0xff]  }
 0x221   : > { %1640 = vadd.xlane.f32.xlu0 %v1639_v34  ;;  %v1887_v59 = vmul.f32 %v6937_v27, %v6937_v27  ;;  %v1686_v55 = vadd.f32 %v1676_v41, %v1675_v58  ;;  %v1888_v40 = vmul.f32 %v6939_v28, %v6939_v28  ;;  %v1895_v36 = vadd.f32 %v1886_v31, %v1885_v57  ;;  %v5556_v58 = vld [vmem:[#allocation10 + $0x10] ss:$8 sps:$4 sm:$0xff]   ;;  %v5561_v41 = vld [vmem:[#allocation10 + $0x124] ss:$8 sps:$4 sm:$0xff]   ;;  %v5570_v57 = vld [vmem:[#allocation10 + $0x34] ss:$8 sps:$4 sm:$0xff]  }
 0x222   : > { %v5812_v61 = vpop.eup %5811  ;;  %3815 = vmatprep.subr.bf16.mxu0 %v5549_v60  ;;  %v5568_v31 = vld [vmem:[#allocation10 + $0x30] ss:$8 sps:$4 sm:$0xff]  }
 0x223   : > { %1643 = vadd.xlane.f32.xlu1 %v1642_v19  ;;  %v5814_v32 = vpop.eup %5813  ;;  %v1367_v63 = vadd.f32 1.0, %v5812_v61  ;;  %v1898_v17 = vadd.f32 %v1888_v40, %v1887_v59  ;;  %v5579_v59 = vld [vmem:[#allocation10 + $0x154] ss:$8 sps:$4 sm:$0xff]   ;;  %v5577_v40 = vld [vmem:[#allocation10 + $0x150] ss:$8 sps:$4 sm:$0xff]  }
 0x224   : > { %v5816_v39 = vpop.eup %5815  ;;  %v1368_v0 = vadd.f32 1.0, %v5814_v32  ;;  %v5547_v32 = vld [vmem:[#allocation10 + $0x100] ss:$8 sps:$4 sm:$0xff]  }
 0x225   : > { %1852 = vadd.xlane.f32.xlu0 %v1851_v53  ;;  %v5818_v23 = vpop.eup %5817  ;;  %v1375_v35 = vadd.f32 1.0, %v5816_v39  ;;  %v6975_v29 = vmul.f32 %v1367_v63, %v1143_v24  ;;  %v5552_v39 = vld [vmem:[#allocation10 + $0x4] ss:$8 sps:$4 sm:$0xff]   ;;  %3816 = vmatpush1.bf16.msra.mxu0 %v5547_v32  ;;  %v5559_v24 = vld [vmem:[#allocation10 + $0x120] ss:$8 sps:$4 sm:$0xff]  }
 0x226   : > { %v1376_v7 = vadd.f32 1.0, %v5818_v23  ;;  %v6977_v37 = vmul.f32 %v1368_v0, %v1144_v44  ;;  %v5558_v23 = vld [vmem:[#allocation10 + $0x14] ss:$8 sps:$4 sm:$0xff]   ;;  %3762 = vmatprep.subr.bf16.mxu1 %v5552_v39  ;;  %v5562_v44 = vld [vmem:[#allocation10 + $0x20] ss:$8 sps:$4 sm:$0xff]  }
 0x227   : > { %1855 = vadd.xlane.f32.xlu1 %v1854_v54  ;;  %8118 = vst [vmem:[#allocation45_spill] sm:$0xff] %v6975_v29  ;;  %v6979_v34 = vmul.f32 %v1375_v35, %v1151_v6  ;;  %v2097_v53 = vmul.f32 %v6975_v29, %v6975_v29  ;;  %3763 = vmatpush1.bf16.msra.mxu1 %v5550_v2  ;;  %v5564_v63 = vld [vmem:[#allocation10 + $0x24] ss:$8 sps:$4 sm:$0xff]   ;;  %v5567_v0 = vld [vmem:[#allocation10 + $0x134] ss:$8 sps:$4 sm:$0xff]  }
 0x228   : > { %8119 = vst [vmem:[#allocation46_spill] sm:$0xff] %v6977_v37  ;;  %v6981_v30 = vmul.f32 %v1376_v7, %v1152_v25  ;;  %v2063_v19 = vadd.f32 %v6977_v37, %v6975_v29  ;;  %v2098_v54 = vmul.f32 %v6977_v37, %v6977_v37  ;;  %3764 = vmatprep.subr.bf16.mxu1 %v5558_v23  ;;  %v5571_v6 = vld [vmem:[#allocation10 + $0x140] ss:$8 sps:$4 sm:$0xff]   ;;  %v5573_v25 = vld [vmem:[#allocation10 + $0x144] ss:$8 sps:$4 sm:$0xff]  }
 0x229   : > { %1471 = vadd.xlane.f32.xlu0 %v1470_v50  ;;  %8120 = vst [vmem:[#allocation47_spill] sm:$0xff] %v6979_v34  ;;  %v2099_v10 = vmul.f32 %v6979_v34, %v6979_v34  ;;  %v5555_v50 = vld [vmem:[#allocation10 + $0x114] ss:$8 sps:$4 sm:$0xff]   ;;  %v5574_v35 = vld [vmem:[#allocation10 + $0x40] ss:$8 sps:$4 sm:$0xff]  }
 0x22a   : > { %8121 = vst [vmem:[#allocation48_spill] sm:$0xff] %v6981_v30  ;;  %v2066_v13 = vadd.f32 %v6981_v30, %v6979_v34  ;;  %v2107_v51 = vadd.f32 %v2098_v54, %v2097_v53  ;;  %v2100_v3 = vmul.f32 %v6981_v30, %v6981_v30  ;;  %3817 = vmatprep.subr.bf16.mxu0 %v5555_v50  ;;  %v5576_v7 = vld [vmem:[#allocation10 + $0x44] ss:$8 sps:$4 sm:$0xff]   ;;  %v5583_v53 = vld [vmem:[#allocation10 + $0x160] ss:$8 sps:$4 sm:$0xff]  }
 0x22b   : > { %1474 = vadd.xlane.f32.xlu1 %v1473_v33  ;;  %v5553_v33 = vld [vmem:[#allocation10 + $0x110] ss:$8 sps:$4 sm:$0xff]   ;;  %3765 = vmatpush1.bf16.msra.mxu1 %v5556_v58  ;;  %v5586_v54 = vld [vmem:[#allocation10 + $0x60] ss:$8 sps:$4 sm:$0xff]   ;;  %v5600_v39 = vld [vmem:[#allocation10 + $0x84] ss:$8 sps:$4 sm:$0xff]  }
 0x22c   : > { %v2110_v61 = vadd.f32 %v2100_v3, %v2099_v10  ;;  %3818 = vmatpush1.bf16.msra.mxu0 %v5553_v33  ;;  %3766 = vmatprep.subr.bf16.mxu1 %v5564_v63  ;;  %v5594_v10 = vld [vmem:[#allocation10 + $0x74] ss:$8 sps:$4 sm:$0xff]   ;;  %v5592_v3 = vld [vmem:[#allocation10 + $0x70] ss:$8 sps:$4 sm:$0xff]   ;;  %v5595_v2 = vld [vmem:[#allocation10 + $0x180] ss:$8 sps:$4 sm:$0xff]  }
 0x22d   : > { %1684 = vadd.xlane.f32.xlu0 %v1683_v21  ;;  %3819 = vmatprep.subr.bf16.mxu0 %v5561_v41  ;;  %v5565_v21 = vld [vmem:[#allocation10 + $0x130] ss:$8 sps:$4 sm:$0xff]   ;;  %v5598_v23 = vld [vmem:[#allocation10 + $0x80] ss:$8 sps:$4 sm:$0xff]   ;;  %v5603_v41 = vld [vmem:[#allocation10 + $0x194] ss:$8 sps:$4 sm:$0xff]  }
 0x22e   : > { %v5606_v63 = vld [vmem:[#allocation10 + $0x94] ss:$8 sps:$4 sm:$0xff]  }
 0x22f   : > { %1687 = vadd.xlane.f32.xlu1 %v1686_v55  ;;  %3767 = vmatpush1.bf16.msra.mxu1 %v5562_v44  ;;  %v5582_v55 = vld [vmem:[#allocation10 + $0x54] ss:$8 sps:$4 sm:$0xff]   ;;  %v5601_v44 = vld [vmem:[#allocation10 + $0x190] ss:$8 sps:$4 sm:$0xff]  }
 0x230   : > { %3820 = vmatpush1.bf16.msra.mxu0 %v5559_v24  ;;  %3768 = vmatprep.subr.bf16.mxu1 %v5570_v57 }
 0x231   : > { %1896 = vadd.xlane.f32.xlu0 %v1895_v36  ;;  %3821 = vmatprep.subr.bf16.mxu0 %v5567_v0  ;;  %v5580_v36 = vld [vmem:[#allocation10 + $0x50] ss:$8 sps:$4 sm:$0xff]  }
 0x233   : > { %1899 = vadd.xlane.f32.xlu1 %v1898_v17  ;;  %3769 = vmatpush1.bf16.msra.mxu1 %v5568_v31  ;;  %v5585_v17 = vld [vmem:[#allocation10 + $0x164] ss:$8 sps:$4 sm:$0xff]   ;;  %v5604_v31 = vld [vmem:[#allocation10 + $0x90] ss:$8 sps:$4 sm:$0xff]  }
 0x234   : > { %3822 = vmatpush1.bf16.msra.mxu0 %v5565_v21  ;;  %3770 = vmatprep.subr.bf16.mxu1 %v5576_v7 }
 0x235   : > { %2064 = vadd.xlane.f32.xlu0 %v2063_v19  ;;  %3823 = vmatprep.subr.bf16.mxu0 %v5573_v25  ;;  %v5588_v19 = vld [vmem:[#allocation10 + $0x64] ss:$8 sps:$4 sm:$0xff]  }
 0x237   : > { %2067 = vadd.xlane.f32.xlu1 %v2066_v13  ;;  %3771 = vmatpush1.bf16.msra.mxu1 %v5574_v35  ;;  %v5591_v13 = vld [vmem:[#allocation10 + $0x174] ss:$8 sps:$4 sm:$0xff]   ;;  %v5609_v35 = vld [vmem:[#allocation10 + $0x1a4] ss:$8 sps:$4 sm:$0xff]  }
 0x238   : > { %3824 = vmatpush1.bf16.msra.mxu0 %v5571_v6  ;;  %3772 = vmatprep.subr.bf16.mxu1 %v5582_v55  ;;  %v5612_v55 = vld [vmem:[#allocation10 + $0xa4] ss:$8 sps:$4 sm:$0xff]  }
 0x239   : > { %2108 = vadd.xlane.f32.xlu0 %v2107_v51  ;;  %3825 = vmatprep.subr.bf16.mxu0 %v5579_v59  ;;  %v5589_v51 = vld [vmem:[#allocation10 + $0x170] ss:$8 sps:$4 sm:$0xff]   ;;  %v5607_v59 = vld [vmem:[#allocation10 + $0x1a0] ss:$8 sps:$4 sm:$0xff]  }
 0x23b   : > { %2111 = vadd.xlane.f32.xlu1 %v2110_v61  ;;  %3773 = vmatpush1.bf16.msra.mxu1 %v5580_v36  ;;  %v5597_v61 = vld [vmem:[#allocation10 + $0x184] ss:$8 sps:$4 sm:$0xff]  }
 0x23c   : > { %3826 = vmatpush1.bf16.msra.mxu0 %v5577_v40  ;;  %3774 = vmatprep.subr.bf16.mxu1 %v5588_v19 }
 0x23d   : > { %3827 = vmatprep.subr.bf16.mxu0 %v5585_v17 }
 0x23f   : > { %3775 = vmatpush1.bf16.msra.mxu1 %v5586_v54 }
 0x240   : > { %3828 = vmatpush1.bf16.msra.mxu0 %v5583_v53  ;;  %3776 = vmatprep.subr.bf16.mxu1 %v5594_v10  ;;  %v5610_v53 = vld [vmem:[#allocation10 + $0xa0] ss:$8 sps:$4 sm:$0xff]  }
 0x241   : > { %3829 = vmatprep.subr.bf16.mxu0 %v5591_v13 }
 0x243   : > { %3777 = vmatpush1.bf16.msra.mxu1 %v5592_v3  ;;  %v5615_v3 = vld [vmem:[#allocation10 + $0x1b4] ss:$8 sps:$4 sm:$0xff]  }
 0x244   : > { %3830 = vmatpush1.bf16.msra.mxu0 %v5589_v51  ;;  %3778 = vmatprep.subr.bf16.mxu1 %v5600_v39 }
 0x245   : > { %3831 = vmatprep.subr.bf16.mxu0 %v5597_v61 }
 0x247   : > { %3779 = vmatpush1.bf16.msra.mxu1 %v5598_v23 }
 0x248   : > { %3832 = vmatpush1.bf16.msra.mxu0 %v5595_v2  ;;  %3780 = vmatprep.subr.bf16.mxu1 %v5606_v63  ;;  %v5618_v2 = vld [vmem:[#allocation10 + $0xb4] ss:$8 sps:$4 sm:$0xff]  }
 0x249   : > { %3833 = vmatprep.subr.bf16.mxu0 %v5603_v41 }
 0x24b   : > { %3781 = vmatpush1.bf16.msra.mxu1 %v5604_v31 }
 0x24c   : > { %3834 = vmatpush1.bf16.msra.mxu0 %v5601_v44  ;;  %3782 = vmatprep.subr.bf16.mxu1 %v5612_v55 }
 0x24d   : > { %3835 = vmatprep.subr.bf16.mxu0 %v5609_v35 }
 0x24f   : > { %3783 = vmatpush1.bf16.msra.mxu1 %v5610_v53  ;;  %v5622_v53 = vld [vmem:[#allocation10 + $0xc0] ss:$8 sps:$4 sm:$0xff]  }
 0x250   : > { %3836 = vmatpush1.bf16.msra.mxu0 %v5607_v59  ;;  %3784 = vmatprep.subr.bf16.mxu1 %v5618_v2  ;;  %v5624_v59 = vld [vmem:[#allocation10 + $0xc4] ss:$8 sps:$4 sm:$0xff]  }
 0x251   : > { %3837 = vmatprep.subr.bf16.mxu0 %v5615_v3 }
 0x262   : > { %v1422_v32 = vpop.xlane.xlu0 %1421 }
 0x263   : > { %v1432_v60 = vrot.slane %v1422_v32, 4 }
 0x264   : > { %v1850_v33 = vpop.xlane.xlu1 %1849 }
 0x265   : > { %v1433_v50 = vadd.f32 %v1432_v60, %v1422_v32  ;;  %v1863_v58 = vrot.slane %v1850_v33, 4  ;;  %v5613_v60 = vld [vmem:[#allocation10 + $0x1b0] ss:$8 sps:$4 sm:$0xff]  }
 0x266   : > { %v1847_v24 = vpop.xlane.xlu0 %1846  ;;  %3838 = vmatpush1.bf16.msra.mxu0 %v5613_v60 }
 0x267   : > { %v1434_v0 = vrot.slane %v1433_v50, 2  ;;  %v1864_v21 = vadd.f32 %v1863_v58, %v1850_v33  ;;  %v1857_v57 = vrot.slane %v1847_v24, 4  ;;  %v5616_v58 = vld [vmem:[#allocation10 + $0xb0] ss:$8 sps:$4 sm:$0xff]  }
 0x268   : > { %3785 = vmatpush1.bf16.msra.mxu1 %v5616_v58  ;;  %v5633_v58 = vld [vmem:[#allocation10 + $0x1e4] ss:$8 sps:$4 sm:$0xff]  }
 0x269   : > { %v1865_v6 = vrot.slane %v1864_v21, 2  ;;  %v1858_v25 = vadd.f32 %v1857_v57, %v1847_v24  ;;  %v1435_v40 = vadd.f32 %v1434_v0, %v1433_v50  ;;  %v5621_v57 = vld [vmem:[#allocation10 + $0x1c4] ss:$8 sps:$4 sm:$0xff]   ;;  %3786 = vmatprep.subr.bf16.mxu1 %v5624_v59 }
 0x26a   : > { %v1425_v7 = vpop.xlane.xlu0 %1424  ;;  %v1469_v17 = vpop.xlane.xlu1 %1468  ;;  %3839 = vmatprep.subr.bf16.mxu0 %v5621_v57 }
 0x26b   : > { %v1866_v36 = vadd.f32 %v1865_v6, %v1864_v21  ;;  %v1438_v19 = vrot.slane %v1425_v7, 4  ;;  %v1859_v54 = vrot.slane %v1858_v25, 2  ;;  %v1482_v13 = vrot.slane %v1469_v17, 4 }
 0x26c   : > { %v1436_v39 = vrot.slane %v1435_v40, 1  ;;  %3787 = vmatpush1.bf16.msra.mxu1 %v5622_v53 }
 0x26d   : > { %v1867_v51 = vrot.slane %v1866_v36, 1  ;;  %v1439_v10 = vadd.f32 %v1438_v19, %v1425_v7  ;;  %v1483_v61 = vadd.f32 %v1482_v13, %v1469_v17  ;;  %v1860_v41 = vadd.f32 %v1859_v54, %v1858_v25  ;;  %v5619_v7 = vld [vmem:[#allocation10 + $0x1c0] ss:$8 sps:$4 sm:$0xff]  }
 0x26e   : > { %v1466_v32 = vpop.xlane.xlu0 %1465  ;;  %v1894_v50 = vpop.xlane.xlu1 %1893  ;;  %v1437_v55 = vadd.f32 %v1436_v39, %v1435_v40  ;;  %3840 = vmatpush1.bf16.msra.mxu0 %v5619_v7  ;;  %v5625_v40 = vld [vmem:[#allocation10 + $0x1d0] ss:$8 sps:$4 sm:$0xff]   ;;  %v5639_v7 = vld [vmem:[#allocation10 + $0x1f4] ss:$8 sps:$4 sm:$0xff]  }
 0x26f   : > { %v1440_v23 = vrot.slane %v1439_v10, 2  ;;  %v1476_v33 = vrot.slane %v1466_v32, 4  ;;  %v1484_v24 = vrot.slane %v1483_v61, 2  ;;  %v1907_v44 = vrot.slane %v1894_v50, 4  ;;  %v5628_v39 = vld [vmem:[#allocation10 + $0xd0] ss:$8 sps:$4 sm:$0xff]  }
 0x270   : > { %v1868_v63 = vadd.f32 %v1867_v51, %v1866_v36  ;;  %v1861_v25 = vrot.slane %v1860_v41, 1 }
 0x271   : > { %v1441_v0 = vadd.f32 %v1440_v23, %v1439_v10  ;;  %v1477_v21 = vadd.f32 %v1476_v33, %v1466_v32  ;;  %v1485_v31 = vadd.f32 %v1484_v24, %v1483_v61  ;;  %v1908_v6 = vadd.f32 %v1907_v44, %v1894_v50  ;;  %v5627_v61 = vld [vmem:[#allocation10 + $0x1d4] ss:$8 sps:$4 sm:$0xff]  }
 0x272   : > { %v1891_v35 = vpop.xlane.xlu0 %1890  ;;  %v6995_v36 = vmul.f32 0.00048828125, %v1868_v63  ;;  %v5630_v23 = vld [vmem:[#allocation10 + $0xd4] ss:$8 sps:$4 sm:$0xff]   ;;  %3841 = vmatprep.subr.bf16.mxu0 %v5627_v61  ;;  %v6999_v24 = vmul.f32 0.00048828125, %v1437_v55  ;;  %v1862_v44 = vadd.f32 %v1861_v25, %v1860_v41  ;;  %v5640_v61 = vld [vmem:[#allocation10 + $0xf0] ss:$8 sps:$4 sm:$0xff]  }
 0x273   : > { %v1442_v17 = vrot.slane %v1441_v0, 1  ;;  %v1478_v19 = vrot.slane %v1477_v21, 2  ;;  %v1486_v54 = vrot.slane %v1485_v31, 1  ;;  %v1909_v13 = vrot.slane %v1908_v6, 2  ;;  %3788 = vmatprep.subr.bf16.mxu1 %v5630_v23  ;;  %3842 = vmatpush1.bf16.msra.mxu0 %v5625_v40 }
 0x274   : > { %v1901_v3 = vrot.slane %v1891_v35, 4  ;;  %3789 = vmatpush1.bf16.msra.mxu1 %v5628_v39  ;;  %3843 = vmatprep.subr.bf16.mxu0 %v5633_v58  ;;  %v1934_v55 = vmul.f32 %v6995_v36, %v6995_v36  ;;  %v7005_v25 = vmul.f32 0.00048828125, %v1862_v44 }
 0x275   : > { %v1443_v51 = vadd.f32 %v1442_v17, %v1441_v0  ;;  %v1479_v10 = vadd.f32 %v1478_v19, %v1477_v21  ;;  %v1487_v32 = vadd.f32 %v1486_v54, %v1485_v31  ;;  %v1910_v60 = vadd.f32 %v1909_v13, %v1908_v6  ;;  %v5631_v0 = vld [vmem:[#allocation10 + $0x1e0] ss:$8 sps:$4 sm:$0xff]   ;;  %v5642_v19 = vld [vmem:[#allocation10 + $0xf4] ss:$8 sps:$4 sm:$0xff]  }
 0x276   : > { %v1902_v2 = vadd.f32 %v1901_v3, %v1891_v35  ;;  %v5634_v6 = vld [vmem:[#allocation10 + $0xe0] ss:$8 sps:$4 sm:$0xff]   ;;  %v5636_v35 = vld [vmem:[#allocation10 + $0xe4] ss:$8 sps:$4 sm:$0xff]   ;;  %v1933_v23 = vmul.f32 %v7005_v25, %v7005_v25 }
 0x277   : > { %v6997_v50 = vmul.f32 0.00048828125, %v1443_v51  ;;  %v1480_v33 = vrot.slane %v1479_v10, 1  ;;  %v1911_v63 = vrot.slane %v1910_v60, 1  ;;  %v1506_v59 = vmul.f32 0.00048828125, %v1487_v32  ;;  %3790 = vmatprep.subr.bf16.mxu1 %v5636_v35  ;;  %3844 = vmatpush1.bf16.msra.mxu0 %v5631_v0  ;;  %v5637_v51 = vld [vmem:[#allocation10 + $0x1f0] ss:$8 sps:$4 sm:$0xff]  }
 0x278   : > { %v1903_v57 = vrot.slane %v1902_v2, 2  ;;  %3791 = vmatpush1.bf16.msra.mxu1 %v5634_v6  ;;  %3845 = vmatprep.subr.bf16.mxu0 %v5639_v7  ;;  %v5645_v32 = vld [vmem:[#allocation10 + $0x204] ss:$8 sps:$4 sm:$0xff]  }
 0x279   : > { %v1510_v21 = vmul.f32 %v6997_v50, %v6997_v50  ;;  %v1481_v31 = vadd.f32 %v1480_v33, %v1479_v10  ;;  %v1912_v17 = vadd.f32 %v1911_v63, %v1910_v60  ;;  %v1509_v10 = vmul.f32 %v6999_v24, %v6999_v24  ;;  %3792 = vmatprep.subr.bf16.mxu1 %v5642_v19 }
 0x27a   : > { %v1904_v41 = vadd.f32 %v1903_v57, %v1902_v2 }
 0x27b   : > { %v1505_v53 = vmul.f32 0.00048828125, %v1481_v31  ;;  %v1514_v54 = vsub.f32 %v1506_v59, %v1510_v21  ;;  %v1930_v13 = vmul.f32 0.00048828125, %v1912_v17  ;;  %3846 = vmatpush1.bf16.msra.mxu0 %v5637_v51 }
 0x27c   : > { %v1905_v3 = vrot.slane %v1904_v41, 1  ;;  %3793 = vmatpush1.bf16.msra.mxu1 %v5640_v61  ;;  %3868 = vmatprep.subr.bf16.mxu0 %v5645_v32 }
 0x27d   : > { %v1938_v40 = vsub.f32 %v1930_v13, %v1934_v55  ;;  %v1513_v2 = vsub.f32 %v1505_v53, %v1509_v10  ;;  %v1518_v39 = vmax.f32 %v1514_v54, 0.0 }
 0x27e   : > { %v1906_v60 = vadd.f32 %v1905_v3, %v1904_v41 }
 0x27f   : > { %v1942_v58 = vmax.f32 %v1938_v40, 0.0  ;;  %v1517_v0 = vmax.f32 %v1513_v2, 0.0  ;;  %v1522_v31 = vadd.f32 1e-05, %v1518_v39 }
 0x280   : > { %v1929_v33 = vmul.f32 0.00048828125, %v1906_v60 }
 0x281   : > { %v1946_v7 = vadd.f32 1e-05, %v1942_v58  ;;  %v1521_v53 = vadd.f32 1e-05, %v1517_v0  ;;  %5819 = vrsqrt.f32 %v1522_v31 }
 0x282   : > { %v1635_v44 = vpop.xlane.xlu1 %1634  ;;  %v1937_v63 = vsub.f32 %v1929_v33, %v1933_v23 }
 0x283   : > { %v1645_v57 = vrot.slane %v1635_v44, 4  ;;  %5821 = vrsqrt.f32 %v1946_v7 }
 0x284   : > { %v1679_v21 = vpop.xlane.xlu0 %1678  ;;  %v1941_v59 = vmax.f32 %v1937_v63, 0.0  ;;  %5823 = vrsqrt.f32 %v1521_v53 }
 0x285   : > { %v1646_v6 = vadd.f32 %v1645_v57, %v1635_v44  ;;  %v1689_v35 = vrot.slane %v1679_v21, 4  ;;  %v1409_v44 = vld [vmem:[%s8005_s3] sm:$0xff] }
 0x286   : > { %v1638_v55 = vpop.xlane.xlu1 %1637  ;;  %v1945_v51 = vadd.f32 1e-05, %v1941_v59  ;;  %v7019_v7 = vrot.slane %v1409_v44, %v6516_v12  ;;  %v7075_v27 = vrot.slane %v1409_v44, %v6618_v49  ;;  %v7081_v29 = vrot.slane %v1409_v44, %v6719_v5 }
 0x287   : > { %v1647_v17 = vrot.slane %v1646_v6, 2  ;;  %v1690_v41 = vadd.f32 %v1689_v35, %v1679_v21  ;;  %v1651_v19 = vrot.slane %v1638_v55, 4 }
 0x288   : > { %5825 = vrsqrt.f32 %v1945_v51  ;;  %8122 = vst [vmem:[#allocation49_spill] sm:$0xff] %v7019_v7  ;;  %v6162_v51 = vmov 1966171168   ;;  %8128 = vst [vmem:[#allocation55_spill] sm:$0xff] %v7081_v29 }
 0x289   : > { %v1648_v54 = vadd.f32 %v1647_v17, %v1646_v6  ;;  %v1691_v13 = vrot.slane %v1690_v41, 2  ;;  %v1652_v3 = vadd.f32 %v1651_v19, %v1638_v55  ;;  %v7022_v17 = vrot.slane %v1409_v44, %v6521_v14 }
 0x28a   : > { %v1682_v10 = vpop.xlane.xlu1 %1681  ;;  %v7028_v19 = vrot.slane %v1409_v44, %v6529_v9 }
 0x28b   : > { %v1649_v61 = vrot.slane %v1648_v54, 1  ;;  %v1692_v32 = vadd.f32 %v1691_v13, %v1690_v41  ;;  %v1653_v40 = vrot.slane %v1652_v3, 2  ;;  %v1695_v60 = vrot.slane %v1682_v10, 4  ;;  %v5820_v35 = vpop.eup %5819  ;;  %8123 = vst [vmem:[#allocation50_spill] sm:$0xff] %v7022_v17 }
 0x28c   : > { %v7025_v41 = vrot.slane %v1409_v44, %v6524_v15 }
 0x28d   : > { %v1650_v2 = vadd.f32 %v1649_v61, %v1648_v54  ;;  %v1693_v39 = vrot.slane %v1692_v32, 1  ;;  %v1654_v23 = vadd.f32 %v1653_v40, %v1652_v3  ;;  %v1696_v33 = vadd.f32 %v1695_v60, %v1682_v10  ;;  %v5822_v55 = vpop.eup %5821 }
 0x28e   : > { %v5824_v3 = vpop.eup %5823  ;;  %v2411_v10 = vunpack.c.l.s4 %v6162_v51 }
 0x28f   : > { %v7011_v58 = vmul.f32 0.00048828125, %v1650_v2  ;;  %v1694_v63 = vadd.f32 %v1693_v39, %v1692_v32  ;;  %v1655_v57 = vrot.slane %v1654_v23, 1  ;;  %v1697_v21 = vrot.slane %v1696_v33, 2 }
 0x290   : > { %v7033_v32 = vmul.f32 %v5820_v35, %v7019_v7  ;;  %v2319_v2 = vmul.f32 %v5820_v35, %v7022_v17  ;;  %v7037_v39 = vmul.f32 %v5822_v55, %v7025_v41 }
 0x291   : > { %v1721_v0 = vmul.f32 %v7011_v58, %v7011_v58  ;;  %v1717_v31 = vmul.f32 0.00048828125, %v1694_v63  ;;  %v1656_v6 = vadd.f32 %v1655_v57, %v1654_v23  ;;  %v1698_v59 = vadd.f32 %v1697_v21, %v1696_v33 }
 0x292   : > { %v5826_v60 = vpop.eup %5825  ;;  %8124 = vst [vmem:[#allocation51_spill] sm:$0xff] %v7037_v39  ;;  %v7040_v23 = vmul.f32 %v5822_v55, %v7028_v19  ;;  %v2311_v21 = vmul.f32 %v5824_v3, %v7022_v17  ;;  %v2350_v55 = vmul.f32 %v7033_v32, %v6997_v50  ;;  %v2645_v34 = vrot.slane %v7033_v32, %v6516_v12 }
 0x293   : > { %v1725_v53 = vsub.f32 %v1717_v31, %v1721_v0  ;;  %v7030_v54 = vmul.f32 0.00048828125, %v1656_v6  ;;  %v1699_v13 = vrot.slane %v1698_v59, 1  ;;  %v7045_v0 = vmul.f32 %v5824_v3, %v7019_v7 }
 0x294   : > { %8125 = vst [vmem:[#allocation52_spill] sm:$0xff] %v7040_v23  ;;  %v2412_v31 = vunpack.c.0.s8 %v2411_v10  ;;  %v7049_v6 = vmul.f32 %v5826_v60, %v7025_v41  ;;  %v7052_v35 = vmul.f32 %v5826_v60, %v7028_v19  ;;  %v2355_v3 = vmul.f32 %v7040_v23, %v6995_v36 }
 0x295   : > { %v1729_v61 = vmax.f32 %v1725_v53, 0.0  ;;  %v1700_v40 = vadd.f32 %v1699_v13, %v1698_v59  ;;  %v1722_v63 = vmul.f32 %v7030_v54, %v7030_v54  ;;  %v2351_v53 = vmul.f32 %v2319_v2, %v6997_v50 }
 0x296   : > { %8126 = vst [vmem:[#allocation53_spill] sm:$0xff] %v7049_v6  ;;  %8127 = vst [vmem:[#allocation54_spill] sm:$0xff] %v7052_v35  ;;  %v2354_v13 = vmul.f32 %v7037_v39, %v6995_v36  ;;  %v2342_v10 = vmul.f32 %v7045_v0, %v6999_v24  ;;  %v7068_v60 = vrot.slane %v1409_v44, %v6614_v45 }
 0x297   : > { %v1733_v33 = vadd.f32 1e-05, %v1729_v61  ;;  %v1718_v57 = vmul.f32 0.00048828125, %v1700_v40  ;;  %v2343_v61 = vmul.f32 %v2311_v21, %v6999_v24  ;;  %v7065_v40 = vsub.s32 %v2412_v31, %v6513_v11 }
 0x298   : > { %v2346_v50 = vmul.f32 %v7049_v6, %v7005_v25  ;;  %v2457_v42 = vcombine.low %v2354_v13, %v2355_v3  ;;  %v2617_v11 = vrot.slane %v2311_v21, %v6516_v12 }
 0x299   : > { %5827 = vrsqrt.f32 %v1733_v33  ;;  %v1726_v59 = vsub.f32 %v1718_v57, %v1722_v63  ;;  %v2347_v63 = vmul.f32 %v7052_v35, %v7005_v25  ;;  %v2406_v28 = vcombine.low %v2342_v10, %v2343_v61 }
 0x29a   : > { %v7084_v25 = vrot.slane %v1409_v44, %v6724_v8  ;;  %v7091_v10 = vrot.slane %v2457_v42, %v7065_v40  ;;  %v7094_v61 = vmul.f32 %v2617_v11, %v6623_v22  ;;  %v2613_v44 = vrot.slane %v7045_v0, %v6516_v12 }
 0x29b   : > { %v1730_v51 = vmax.f32 %v1726_v59, 0.0  ;;  %v2455_v59 = vcombine.low %v2350_v55, %v2351_v53  ;;  %v2649_v53 = vrot.slane %v2319_v2, %v6516_v12  ;;  %v2408_v13 = vcombine.low %v2346_v50, %v2347_v63 }
 0x29c   : > { %v7102_v63 = vrot.slane %v2406_v28, %v7065_v40 }
 0x29d   : > { %v1734_v36 = vadd.f32 1e-05, %v1730_v51  ;;  %v7108_v22 = vmul.f32 %v2649_v53, %v6674_v18  ;;  %v7111_v11 = vrot.slane %v2408_v13, %v7065_v40 }
 0x29f   : > { %5829 = vrsqrt.f32 %v1734_v36 }
 0x2a2   : > { %v2059_v33 = vpop.xlane.xlu0 %2058 }
 0x2a3   : > { %v2069_v57 = vrot.slane %v2059_v33, 4  ;;  %v5828_v36 = vpop.eup %5827 }
 0x2a4   : > { %v2062_v24 = vpop.xlane.xlu1 %2061  ;;  %v7099_v2 = vmul.f32 %v5828_v36, %v7068_v60 }
 0x2a5   : > { %v2070_v31 = vadd.f32 %v2069_v57, %v2059_v33  ;;  %v2075_v43 = vrot.slane %v2062_v24, 4  ;;  %v7088_v33 = vrot.slane %v2455_v59, %v7065_v40  ;;  %v7105_v57 = vmul.f32 %v5828_v36, %v7075_v27 }
 0x2a6   : > { %v2103_v55 = vpop.xlane.xlu0 %2102  ;;  %v7117_v36 = vmul.f32 %v2613_v44, %v6621_v52 }
 0x2a7   : > { %v2071_v3 = vrot.slane %v2070_v31, 2  ;;  %v2076_v51 = vadd.f32 %v2075_v43, %v2062_v24  ;;  %v2113_v21 = vrot.slane %v2103_v55, 4 }
 0x2a8   : > { %v2106_v32 = vpop.xlane.xlu1 %2105 }
 0x2a9   : > { %v2072_v50 = vadd.f32 %v2071_v3, %v2070_v31  ;;  %v2077_v43 = vrot.slane %v2076_v51, 2  ;;  %v2114_v42 = vadd.f32 %v2113_v21, %v2103_v55  ;;  %v2119_v59 = vrot.slane %v2106_v32, 4 }
 0x2aa   : > { %v1428_v24 = vpop.xlane.xlu0 %1427  ;;  %v7114_v31 = vmul.f32 %v2645_v34, %v6667_v38  ;;  %v7121_v55 = vmul.f32 %v7099_v2, %v7011_v58 }
 0x2ab   : > { %v2073_v0 = vrot.slane %v2072_v50, 1  ;;  %v2078_v30 = vadd.f32 %v2077_v43, %v2076_v51  ;;  %v2115_v3 = vrot.slane %v2114_v42, 2  ;;  %v2120_v28 = vadd.f32 %v2119_v59, %v2106_v32  ;;  %v5830_v43 = vpop.eup %5829 }
 0x2ac   : > { %v1444_v37 = vrot.slane %v1428_v24, 4  ;;  %v1431_v48 = vpop.xlane.xlu1 %1430  ;;  %v7125_v51 = vmul.f32 %v7105_v57, %v7011_v58  ;;  %v7130_v5 = vmul.f32 %v5830_v43, %v7068_v60 }
 0x2ad   : > { %v2074_v18 = vadd.f32 %v2073_v0, %v2072_v50  ;;  %v2079_v53 = vrot.slane %v2078_v30, 1  ;;  %v1450_v13 = vrot.slane %v1431_v48, 4  ;;  %v2116_v38 = vadd.f32 %v2115_v3, %v2114_v42 }
 0x2ae   : > { %v2121_v34 = vrot.slane %v2120_v28, 2  ;;  %v1445_v21 = vadd.f32 %v1444_v37, %v1428_v24  ;;  %v1641_v32 = vpop.xlane.xlu0 %1640  ;;  %v7133_v50 = vmul.f32 %v5830_v43, %v7075_v27 }
 0x2af   : > { %v7127_v59 = vmul.f32 0.00048828125, %v2074_v18  ;;  %v2080_v52 = vadd.f32 %v2079_v53, %v2078_v30  ;;  %v1451_v44 = vadd.f32 %v1450_v13, %v1431_v48  ;;  %v1657_v16 = vrot.slane %v1641_v32, 4 }
 0x2b0   : > { %v2117_v0 = vrot.slane %v2116_v38, 1  ;;  %v2122_v8 = vadd.f32 %v2121_v34, %v2120_v28  ;;  %v1644_v58 = vpop.xlane.xlu1 %1643  ;;  %v1446_v42 = vrot.slane %v1445_v21, 2  ;;  %v2352_v48 = vmul.f32 %v7130_v5, %v7030_v54 }
 0x2b1   : > { %v7135_v62 = vmul.f32 0.00048828125, %v2080_v52  ;;  %v2145_v37 = vmul.f32 %v7127_v59, %v7127_v59  ;;  %v1452_v24 = vrot.slane %v1451_v44, 2  ;;  %v2353_v30 = vmul.f32 %v7133_v50, %v7030_v54 }
 0x2b2   : > { %v2118_v3 = vadd.f32 %v2117_v0, %v2116_v38  ;;  %v2123_v18 = vrot.slane %v2122_v8, 1  ;;  %v1853_v53 = vpop.xlane.xlu0 %1852  ;;  %v1447_v13 = vadd.f32 %v1446_v42, %v1445_v21  ;;  %v1658_v43 = vadd.f32 %v1657_v16, %v1641_v32 }
 0x2b3   : > { %v2146_v28 = vmul.f32 %v7135_v62, %v7135_v62  ;;  %v1453_v34 = vadd.f32 %v1452_v24, %v1451_v44  ;;  %v2456_v52 = vcombine.low %v2352_v48, %v2353_v30  ;;  %v1663_v47 = vrot.slane %v1644_v58, 4 }
 0x2b4   : > { %v2141_v9 = vmul.f32 0.00048828125, %v2118_v3  ;;  %v2124_v4 = vadd.f32 %v2123_v18, %v2122_v8  ;;  %v1856_v46 = vpop.xlane.xlu1 %1855  ;;  %v1448_v15 = vrot.slane %v1447_v13, 1  ;;  %v1659_v1 = vrot.slane %v1658_v43, 2 }
 0x2b5   : > { %v1454_v56 = vrot.slane %v1453_v34, 1  ;;  %v1869_v35 = vrot.slane %v1853_v53, 4  ;;  %v2472_v54 = vrot.slane %v2456_v52, %v7065_v40  ;;  %v1664_v39 = vadd.f32 %v1663_v47, %v1644_v58 }
 0x2b6   : > { %v2149_v38 = vsub.f32 %v2141_v9, %v2145_v37  ;;  %v2142_v0 = vmul.f32 0.00048828125, %v2124_v4  ;;  %v1472_v6 = vpop.xlane.xlu0 %1471  ;;  %v1449_v23 = vadd.f32 %v1448_v15, %v1447_v13  ;;  %v1660_v21 = vadd.f32 %v1659_v1, %v1658_v43 }
 0x2b7   : > { %v1455_v17 = vadd.f32 %v1454_v56, %v1453_v34  ;;  %v1870_v44 = vadd.f32 %v1869_v35, %v1853_v53  ;;  %v1665_v42 = vrot.slane %v1664_v39, 2  ;;  %v2487_v48 = vcombine.low %v7088_v33, %v2472_v54 }
 0x2b8   : > { %v2153_v16 = vmax.f32 %v2149_v38, 0.0  ;;  %v2150_v32 = vsub.f32 %v2142_v0, %v2146_v28  ;;  %v1475_v8 = vpop.xlane.xlu1 %1474  ;;  %v1661_v30 = vrot.slane %v1660_v21, 1  ;;  %v7151_v15 = vmul.f32 0.00048828125, %v1449_v23 }
 0x2b9   : > { %v1871_v3 = vrot.slane %v1870_v44, 2  ;;  %v1666_v1 = vadd.f32 %v1665_v42, %v1664_v39  ;;  %v7153_v35 = vmul.f32 0.00048828125, %v1455_v17  ;;  %v1875_v18 = vrot.slane %v1856_v46, 4 }
 0x2ba   : > { %v2157_v4 = vadd.f32 1e-05, %v2153_v16  ;;  %v2154_v47 = vmax.f32 %v2150_v32, 0.0  ;;  %8129 = vst [vmem:[#allocation56_spill] sm:$0xff] %v7151_v15  ;;  %v1685_v56 = vpop.xlane.xlu0 %1684  ;;  %v1662_v58 = vadd.f32 %v1661_v30, %v1660_v21  ;;  %v1488_v33 = vrot.slane %v1472_v6, 4 }
 0x2bb   : > { %8130 = vst [vmem:[#allocation57_spill] sm:$0xff] %v7153_v35  ;;  %v1872_v37 = vadd.f32 %v1871_v3, %v1870_v44  ;;  %v1667_v28 = vrot.slane %v1666_v1, 1  ;;  %v7156_v34 = vrot.slane %v2487_v48, %v7065_v40  ;;  %v1876_v23 = vadd.f32 %v1875_v18, %v1856_v46 }
 0x2bc   : > { %5831 = vrsqrt.f32 %v2157_v4  ;;  %v2158_v53 = vadd.f32 1e-05, %v2154_v47  ;;  %v1688_v13 = vpop.xlane.xlu1 %1687  ;;  %v7158_v43 = vmul.f32 0.00048828125, %v1662_v58  ;;  %v1489_v54 = vadd.f32 %v1488_v33, %v1472_v6 }
 0x2bd   : > { %v1873_v52 = vrot.slane %v1872_v37, 1  ;;  %v1668_v39 = vadd.f32 %v1667_v28, %v1666_v1  ;;  %v1494_v17 = vrot.slane %v1475_v8, 4  ;;  %v1877_v21 = vrot.slane %v1876_v23, 2 }
 0x2be   : > { %5833 = vrsqrt.f32 %v2158_v53  ;;  %v1897_v38 = vpop.xlane.xlu0 %1896  ;;  %v1511_v44 = vmul.f32 %v7151_v15, %v7151_v15  ;;  %v1701_v16 = vrot.slane %v1685_v56, 4  ;;  %v1490_v32 = vrot.slane %v1489_v54, 2 }
 0x2bf   : > { %v1874_v0 = vadd.f32 %v1873_v52, %v1872_v37  ;;  %v1512_v42 = vmul.f32 %v7153_v35, %v7153_v35  ;;  %v1495_v48 = vadd.f32 %v1494_v17, %v1475_v8  ;;  %v1707_v30 = vrot.slane %v1688_v13, 4 }
 0x2c0   : > { %v7164_v3 = vmul.f32 0.00048828125, %v1668_v39  ;;  %v1878_v46 = vadd.f32 %v1877_v21, %v1876_v23  ;;  %v1702_v4 = vadd.f32 %v1701_v16, %v1685_v56  ;;  %v1913_v47 = vrot.slane %v1897_v38, 4  ;;  %v1900_v6 = vpop.xlane.xlu1 %1899 }
 0x2c1   : > { %v1491_v1 = vadd.f32 %v1490_v32, %v1489_v54  ;;  %v1496_v58 = vrot.slane %v1495_v48, 2  ;;  %v1723_v37 = vmul.f32 %v7158_v43, %v7158_v43  ;;  %v1708_v18 = vadd.f32 %v1707_v30, %v1688_v13 }
 0x2c2   : > { %v7168_v53 = vmul.f32 0.00048828125, %v1874_v0  ;;  %v1879_v28 = vrot.slane %v1878_v46, 1  ;;  %v1703_v33 = vrot.slane %v1702_v4, 2  ;;  %v1914_v52 = vadd.f32 %v1913_v47, %v1897_v38  ;;  %v2065_v24 = vpop.xlane.xlu0 %2064 }
 0x2c3   : > { %v1492_v8 = vrot.slane %v1491_v1, 1  ;;  %v1497_v17 = vadd.f32 %v1496_v58, %v1495_v48  ;;  %v1709_v39 = vrot.slane %v1708_v18, 2  ;;  %v1919_v9 = vrot.slane %v1900_v6, 4 }
 0x2c4   : > { %v1880_v23 = vadd.f32 %v1879_v28, %v1878_v46  ;;  %v1704_v56 = vadd.f32 %v1703_v33, %v1702_v4  ;;  %v1724_v54 = vmul.f32 %v7164_v3, %v7164_v3  ;;  %v1915_v21 = vrot.slane %v1914_v52, 2 }
 0x2c5   : > { %v1493_v32 = vadd.f32 %v1492_v8, %v1491_v1  ;;  %v1498_v35 = vrot.slane %v1497_v17, 1  ;;  %v1710_v13 = vadd.f32 %v1709_v39, %v1708_v18  ;;  %v2081_v0 = vrot.slane %v2065_v24, 4 }
 0x2c6   : > { %v5832_v16 = vpop.eup %5831  ;;  %v1705_v48 = vrot.slane %v1704_v56, 1  ;;  %v1920_v47 = vadd.f32 %v1919_v9, %v1900_v6  ;;  %v1916_v33 = vadd.f32 %v1915_v21, %v1914_v52  ;;  %v2068_v21 = vpop.xlane.xlu1 %2067 }
 0x2c7   : > { %v7173_v30 = vmul.f32 %v5832_v16, %v7081_v29  ;;  %v7176_v38 = vmul.f32 %v5832_v16, %v7084_v25  ;;  %v1507_v46 = vmul.f32 0.00048828125, %v1493_v32  ;;  %v1499_v4 = vadd.f32 %v1498_v35, %v1497_v17 }
 0x2c8   : > { %v5834_v58 = vpop.eup %5833  ;;  %v1711_v28 = vrot.slane %v1710_v13, 1  ;;  %v1706_v9 = vadd.f32 %v1705_v48, %v1704_v56  ;;  %v1917_v17 = vrot.slane %v1916_v33, 1 }
 0x2c9   : > { %8131 = vst [vmem:[#allocation58_spill] sm:$0xff] %v7173_v30  ;;  %8132 = vst [vmem:[#allocation59_spill] sm:$0xff] %v7176_v38  ;;  %v2348_v15 = vmul.f32 %v7173_v30, %v7127_v59  ;;  %v2349_v1 = vmul.f32 %v7176_v38, %v7127_v59  ;;  %v7183_v18 = vmul.f32 %v5834_v58, %v7081_v29  ;;  %v1508_v16 = vmul.f32 0.00048828125, %v1499_v4 }
 0x2ca   : > { %v7186_v8 = vmul.f32 %v5834_v58, %v7084_v25  ;;  %v1515_v39 = vsub.f32 %v1507_v46, %v1511_v44  ;;  %v1712_v6 = vadd.f32 %v1711_v28, %v1710_v13  ;;  %v1719_v38 = vmul.f32 0.00048828125, %v1706_v9 }
 0x2cb   : > { %v2409_v32 = vcombine.low %v2348_v15, %v2349_v1  ;;  %v2356_v35 = vmul.f32 %v7183_v18, %v7135_v62  ;;  %v1516_v30 = vsub.f32 %v1508_v16, %v1512_v42  ;;  %v7192_v58 = vmul.f32 0.00048828125, %v1880_v23 }
 0x2cc   : > { %v2357_v52 = vmul.f32 %v7186_v8, %v7135_v62  ;;  %v1519_v59 = vmax.f32 %v1515_v39, 0.0  ;;  %v1720_v29 = vmul.f32 0.00048828125, %v1712_v6  ;;  %v1935_v44 = vmul.f32 %v7168_v53, %v7168_v53 }
 0x2cd   : > { %v1918_v56 = vadd.f32 %v1917_v17, %v1916_v33  ;;  %v2437_v15 = vrot.slane %v2409_v32, %v7065_v40  ;;  %v1520_v13 = vmax.f32 %v1516_v30, 0.0  ;;  %v1727_v48 = vsub.f32 %v1719_v38, %v1723_v37  ;;  %v2109_v33 = vpop.xlane.xlu0 %2108  ;;  %v2112_v17 = vpop.xlane.xlu1 %2111 }
 0x2ce   : > { %v2458_v7 = vcombine.low %v2356_v35, %v2357_v52  ;;  %v1728_v46 = vsub.f32 %v1720_v29, %v1724_v54  ;;  %v1921_v28 = vrot.slane %v1920_v47, 2  ;;  %v2082_v1 = vadd.f32 %v2081_v0, %v2065_v24 }
 0x2cf   : > { %v1931_v4 = vmul.f32 0.00048828125, %v1918_v56  ;;  %v1523_v42 = vadd.f32 1e-05, %v1519_v59  ;;  %v1524_v39 = vadd.f32 1e-05, %v1520_v13  ;;  %v1731_v16 = vmax.f32 %v1727_v48, 0.0 }
 0x2d0   : > { %v2486_v62 = vrot.slane %v2458_v7, %v7065_v40  ;;  %v1732_v9 = vmax.f32 %v1728_v46, 0.0  ;;  %v1922_v35 = vadd.f32 %v1921_v28, %v1920_v47  ;;  %v2083_v52 = vrot.slane %v2082_v1, 2 }
 0x2d1   : > { %v1939_v6 = vsub.f32 %v1931_v4, %v1935_v44  ;;  %v1735_v32 = vadd.f32 1e-05, %v1731_v16  ;;  %v1936_v29 = vmul.f32 %v7192_v58, %v7192_v58  ;;  %v2087_v7 = vrot.slane %v2068_v21, 4 }
 0x2d2   : > { %v2488_v23 = vcombine.low %v7091_v10, %v2486_v62  ;;  %v1736_v30 = vadd.f32 1e-05, %v1732_v9  ;;  %v1923_v54 = vrot.slane %v1922_v35, 1  ;;  %v2084_v0 = vadd.f32 %v2083_v52, %v2082_v1 }
 0x2d3   : > { %v1943_v24 = vmax.f32 %v1939_v6, 0.0  ;;  %5835 = vrsqrt.f32 %v1735_v32  ;;  %v2088_v38 = vadd.f32 %v2087_v7, %v2068_v21  ;;  %v2125_v59 = vrot.slane %v2109_v33, 4  ;;  %v7208_v6 = vld [vmem:[#allocation8] sm:$0xff] }
 0x2d4   : > { %v2502_v37 = vrot.slane %v2488_v23, %v7065_v40  ;;  %v2131_v10 = vrot.slane %v2112_v17, 4  ;;  %5837 = vrsqrt.f32 %v1736_v30  ;;  %v1924_v56 = vadd.f32 %v1923_v54, %v1922_v35 }
 0x2d5   : > { %v1947_v44 = vadd.f32 1e-05, %v1943_v24  ;;  %v2085_v13 = vrot.slane %v2084_v0, 1  ;;  %v2089_v48 = vrot.slane %v2088_v38, 2  ;;  %v2126_v46 = vadd.f32 %v2125_v59, %v2109_v33 }
 0x2d6   : > { %v2503_v47 = vcombine.low %v7156_v34, %v2502_v37  ;;  %v2132_v62 = vadd.f32 %v2131_v10, %v2112_v17  ;;  %v1932_v4 = vmul.f32 0.00048828125, %v1924_v56  ;;  %v8133_v28 = vcombine.low %v7121_v55, %v7125_v51 }
 0x2d7   : > { %5839 = vrsqrt.f32 %v1947_v44  ;;  %v2439_v21 = vcombine.low %v7111_v11, %v2437_v15  ;;  %v2086_v16 = vadd.f32 %v2085_v13, %v2084_v0  ;;  %v2090_v9 = vadd.f32 %v2089_v48, %v2088_v38 }
 0x2d8   : > { %v2423_v1 = vrot.slane %v8133_v28, %v7065_v40  ;;  %v2127_v23 = vrot.slane %v2126_v46, 2  ;;  %v2133_v34 = vrot.slane %v2132_v62, 2  ;;  %v1940_v35 = vsub.f32 %v1932_v4, %v1936_v29 }
 0x2d9   : > { %v2453_v33 = vrot.slane %v2439_v21, %v7065_v40  ;;  %v7213_v17 = vsub.f32 %v7208_v6, %v2503_v47  ;;  %v7215_v32 = vmul.f32 0.00048828125, %v2086_v16  ;;  %v2091_v55 = vrot.slane %v2090_v9, 1 }
 0x2da   : > { %v2438_v52 = vcombine.low %v7102_v63, %v2423_v1  ;;  %v2128_v51 = vadd.f32 %v2127_v23, %v2126_v46  ;;  %v2134_v30 = vadd.f32 %v2133_v34, %v2132_v62  ;;  %v1944_v11 = vmax.f32 %v1940_v35, 0.0 }
 0x2db   : > { %v2813_v7 = vrot.slane %v7213_v17, %v6521_v14  ;;  %v8134_v63 = vrot.slane %v7105_v57, %v6516_v12  ;;  %5841 = vrsqrt.f32 %v1523_v42  ;;  %v2092_v37 = vadd.f32 %v2091_v55, %v2090_v9 }
 0x2dc   : > { %v2446_v15 = vrot.slane %v2438_v52, %v7065_v40  ;;  %v2129_v24 = vrot.slane %v2128_v51, 1  ;;  %v2135_v54 = vrot.slane %v2134_v30, 1  ;;  %5843 = vrsqrt.f32 %v1524_v39 }
 0x2dd   : > { %v2741_v29 = vmul.f32 %v8134_v63, %v6776_v26  ;;  %v1948_v0 = vadd.f32 1e-05, %v1944_v11  ;;  %v2657_v59 = vrot.slane %v7133_v50, %v6516_v12  ;;  %v5836_v10 = vpop.eup %5835  ;;  %v7226_v47 = vmul.f32 0.00048828125, %v2092_v37 }
 0x2de   : > { %v2454_v38 = vcombine.low %v2446_v15, %v2453_v33  ;;  %v2147_v44 = vmul.f32 %v7215_v32, %v7215_v32  ;;  %v2130_v56 = vadd.f32 %v2129_v24, %v2128_v51  ;;  %v2136_v13 = vadd.f32 %v2135_v54, %v2134_v30  ;;  %v5838_v57 = vpop.eup %5837 }
 0x2df   : > { %v7231_v26 = vmul.f32 %v5836_v10, %v7068_v60  ;;  %5845 = vrsqrt.f32 %v1948_v0  ;;  %v2943_v39 = vadd.f32 %v2813_v7, %v7108_v22  ;;  %v7238_v50 = vmul.f32 %v5836_v10, %v7075_v27 }
 0x2e0   : > { %v7234_v42 = vsub.f32 %v7208_v6, %v2454_v38  ;;  %v7241_v48 = vmul.f32 %v5838_v57, %v7068_v60  ;;  %v2143_v46 = vmul.f32 0.00048828125, %v2130_v56  ;;  %v2821_v62 = vrot.slane %v7213_v17, %v6618_v49  ;;  %v8135_v56 = vld [vmem:[#allocation27_spill] sm:$0xff] }
 0x2e1   : > { %v5840_v4 = vpop.eup %5839  ;;  %v2148_v28 = vmul.f32 %v7226_v47, %v7226_v47  ;;  %v2144_v1 = vmul.f32 0.00048828125, %v2136_v13  ;;  %v2749_v22 = vmul.f32 %v2657_v59, %v6797_v20  ;;  %v7252_v16 = vmul.f32 %v7231_v26, %v7158_v43 }
 0x2e2   : > { %v2781_v21 = vrot.slane %v7234_v42, %v6521_v14  ;;  %v7255_v60 = vmul.f32 %v5838_v57, %v7075_v27  ;;  %v7258_v9 = vmul.f32 %v5840_v4, %v7025_v41  ;;  %v7261_v23 = vmul.f32 %v5840_v4, %v7028_v19 }
 0x2e3   : > { %v2151_v34 = vsub.f32 %v2143_v46, %v2147_v44  ;;  %v2152_v35 = vsub.f32 %v2144_v1, %v2148_v28  ;;  %v2789_v20 = vrot.slane %v7234_v42, %v6618_v49  ;;  %v7268_v33 = vmul.f32 %v7238_v50, %v7158_v43 }
 0x2e4   : > { %v2935_v52 = vadd.f32 %v2781_v21, %v7094_v61  ;;  %v7272_v27 = vmul.f32 %v7241_v48, %v7164_v3  ;;  %v2945_v55 = vadd.f32 %v2821_v62, %v2749_v22  ;;  %v2777_v51 = vrot.slane %v7234_v42, %v6516_v12  ;;  %v8137_v62 = vld [vmem:[#allocation49_spill] sm:$0xff]  ;;  %v8138_v21 = vld [vmem:[#allocation50_spill] sm:$0xff] }
 0x2e5   : > { %v2155_v30 = vmax.f32 %v2151_v34, 0.0  ;;  %v2156_v11 = vmax.f32 %v2152_v35, 0.0  ;;  %v2937_v7 = vadd.f32 %v2789_v20, %v2741_v29  ;;  %v5842_v61 = vpop.eup %5841  ;;  %v2362_v63 = vmul.f32 %v7258_v9, %v7168_v53 }
 0x2e6   : > { %v2967_v15 = vpack.c.bf16 %v2943_v39, %v2935_v52  ;;  %v2363_v43 = vmul.f32 %v7261_v23, %v7168_v53  ;;  %v2809_v37 = vrot.slane %v7213_v17, %v6516_v12  ;;  %v2621_v24 = vrot.slane %v7099_v2, %v6516_v12  ;;  %v5844_v54 = vpop.eup %5843  ;;  %v8136_v2 = vld [vmem:[#allocation28_spill] sm:$0xff] }
 0x2e7   : > { %v2159_v0 = vadd.f32 1e-05, %v2155_v30  ;;  %v2160_v38 = vadd.f32 1e-05, %v2156_v11  ;;  %v2969_v59 = vpack.c.bf16 %v2945_v55, %v2937_v7  ;;  %v2653_v29 = vrot.slane %v7130_v5, %v6516_v12  ;;  %v8139_v30 = vld [vmem:[#allocation56_spill] sm:$0xff] }
 0x2e8   : > { %3794 = vmatprep.mubr.bf16.mxu1 %v2967_v15  ;;  %v2934_v10 = vadd.f32 %v2777_v51, %v7117_v36  ;;  %v2942_v44 = vadd.f32 %v2809_v37, %v7114_v31  ;;  %v2740_v53 = vmul.f32 %v2621_v24, %v8135_v56  ;;  %v2785_v13 = vrot.slane %v7234_v42, %v6614_v45  ;;  %v5648_v51 = vld [vmem:[#allocation10 + $0x214] ss:$8 sps:$4 sm:$0xff]   ;;  %v8140_v7 = vld [vmem:[#allocation52_spill] sm:$0xff] }
 0x2e9   : > { %v5846_v57 = vpop.eup %5845  ;;  %5847 = vrsqrt.f32 %v2159_v0  ;;  %3847 = vmatprep.mubr.bf16.mxu0 %v2969_v59  ;;  %v2748_v39 = vmul.f32 %v2653_v29, %v8136_v2  ;;  %v2817_v46 = vrot.slane %v7213_v17, %v6614_v45  ;;  %v7295_v4 = vmul.f32 %v5842_v61, %v8137_v62  ;;  %v8144_v2 = vld [vmem:[#allocation54_spill] sm:$0xff] }
 0x2ea   : > { %v7298_v5 = vmul.f32 %v5846_v57, %v7025_v41  ;;  %v7301_v31 = vmul.f32 %v5846_v57, %v7028_v19  ;;  %5849 = vrsqrt.f32 %v2160_v38  ;;  %v2966_v36 = vpack.c.bf16 %v2942_v44, %v2934_v10  ;;  %v5643_v19 = vld [vmem:[#allocation10 + $0x200] ss:$8 sps:$4 sm:$0xff]   ;;  %v5646_v44 = vld [vmem:[#allocation10 + $0x210] ss:$8 sps:$4 sm:$0xff]  }
 0x2eb   : > { %v2936_v28 = vadd.f32 %v2785_v13, %v2740_v53  ;;  %v2944_v1 = vadd.f32 %v2817_v46, %v2748_v39  ;;  %v2327_v22 = vmul.f32 %v5842_v61, %v8138_v21  ;;  %v7305_v34 = vmul.f32 %v5844_v54, %v8137_v62  ;;  %v8141_v61 = vld [vmem:[#allocation57_spill] sm:$0xff]  ;;  %v5651_v13 = vld [vmem:[#allocation10 + $0x224] ss:$8 sps:$4 sm:$0xff]   ;;  %v8145_v46 = vld [vmem:[#allocation22_spill] sm:$0xff] }
 0x2ec   : > { %v2369_v35 = vmul.f32 %v7255_v60, %v7164_v3  ;;  %v2370_v52 = vmul.f32 %v7298_v5, %v7192_v58  ;;  %v2371_v41 = vmul.f32 %v7301_v31, %v7192_v58  ;;  %3795 = vmatmul.mubr.bf16.vlgmr.msra.gmra.mrb[24].mxu1 %v2966_v36  ;;  %v2335_v20 = vmul.f32 %v5844_v54, %v8138_v21  ;;  %v8142_v58 = vld [vmem:[#allocation53_spill] sm:$0xff]  ;;  %v8143_v54 = vld [vmem:[#allocation51_spill] sm:$0xff] }
 0x2ed   : > { %v2968_v55 = vpack.c.bf16 %v2944_v1, %v2936_v28  ;;  %v2358_v11 = vmul.f32 %v7295_v4, %v8139_v30  ;;  %v2359_v15 = vmul.f32 %v2327_v22, %v8139_v30  ;;  %v2665_v3 = vrot.slane %v8140_v7, %v6516_v12  ;;  %v8146_v36 = vld [vmem:[#allocation23_spill] sm:$0xff]  ;;  %v8149_v30 = vld [vmem:[#allocation30_spill] sm:$0xff] }
 0x2ee   : > { %v2366_v37 = vmul.f32 %v7305_v34, %v8141_v61  ;;  %v2367_v24 = vmul.f32 %v2335_v20, %v8141_v61  ;;  %v2629_v0 = vrot.slane %v8142_v58, %v6516_v12  ;;  %v2661_v38 = vrot.slane %v8143_v54, %v6516_v12 }
 0x2ef   : > { %v2506_v59 = vcombine.low %v2362_v63, %v2363_v43  ;;  %v2555_v29 = vcombine.low %v2370_v52, %v2371_v41  ;;  %3848 = vmatmul.mubr.bf16.vlgmr.msra.gmra.mrb[8].mxu0 %v2968_v55  ;;  %v2505_v10 = vcombine.low %v7252_v16, %v7268_v33  ;;  %v2554_v56 = vcombine.low %v7272_v27, %v2369_v35  ;;  %v8147_v33 = vld [vmem:[#allocation21_spill] sm:$0xff]  ;;  %v8148_v41 = vld [vmem:[#allocation55_spill] sm:$0xff] }
 0x2f0   : > { %3869 = vmatpush1.bf16.msra.mxu0 %v5643_v19  ;;  %v2681_v53 = vrot.slane %v2327_v22, %v6516_v12  ;;  %v2504_v57 = vcombine.low %v2358_v11, %v2359_v15  ;;  %v2633_v39 = vrot.slane %v8144_v2, %v6516_v12  ;;  %v7333_v62 = vmul.f32 %v2665_v3, %v8145_v46  ;;  %v5649_v55 = vld [vmem:[#allocation10 + $0x220] ss:$8 sps:$4 sm:$0xff]  }
 0x2f1   : > { %3870 = vmatprep.subr.bf16.mxu0 %v5648_v51  ;;  %v2553_v63 = vcombine.low %v2366_v37, %v2367_v24  ;;  %v2713_v43 = vrot.slane %v2335_v20, %v6516_v12  ;;  %v2742_v16 = vmul.f32 %v2629_v0, %v8146_v36  ;;  %v2750_v28 = vmul.f32 %v2661_v38, %v8147_v33  ;;  %v8150_v0 = vld [vmem:[#allocation36_spill] sm:$0xff] }
 0x2f2   : > { %v2528_v27 = vrot.slane %v2506_v59, %v7065_v40  ;;  %v2577_v21 = vrot.slane %v2555_v29, %v7065_v40  ;;  %v2521_v22 = vrot.slane %v2505_v10, %v7065_v40  ;;  %v2689_v35 = vrot.slane %v7238_v50, %v6516_v12  ;;  %v5654_v50 = vld [vmem:[#allocation10 + $0x234] ss:$8 sps:$4 sm:$0xff]  }
 0x2f3   : > { %v5848_v1 = vpop.eup %5847  ;;  %v2570_v51 = vrot.slane %v2554_v56, %v7065_v40  ;;  %v7351_v11 = vmul.f32 %v2681_v53, %v8149_v30  ;;  %v2514_v3 = vrot.slane %v2504_v57, %v7065_v40  ;;  %v2721_v61 = vrot.slane %v7255_v60, %v6516_v12  ;;  %v5657_v57 = vld [vmem:[#allocation10 + $0x244] ss:$8 sps:$4 sm:$0xff]  }
 0x2f4   : > { %v5850_v52 = vpop.eup %5849  ;;  %v7344_v19 = vmul.f32 %v5848_v1, %v8148_v41  ;;  %v7347_v20 = vmul.f32 %v5848_v1, %v7084_v25  ;;  %3871 = vmatpush1.bf16.msra.mxu0 %v5646_v44  ;;  %v2563_v58 = vrot.slane %v2553_v63, %v7065_v40  ;;  %v7368_v54 = vmul.f32 %v2713_v43, %v8150_v0  ;;  %v8151_v44 = vld [vmem:[#allocation19_spill] sm:$0xff]  ;;  %v8158_v0 = vld [vmem:[#allocation26_spill] sm:$0xff] }
 0x2f5   : > { %v7354_v15 = vmul.f32 %v5850_v52, %v8148_v41  ;;  %v7357_v7 = vmul.f32 %v5850_v52, %v7084_v25  ;;  %3872 = vmatprep.subr.bf16.mxu0 %v5651_v13  ;;  %v2677_v60 = vrot.slane %v7295_v4, %v6516_v12  ;;  %v2709_v59 = vrot.slane %v7305_v34, %v6516_v12  ;;  %v8153_v4 = vld [vmem:[#allocation40_spill] sm:$0xff]  ;;  %v8154_v52 = vld [vmem:[#allocation29_spill] sm:$0xff] }
 0x2f6   : > { %v2364_v37 = vmul.f32 %v7344_v19, %v7215_v32  ;;  %v2365_v24 = vmul.f32 %v7347_v20, %v7215_v32  ;;  %v5652_v32 = vld [vmem:[#allocation10 + $0x230] ss:$8 sps:$4 sm:$0xff]   ;;  %v2536_v10 = vcombine.low %v2514_v3, %v2521_v22  ;;  %v2793_v56 = vrot.slane %v7234_v42, %v8151_v44 }
 0x2f7   : > { %v2372_v25 = vmul.f32 %v7354_v15, %v7226_v47  ;;  %v2373_v38 = vmul.f32 %v7357_v7, %v7226_v47  ;;  %v2825_v53 = vrot.slane %v7213_v17, %v8151_v44  ;;  %v8152_v47 = vld [vmem:[#allocation38_spill] sm:$0xff]  ;;  %v7386_v63 = vmul.f32 %v2721_v61, %v8153_v4 }
 0x2f8   : > { %v2507_v29 = vcombine.low %v2364_v37, %v2365_v24  ;;  %3873 = vmatpush1.bf16.msra.mxu0 %v5649_v55  ;;  %v7383_v46 = vmul.f32 %v2689_v35, %v8152_v47  ;;  %v2685_v34 = vrot.slane %v7231_v26, %v6516_v12  ;;  %v2585_v36 = vcombine.low %v2563_v58, %v2570_v51  ;;  %v8155_v55 = vld [vmem:[#allocation20_spill] sm:$0xff]  ;;  %v8156_v51 = vld [vmem:[#allocation35_spill] sm:$0xff]  ;;  %v5660_v61 = vld [vmem:[#allocation10 + $0x254] ss:$8 sps:$4 sm:$0xff]  }
 0x2f9   : > { %v2556_v13 = vcombine.low %v2372_v25, %v2373_v38  ;;  %3874 = vmatprep.subr.bf16.mxu0 %v5654_v50  ;;  %v7391_v33 = vadd.f32 %v2793_v56, %v2742_v16  ;;  %v7393_v1 = vadd.f32 %v2825_v53, %v2750_v28  ;;  %v2754_v41 = vmul.f32 %v2677_v60, %v8154_v52  ;;  %v5655_v50 = vld [vmem:[#allocation10 + $0x240] ss:$8 sps:$4 sm:$0xff]   ;;  %v8161_v56 = vld [vmem:[#allocation34_spill] sm:$0xff]  ;;  %v5663_v52 = vld [vmem:[#allocation10 + $0x264] ss:$8 sps:$4 sm:$0xff]  }
 0x2fa   : > { %v2535_v43 = vrot.slane %v2507_v29, %v7065_v40  ;;  %v2717_v35 = vrot.slane %v7241_v48, %v6516_v12  ;;  %v2797_v30 = vrot.slane %v7234_v42, %v8155_v55  ;;  %v2544_v3 = vrot.slane %v2536_v10, %v7065_v40  ;;  %v8157_v24 = vld [vmem:[#allocation59_spill] sm:$0xff] }
 0x2fb   : > { %v2584_v22 = vrot.slane %v2556_v13, %v7065_v40  ;;  %v2762_v16 = vmul.f32 %v2709_v59, %v8156_v51  ;;  %v2970_v28 = vpack.c.bf16 %v7393_v1, %v7391_v33  ;;  %v2641_v58 = vrot.slane %v8157_v24, %v6516_v12  ;;  %v8159_v59 = vld [vmem:[#allocation58_spill] sm:$0xff]  ;;  %v8162_v47 = vld [vmem:[#allocation31_spill] sm:$0xff]  ;;  %v8164_v24 = vld [vmem:[#allocation33_spill] sm:$0xff] }
 0x2fc   : > { %3875 = vmatpush1.bf16.msra.mxu0 %v5652_v32  ;;  %v2537_v26 = vcombine.low %v2528_v27, %v2535_v43  ;;  %v2673_v48 = vrot.slane %v7186_v8, %v6516_v12  ;;  %v2805_v25 = vrot.slane %v7234_v42, %v8158_v0  ;;  %v2593_v38 = vrot.slane %v2585_v36, %v7065_v40  ;;  %v8160_v32 = vld [vmem:[#allocation32_spill] sm:$0xff]  ;;  %v5658_v13 = vld [vmem:[#allocation10 + $0x250] ss:$8 sps:$4 sm:$0xff]   ;;  %v5702_v33 = vld [vmem:[#allocation10 + $0x334] ss:$8 sps:$4 sm:$0xff]  }
 0x2fd   : > { %3876 = vmatprep.subr.bf16.mxu0 %v5657_v57  ;;  %v2586_v37 = vcombine.low %v2577_v21, %v2584_v22  ;;  %v2837_v60 = vrot.slane %v7213_v17, %v8158_v0  ;;  %v2637_v29 = vrot.slane %v8159_v59, %v6516_v12  ;;  %v2745_v10 = vmul.f32 %v2641_v58, %v8160_v32  ;;  %v8163_v43 = vld [vmem:[#allocation25_spill] sm:$0xff]  ;;  %v5705_v1 = vld [vmem:[#allocation10 + $0x344] ss:$8 sps:$4 sm:$0xff]  }
 0x2fe   : > { %v2551_v27 = vrot.slane %v2537_v26, %v7065_v40  ;;  %v2753_v53 = vmul.f32 %v2673_v48, %v8161_v56  ;;  %v2669_v8 = vrot.slane %v7183_v18, %v6516_v12  ;;  %v2801_v36 = vrot.slane %v7234_v42, %v8163_v43  ;;  %v8166_v48 = vld [vmem:[#allocation39_spill] sm:$0xff]  ;;  %v5672_v42 = vld [vmem:[#allocation10 + $0x294] ss:$8 sps:$4 sm:$0xff]  }
 0x2ff   : > { %v2600_v21 = vrot.slane %v2586_v37, %v7065_v40  ;;  %v2744_v4 = vmul.f32 %v2637_v29, %v8162_v47  ;;  %v2833_v22 = vrot.slane %v7213_v17, %v8163_v43  ;;  %v7427_v51 = vadd.f32 %v2805_v25, %v2745_v10 }
 0x300   : > { %3877 = vmatpush1.bf16.msra.mxu0 %v5655_v50  ;;  %v2552_v57 = vcombine.low %v2544_v3, %v2551_v27  ;;  %v7429_v37 = vadd.f32 %v2837_v60, %v2753_v53  ;;  %v2752_v18 = vmul.f32 %v2669_v8, %v8164_v24  ;;  %v8165_v3 = vld [vmem:[#allocation37_spill] sm:$0xff]  ;;  %v2764_v27 = vmul.f32 %v2717_v35, %v8166_v48  ;;  %v5661_v60 = vld [vmem:[#allocation10 + $0x260] ss:$8 sps:$4 sm:$0xff]  }
 0x301   : > { %3878 = vmatprep.subr.bf16.mxu0 %v5660_v61  ;;  %v2601_v26 = vcombine.low %v2593_v38, %v2600_v21  ;;  %v2756_v58 = vmul.f32 %v2685_v34, %v8165_v3  ;;  %v7437_v59 = vadd.f32 %v2801_v36, %v2744_v4  ;;  %v2829_v61 = vrot.slane %v7213_v17, %v8155_v55  ;;  %v5666_v17 = vld [vmem:[#allocation10 + $0x274] ss:$8 sps:$4 sm:$0xff]  }
 0x302   : > { %v7433_v50 = vsub.f32 %v7208_v6, %v2552_v57  ;;  %v2973_v25 = vpack.c.bf16 %v7429_v37, %v7427_v51  ;;  %v7446_v38 = vadd.f32 %v2833_v22, %v2752_v18  ;;  %v2701_v2 = vrot.slane %v7344_v19, %v6516_v12  ;;  %v5717_v51 = vld [vmem:[#allocation10 + $0x384] ss:$8 sps:$4 sm:$0xff]   ;;  %v5715_v37 = vld [vmem:[#allocation10 + $0x380] ss:$8 sps:$4 sm:$0xff]  }
 0x303   : > { %v7440_v29 = vsub.f32 %v7208_v6, %v2601_v26  ;;  %v8167_v26 = vld [vmem:[#allocation24_spill] sm:$0xff] }
 0x304   : > { %3879 = vmatpush1.bf16.msra.mxu0 %v5658_v13  ;;  %v2845_v34 = vrot.slane %v7433_v50, %v6521_v14  ;;  %v2853_v35 = vrot.slane %v7433_v50, %v6618_v49  ;;  %v2841_v6 = vrot.slane %v7433_v50, %v6516_v12  ;;  %v2849_v21 = vrot.slane %v7433_v50, %v6614_v45 }
 0x305   : > { %3880 = vmatprep.subr.bf16.mxu0 %v5663_v52  ;;  %v2877_v32 = vrot.slane %v7440_v29, %v6521_v14  ;;  %v2885_v10 = vrot.slane %v7440_v29, %v6618_v49  ;;  %v2873_v56 = vrot.slane %v7440_v29, %v6516_v12  ;;  %v2881_v53 = vrot.slane %v7440_v29, %v6614_v45  ;;  %v5664_v49 = vld [vmem:[#allocation10 + $0x270] ss:$8 sps:$4 sm:$0xff]  }
 0x306   : > { %v2951_v8 = vadd.f32 %v2845_v34, %v7351_v11  ;;  %v2953_v13 = vadd.f32 %v2853_v35, %v7383_v46  ;;  %v2950_v57 = vadd.f32 %v2841_v6, %v2754_v41  ;;  %v2952_v47 = vadd.f32 %v2849_v21, %v2756_v58  ;;  %v5669_v41 = vld [vmem:[#allocation10 + $0x284] ss:$8 sps:$4 sm:$0xff]   ;;  %v8170_v34 = vld [vmem:[#allocation45_spill] sm:$0xff] }
 0x307   : > { %v2959_v4 = vadd.f32 %v2877_v32, %v7368_v54  ;;  %v2961_v36 = vadd.f32 %v2885_v10, %v7386_v63  ;;  %v2958_v22 = vadd.f32 %v2873_v56, %v2762_v16  ;;  %v2960_v52 = vadd.f32 %v2881_v53, %v2764_v27  ;;  %v8171_v32 = vld [vmem:[#allocation47_spill] sm:$0xff] }
 0x308   : > { %3881 = vmatpush1.bf16.msra.mxu0 %v5661_v60  ;;  %v2743_v24 = vmul.f32 %v2633_v39, %v8167_v26  ;;  %v2947_v45 = vadd.f32 %v2829_v61, %v7333_v62  ;;  %v2705_v11 = vrot.slane %v7347_v20, %v6516_v12  ;;  %v2737_v46 = vrot.slane %v7357_v7, %v6516_v12  ;;  %v5667_v62 = vld [vmem:[#allocation10 + $0x280] ss:$8 sps:$4 sm:$0xff]   ;;  %v8168_v7 = vld [vmem:[#allocation46_spill] sm:$0xff] }
 0x309   : > { %3882 = vmatprep.subr.bf16.mxu0 %v5666_v17  ;;  %v2975_v54 = vpack.c.bf16 %v2959_v4, %v2951_v8  ;;  %v2977_v63 = vpack.c.bf16 %v2961_v36, %v2953_v13  ;;  %v2974_v16 = vpack.c.bf16 %v2958_v22, %v2950_v57  ;;  %v2976_v18 = vpack.c.bf16 %v2960_v52, %v2952_v47  ;;  %v5678_v57 = vld [vmem:[#allocation10 + $0x2b4] ss:$8 sps:$4 sm:$0xff]   ;;  %v5676_v47 = vld [vmem:[#allocation10 + $0x2b0] ss:$8 sps:$4 sm:$0xff]   ;;  %v5681_v4 = vld [vmem:[#allocation10 + $0x2c4] ss:$8 sps:$4 sm:$0xff]  }
 0x30a   : > { %v2939_v3 = vadd.f32 %v2797_v30, %v2743_v24  ;;  %v2972_v39 = vpack.c.bf16 %v7446_v38, %v7437_v59  ;;  %v2761_v58 = vmul.f32 %v2705_v11, %v8168_v7  ;;  %v2869_v48 = vrot.slane %v7433_v50, %v8158_v0  ;;  %v8169_v30 = vld [vmem:[#allocation48_spill] sm:$0xff]  ;;  %v5684_v22 = vld [vmem:[#allocation10 + $0x2d4] ss:$8 sps:$4 sm:$0xff]   ;;  %v5682_v52 = vld [vmem:[#allocation10 + $0x2d0] ss:$8 sps:$4 sm:$0xff]  }
 0x30b   : > { %3804 = vmatprep.mubr.bf16.mxu1 %v2975_v54  ;;  %3857 = vmatprep.mubr.bf16.mxu0 %v2977_v63  ;;  %v2769_v27 = vmul.f32 %v2737_v46, %v8169_v30  ;;  %v2901_v19 = vrot.slane %v7440_v29, %v8158_v0  ;;  %v2733_v61 = vrot.slane %v7354_v15, %v6516_v12  ;;  %v5670_v0 = vld [vmem:[#allocation10 + $0x290] ss:$8 sps:$4 sm:$0xff]   ;;  %v5675_v15 = vld [vmem:[#allocation10 + $0x2a4] ss:$8 sps:$4 sm:$0xff]   ;;  %v5679_v36 = vld [vmem:[#allocation10 + $0x2c0] ss:$8 sps:$4 sm:$0xff]  }
 0x30c   : > { %3883 = vmatpush1.bf16.msra.mxu0 %v5664_v49  ;;  %3805 = vmatmul.mubr.bf16.gmra.mrb[28].mxu1 %v2974_v16  ;;  %v2971_v20 = vpack.c.bf16 %v2947_v45, %v2939_v3  ;;  %v7492_v60 = vadd.f32 %v2869_v48, %v2761_v58  ;;  %v2760_v35 = vmul.f32 %v2701_v2, %v8170_v34  ;;  %v5687_v49 = vld [vmem:[#allocation10 + $0x2e4] ss:$8 sps:$4 sm:$0xff]   ;;  %v5685_v26 = vld [vmem:[#allocation10 + $0x2e0] ss:$8 sps:$4 sm:$0xff]   ;;  %v5690_v45 = vld [vmem:[#allocation10 + $0x2f4] ss:$8 sps:$4 sm:$0xff]  }
 0x30d   : > { %3884 = vmatprep.subr.bf16.mxu0 %v5669_v41  ;;  %3858 = vmatmul.mubr.bf16.gmra.mrb[12].mxu0 %v2976_v18  ;;  %v2865_v6 = vrot.slane %v7433_v50, %v8163_v43  ;;  %v2897_v21 = vrot.slane %v7440_v29, %v8163_v43  ;;  %v7499_v17 = vadd.f32 %v2901_v19, %v2769_v27  ;;  %v5673_v43 = vld [vmem:[#allocation10 + $0x2a0] ss:$8 sps:$4 sm:$0xff]   ;;  %v5688_v54 = vld [vmem:[#allocation10 + $0x2f0] ss:$8 sps:$4 sm:$0xff]   ;;  %v5693_v18 = vld [vmem:[#allocation10 + $0x304] ss:$8 sps:$4 sm:$0xff]  }
 0x30e   : > { %3900 = vmatprep.mubr.bf16.mxu0 %v2971_v20  ;;  %v2768_v10 = vmul.f32 %v2733_v61, %v8171_v32  ;;  %v2729_v24 = vrot.slane %v7301_v31, %v6516_v12  ;;  %v2697_v11 = vrot.slane %v7261_v23, %v6516_v12  ;;  %v2893_v46 = vrot.slane %v7440_v29, %v8155_v55  ;;  %v8172_v63 = vld [vmem:[#allocation44_spill] sm:$0xff]  ;;  %v8173_v3 = vld [vmem:[#allocation42_spill] sm:$0xff]  ;;  %v8175_v19 = vld [vmem:[#allocation41_spill] sm:$0xff] }
 0x30f   : > { %v7502_v56 = vadd.f32 %v2865_v6, %v2760_v35  ;;  %v2981_v53 = vpack.c.bf16 %v7499_v17, %v7492_v60  ;;  %v2861_v16 = vrot.slane %v7433_v50, %v8155_v55  ;;  %v5691_v23 = vld [vmem:[#allocation10 + $0x300] ss:$8 sps:$4 sm:$0xff]   ;;  %v5696_v7 = vld [vmem:[#allocation10 + $0x314] ss:$8 sps:$4 sm:$0xff]   ;;  %v2693_v58 = vrot.slane %v7258_v9, %v6516_v12  ;;  %v5694_v27 = vld [vmem:[#allocation10 + $0x310] ss:$8 sps:$4 sm:$0xff]  }
 0x310   : > { %3885 = vmatpush1.bf16.msra.mxu0 %v5667_v62  ;;  %v7506_v8 = vadd.f32 %v2897_v21, %v2768_v10  ;;  %v2767_v41 = vmul.f32 %v2729_v24, %v8172_v63  ;;  %v2759_v2 = vmul.f32 %v2697_v11, %v8173_v3  ;;  %v2725_v62 = vrot.slane %v7298_v5, %v6516_v12  ;;  %v5699_v34 = vld [vmem:[#allocation10 + $0x324] ss:$8 sps:$4 sm:$0xff]   ;;  %v5706_v21 = vld [vmem:[#allocation10 + $0x350] ss:$8 sps:$4 sm:$0xff]   ;;  %v5709_v10 = vld [vmem:[#allocation10 + $0x360] ss:$8 sps:$4 sm:$0xff]  }
 0x311   : > { %3886 = vmatprep.subr.bf16.mxu0 %v5672_v42  ;;  %v2889_v48 = vrot.slane %v7440_v29, %v8151_v44  ;;  %v8174_v42 = vld [vmem:[#allocation43_spill] sm:$0xff]  ;;  %v2857_v5 = vrot.slane %v7433_v50, %v8151_v44  ;;  %v2758_v61 = vmul.f32 %v2693_v58, %v8175_v19  ;;  %v5700_v44 = vld [vmem:[#allocation10 + $0x330] ss:$8 sps:$4 sm:$0xff]   ;;  %v5708_v50 = vld [vmem:[#allocation10 + $0x354] ss:$8 sps:$4 sm:$0xff]  }
 0x312   : > { %v2980_v13 = vpack.c.bf16 %v7506_v8, %v7502_v56  ;;  %v2963_v31 = vadd.f32 %v2893_v46, %v2767_v41  ;;  %v2955_v20 = vadd.f32 %v2861_v16, %v2759_v2  ;;  %v2766_v30 = vmul.f32 %v2725_v62, %v8174_v42  ;;  %v5697_v29 = vld [vmem:[#allocation10 + $0x320] ss:$8 sps:$4 sm:$0xff]   ;;  %v5711_v32 = vld [vmem:[#allocation10 + $0x364] ss:$8 sps:$4 sm:$0xff]   ;;  %v5738_v11 = vld [vmem:[#allocation10 + $0x3f4] ss:$8 sps:$4 sm:$0xff]  }
 0x313   : > { %v2954_v35 = vadd.f32 %v2857_v5, %v2758_v61  ;;  %v5735_v24 = vld [vmem:[#allocation10 + $0x3e4] ss:$8 sps:$4 sm:$0xff]   ;;  %v5736_v46 = vld [vmem:[#allocation10 + $0x3f0] ss:$8 sps:$4 sm:$0xff]  }
 0x314   : > { %3887 = vmatpush1.bf16.msra.mxu0 %v5670_v0  ;;  %v2979_v55 = vpack.c.bf16 %v2963_v31, %v2955_v20  ;;  %v2962_v9 = vadd.f32 %v2889_v48, %v2766_v30  ;;  %v5714_v0 = vld [vmem:[#allocation10 + $0x374] ss:$8 sps:$4 sm:$0xff]  }
 0x315   : > { %3888 = vmatprep.subr.bf16.mxu0 %v5675_v15  ;;  %v5712_v15 = vld [vmem:[#allocation10 + $0x370] ss:$8 sps:$4 sm:$0xff]  }
 0x316   : > { %v2978_v6 = vpack.c.bf16 %v2962_v9, %v2954_v35 }
 0x318   : > { %3889 = vmatpush1.bf16.msra.mxu0 %v5673_v43  ;;  %v5718_v43 = vld [vmem:[#allocation10 + $0x390] ss:$8 sps:$4 sm:$0xff]  }
 0x319   : > { %3890 = vmatprep.subr.bf16.mxu0 %v5678_v57  ;;  %v5723_v57 = vld [vmem:[#allocation10 + $0x3a4] ss:$8 sps:$4 sm:$0xff]  }
 0x31c   : > { %3891 = vmatpush1.bf16.msra.mxu0 %v5676_v47  ;;  %v5721_v47 = vld [vmem:[#allocation10 + $0x3a0] ss:$8 sps:$4 sm:$0xff]  }
 0x31d   : > { %3892 = vmatprep.subr.bf16.mxu0 %v5681_v4  ;;  %v5726_v4 = vld [vmem:[#allocation10 + $0x3b4] ss:$8 sps:$4 sm:$0xff]  }
 0x320   : > { %3893 = vmatpush1.bf16.msra.mxu0 %v5679_v36  ;;  %v5724_v36 = vld [vmem:[#allocation10 + $0x3b0] ss:$8 sps:$4 sm:$0xff]  }
 0x321   : > { %3894 = vmatprep.subr.bf16.mxu0 %v5684_v22  ;;  %v5729_v22 = vld [vmem:[#allocation10 + $0x3c4] ss:$8 sps:$4 sm:$0xff]  }
 0x324   : > { %3895 = vmatpush1.bf16.msra.mxu0 %v5682_v52  ;;  %v5727_v52 = vld [vmem:[#allocation10 + $0x3c0] ss:$8 sps:$4 sm:$0xff]  }
 0x325   : > { %3896 = vmatprep.subr.bf16.mxu0 %v5687_v49  ;;  %v5732_v49 = vld [vmem:[#allocation10 + $0x3d4] ss:$8 sps:$4 sm:$0xff]  }
 0x328   : > { %3897 = vmatpush1.bf16.msra.mxu0 %v5685_v26  ;;  %v5730_v26 = vld [vmem:[#allocation10 + $0x3d0] ss:$8 sps:$4 sm:$0xff]  }
 0x329   : > { %3898 = vmatprep.subr.bf16.mxu0 %v5690_v45  ;;  %v5733_v45 = vld [vmem:[#allocation10 + $0x3e0] ss:$8 sps:$4 sm:$0xff]  }
 0x32c   : > { %3899 = vmatpush1.bf16.msra.mxu0 %v5688_v54 }
 0x32d   : > { %3921 = vmatprep.subr.bf16.mxu0 %v5693_v18  ;;  %v3110_v18 = vld [vmem:[%s8008_s6] sm:$0x3] }
 0x32e   : > { %v3115_v3 = vrot.slane %v3110_v18, %v6516_v12  ;;  %v3119_v59 = vrot.slane %v3110_v18, %v6521_v14 }
 0x32f   : > { %3901 = vmatmul.mubr.bf16.vlgmr.msra.gmra.mrb[8].mxu0 %v2970_v28  ;;  %v5703_v28 = vld [vmem:[#allocation10 + $0x340] ss:$8 sps:$4 sm:$0xff]  }
 0x330   : > { %3910 = vmatprep.mubr.bf16.mxu0 %v2979_v55  ;;  %3922 = vmatpush1.bf16.msra.mxu0 %v5691_v23 }
 0x331   : > { %3923 = vmatprep.subr.bf16.mxu0 %v5696_v7 }
 0x334   : > { %3924 = vmatpush1.bf16.msra.mxu0 %v5694_v27 }
 0x335   : > { %3925 = vmatprep.subr.bf16.mxu0 %v5699_v34 }
 0x337   : > { %3911 = vmatmul.mubr.bf16.gmra.mrb[12].mxu0 %v2978_v6 }
 0x338   : > { %3926 = vmatpush1.bf16.msra.mxu0 %v5697_v29  ;;  %3953 = vmatprep.mubr.bf16.mxu0 %v2973_v25  ;;  %v5720_v25 = vld [vmem:[#allocation10 + $0x394] ss:$8 sps:$4 sm:$0xff]  }
 0x339   : > { %3927 = vmatprep.subr.bf16.mxu0 %v5702_v33 }
 0x33c   : > { %3928 = vmatpush1.bf16.msra.mxu0 %v5700_v44 }
 0x33d   : > { %3929 = vmatprep.subr.bf16.mxu0 %v5705_v1 }
 0x340   : > { %3930 = vmatpush1.bf16.msra.mxu0 %v5703_v28 }
 0x341   : > { %3931 = vmatprep.subr.bf16.mxu0 %v5708_v50 }
 0x344   : > { %3932 = vmatpush1.bf16.msra.mxu0 %v5706_v21 }
 0x345   : > { %3933 = vmatprep.subr.bf16.mxu0 %v5711_v32 }
 0x348   : > { %3934 = vmatpush1.bf16.msra.mxu0 %v5709_v10 }
 0x349   : > { %3935 = vmatprep.subr.bf16.mxu0 %v5714_v0 }
 0x34c   : > { %3936 = vmatpush1.bf16.msra.mxu0 %v5712_v15 }
 0x34d   : > { %3937 = vmatprep.subr.bf16.mxu0 %v5717_v51 }
 0x350   : > { %3938 = vmatpush1.bf16.msra.mxu0 %v5715_v37 }
 0x351   : > { %3939 = vmatprep.subr.bf16.mxu0 %v5720_v25 }
 0x354   : > { %3940 = vmatpush1.bf16.msra.mxu0 %v5718_v43 }
 0x355   : > { %3941 = vmatprep.subr.bf16.mxu0 %v5723_v57 }
 0x358   : > { %3942 = vmatpush1.bf16.msra.mxu0 %v5721_v47 }
 0x359   : > { %3943 = vmatprep.subr.bf16.mxu0 %v5726_v4 }
 0x35c   : > { %3944 = vmatpush1.bf16.msra.mxu0 %v5724_v36 }
 0x35d   : > { %3945 = vmatprep.subr.bf16.mxu0 %v5729_v22 }
 0x360   : > { %3946 = vmatpush1.bf16.msra.mxu0 %v5727_v52 }
 0x361   : > { %3947 = vmatprep.subr.bf16.mxu0 %v5732_v49 }
 0x364   : > { %3948 = vmatpush1.bf16.msra.mxu0 %v5730_v26 }
 0x365   : > { %3949 = vmatprep.subr.bf16.mxu0 %v5735_v24 }
 0x368   : > { %3950 = vmatpush1.bf16.msra.mxu0 %v5733_v45 }
 0x369   : > { %3951 = vmatprep.subr.bf16.mxu0 %v5738_v11 }
 0x36c   : > { %3952 = vmatpush1.bf16.msra.mxu0 %v5736_v46 }
 0x36f   : > { %3954 = vmatmul.mubr.bf16.vlgmr.msra.gmra.mrb[8].mxu0 %v2972_v39 }
 0x370   : > { %3963 = vmatprep.mubr.bf16.mxu0 %v2981_v53 }
 0x377   : > { %3964 = vmatmul.mubr.bf16.gmra.mrb[12].mxu0 %v2980_v13 }
 0x3bf   : > { %v3796_v54 = vpop.f32.mrb[24].mxu1 }
 0x3c0   : > { %v3798_v63 = vpop.f32.mrb[25].mxu1  ;;  %v3797_v13 = vadd.f32 %v3796_v54, %v3115_v3 }
 0x3c1   : > { %v3800_v41 = vpop.f32.mrb[26].mxu1  ;;  %v3799_v31 = vadd.f32 %v3798_v63, %v3119_v59 }
 0x3c2   : > { %v3802_v16 = vpop.f32.mrb[27].mxu1  ;;  %v3801_v23 = vadd.f32 %v3800_v41, %v3115_v3 }
 0x3c3   : > { %v3803_v58 = vadd.f32 %v3802_v16, %v3119_v59 }
 0x3df   : > { %v3806_v38 = vpop.f32.mrb[28].mxu1 }
 0x3e0   : > { %v3807_v39 = vadd.f32 %v3806_v38, %v3115_v3  ;;  %v3808_v60 = vpop.f32.mrb[29].mxu1 }
 0x3e1   : > { %v3809_v17 = vadd.f32 %v3808_v60, %v3119_v59  ;;  %v3810_v53 = vpop.f32.mrb[30].mxu1 }
 0x3e2   : > { %v3811_v2 = vadd.f32 %v3810_v53, %v3115_v3  ;;  %v3812_v56 = vpop.f32.mrb[31].mxu1 }
 0x3e3   : > { %v3813_v8 = vadd.f32 %v3812_v56, %v3119_v59 }
 0x442   : > { %v3955_v62 = vpop.f32.mrb[8].mxu0 }
 0x443   : > { %v5408_v20 = vadd.f32 %v3955_v62, %v3797_v13  ;;  %v3957_v7 = vpop.f32.mrb[9].mxu0 }
 0x444   : > { %v5410_v48 = vadd.f32 %v3957_v7, %v3799_v31  ;;  %v3959_v55 = vpop.f32.mrb[10].mxu0 }
 0x445   : > { %v3982_v42 = vmul.f32 0.044715, %v5408_v20  ;;  %v5412_v30 = vadd.f32 %v3959_v55, %v3801_v23  ;;  %v3961_v5 = vpop.f32.mrb[11].mxu0  ;;  %v3974_v24 = vmul.f32 0.5, %v5408_v20 }
 0x446   : > { %v3983_v27 = vmul.f32 0.044715, %v5410_v48  ;;  %v5414_v19 = vadd.f32 %v3961_v5, %v3803_v58  ;;  %v3975_v46 = vmul.f32 0.5, %v5410_v48 }
 0x447   : > { %v3990_v61 = vmul.f32 %v5408_v20, %v3982_v42  ;;  %v3984_v9 = vmul.f32 0.044715, %v5412_v30  ;;  %v3976_v3 = vmul.f32 0.5, %v5412_v30 }
 0x448   : > { %v3991_v34 = vmul.f32 %v5410_v48, %v3983_v27  ;;  %v3985_v35 = vmul.f32 0.044715, %v5414_v19 }
 0x449   : > { %v3998_v29 = vmul.f32 %v5408_v20, %v3990_v61  ;;  %v3992_v6 = vmul.f32 %v5412_v30, %v3984_v9 }
 0x44a   : > { %v3999_v33 = vmul.f32 %v5410_v48, %v3991_v34  ;;  %v3993_v44 = vmul.f32 %v5414_v19, %v3985_v35  ;;  %v3965_v1 = vpop.f32.mrb[12].mxu0 }
 0x44b   : > { %v4006_v28 = vadd.f32 %v5408_v20, %v3998_v29  ;;  %v4000_v50 = vmul.f32 %v5412_v30, %v3992_v6  ;;  %v7550_v21 = vadd.f32 %v3965_v1, %v3807_v39  ;;  %v3967_v32 = vpop.f32.mrb[13].mxu0  ;;  %v3977_v39 = vmul.f32 0.5, %v5414_v19 }
 0x44c   : > { %v4007_v10 = vadd.f32 %v5410_v48, %v3999_v33  ;;  %v4001_v0 = vmul.f32 %v5414_v19, %v3993_v44  ;;  %v7552_v15 = vadd.f32 %v3967_v32, %v3809_v17  ;;  %v3969_v51 = vpop.f32.mrb[14].mxu0 }
 0x44d   : > { %v4008_v37 = vadd.f32 %v5412_v30, %v4000_v50  ;;  %v7554_v25 = vadd.f32 %v3969_v51, %v3811_v2  ;;  %v3971_v43 = vpop.f32.mrb[15].mxu0  ;;  %v4014_v57 = vmul.f32 0.7978846, %v4006_v28  ;;  %v3986_v1 = vmul.f32 0.044715, %v7550_v21 }
 0x44e   : > { %v4009_v47 = vadd.f32 %v5414_v19, %v4001_v0  ;;  %v7556_v4 = vadd.f32 %v3971_v43, %v3813_v8  ;;  %v4015_v36 = vmul.f32 0.7978846, %v4007_v10  ;;  %v3987_v32 = vmul.f32 0.044715, %v7552_v15 }
 0x44f   : > { %5851 = vtanh.f32 %v4014_v57  ;;  %v4016_v22 = vmul.f32 0.7978846, %v4008_v37  ;;  %v3988_v31 = vmul.f32 0.044715, %v7554_v25  ;;  %v3980_v35 = vmul.f32 0.5, %v7554_v25 }
 0x450   : > { %5853 = vtanh.f32 %v4015_v36  ;;  %v4017_v52 = vmul.f32 0.7978846, %v4009_v47  ;;  %v3989_v23 = vmul.f32 0.044715, %v7556_v4  ;;  %v3981_v33 = vmul.f32 0.5, %v7556_v4 }
 0x451   : > { %5855 = vtanh.f32 %v4016_v22  ;;  %v3996_v62 = vmul.f32 %v7554_v25, %v3988_v31  ;;  %v3994_v50 = vmul.f32 %v7550_v21, %v3986_v1  ;;  %v3995_v51 = vmul.f32 %v7552_v15, %v3987_v32 }
 0x452   : > { %5857 = vtanh.f32 %v4017_v52  ;;  %v3997_v7 = vmul.f32 %v7556_v4, %v3989_v23 }
 0x453   : > { %v4004_v20 = vmul.f32 %v7554_v25, %v3996_v62  ;;  %v4002_v0 = vmul.f32 %v7550_v21, %v3994_v50  ;;  %v4003_v43 = vmul.f32 %v7552_v15, %v3995_v51 }
 0x454   : > { %v4005_v48 = vmul.f32 %v7556_v4, %v3997_v7 }
 0x455   : > { %v4012_v58 = vadd.f32 %v7554_v25, %v4004_v20  ;;  %v4010_v25 = vadd.f32 %v7550_v21, %v4002_v0  ;;  %v4011_v47 = vadd.f32 %v7552_v15, %v4003_v43 }
 0x456   : > { %v4013_v55 = vadd.f32 %v7556_v4, %v4005_v48 }
 0x457   : > { %v4020_v42 = vmul.f32 0.7978846, %v4012_v58  ;;  %v4018_v36 = vmul.f32 0.7978846, %v4010_v25  ;;  %v4019_v22 = vmul.f32 0.7978846, %v4011_v47 }
 0x458   : > { %v4021_v27 = vmul.f32 0.7978846, %v4013_v55 }
 0x459   : > { %v5852_v49 = vpop.eup %5851  ;;  %5859 = vtanh.f32 %v4020_v42 }
 0x45a   : > { %v5854_v26 = vpop.eup %5853  ;;  %v4030_v45 = vadd.f32 1.0, %v5852_v49  ;;  %5861 = vtanh.f32 %v4021_v27 }
 0x45b   : > { %v5856_v11 = vpop.eup %5855  ;;  %v4031_v54 = vadd.f32 1.0, %v5854_v26  ;;  %5863 = vtanh.f32 %v4018_v36 }
 0x45c   : > { %v7558_v63 = vmul.f32 %v4030_v45, %v3974_v24  ;;  %v4032_v16 = vadd.f32 1.0, %v5856_v11  ;;  %v5858_v18 = vpop.eup %5857  ;;  %5865 = vtanh.f32 %v4019_v22  ;;  %v3978_v24 = vmul.f32 0.5, %v7550_v21 }
 0x45d   : > { %v7560_v41 = vmul.f32 %v4031_v54, %v3975_v46  ;;  %v4033_v38 = vadd.f32 1.0, %v5858_v18  ;;  %v3979_v46 = vmul.f32 0.5, %v7552_v15 }
 0x45e   : > { %4182 = vrot.lane.b32.xlu0 %v7558_v63, %s6163_s13  ;;  %v7566_v59 = vmul.f32 %v4032_v16, %v3976_v3  ;;  %v4049_v17 = vsel %vm4048_vm0, %v7558_v63, 0.0  ;;  %v4085_v2 = vmul.f32 %v7558_v63, %v7558_v63 }
 0x45f   : > { %4470 = vrot.lane.b32.xlu1 %v7560_v41, %s6163_s13  ;;  %v7570_v60 = vmul.f32 %v4033_v38, %v3977_v39  ;;  %v4336_v13 = vsel %vm4048_vm0, %v7560_v41, 0.0  ;;  %v4372_v5 = vmul.f32 %v7560_v41, %v7560_v41 }
 0x460   : > { %v4052_v53 = vsel %vm4048_vm0, %v7566_v59, 0.0  ;;  %v4086_v56 = vmul.f32 %v7566_v59, %v7566_v59  ;;  %v4089_v37 = vsel %vm4048_vm0, %v4085_v2, 0.0 }
 0x461   : > { %v4373_v8 = vmul.f32 %v7570_v60, %v7570_v60  ;;  %v4339_v57 = vsel %vm4048_vm0, %v7570_v60, 0.0  ;;  %v4376_v4 = vsel %vm4048_vm0, %v4372_v5, 0.0 }
 0x462   : > { %v4092_v30 = vsel %vm4048_vm0, %v4086_v56, 0.0 }
 0x463   : > { %4184 = vrot.lane.b32.xlu1 %v7566_v59, %s6163_s13  ;;  %v4379_v19 = vsel %vm4048_vm0, %v4373_v8, 0.0  ;;  %v5860_v61 = vpop.eup %5859 }
 0x464   : > { %v4036_v9 = vadd.f32 1.0, %v5860_v61  ;;  %v5862_v34 = vpop.eup %5861 }
 0x465   : > { %v4037_v6 = vadd.f32 1.0, %v5862_v34  ;;  %v5864_v52 = vpop.eup %5863 }
 0x466   : > { %v7603_v29 = vmul.f32 %v4036_v9, %v3980_v35  ;;  %v4034_v49 = vadd.f32 1.0, %v5864_v52  ;;  %v5866_v26 = vpop.eup %5865 }
 0x467   : > { %4472 = vrot.lane.b32.xlu1 %v7570_v60, %s6163_s13  ;;  %v7608_v44 = vmul.f32 %v4037_v6, %v3981_v33  ;;  %v4035_v11 = vadd.f32 1.0, %v5866_v26 }
 0x468   : > { %v4088_v28 = vmul.f32 %v7603_v29, %v7603_v29  ;;  %v7631_v45 = vmul.f32 %v4034_v49, %v3978_v24  ;;  %v4058_v18 = vsel %vm4048_vm0, %v7603_v29, 0.0 }
 0x469   : > { %v4375_v10 = vmul.f32 %v7608_v44, %v7608_v44  ;;  %v7636_v54 = vmul.f32 %v4035_v11, %v3979_v46  ;;  %v4345_v21 = vsel %vm4048_vm0, %v7608_v44, 0.0 }
 0x46a   : > { %v4098_v38 = vsel %vm4048_vm0, %v4088_v28, 0.0  ;;  %v4055_v62 = vsel %vm4048_vm0, %v7631_v45, 0.0  ;;  %v4087_v23 = vmul.f32 %v7631_v45, %v7631_v45 }
 0x46b   : > { %v4385_v39 = vsel %vm4048_vm0, %v4375_v10, 0.0  ;;  %v4374_v20 = vmul.f32 %v7636_v54, %v7636_v54  ;;  %v4342_v43 = vsel %vm4048_vm0, %v7636_v54, 0.0 }
 0x46c   : > { %v4095_v36 = vsel %vm4048_vm0, %v4087_v23, 0.0 }
 0x46d   : > { %v4382_v24 = vsel %vm4048_vm0, %v4374_v20, 0.0 }
 0x47d   : > { %4050 = vadd.xlane.f32.xlu0 %v4049_v17 }
 0x48b   : > { %4053 = vadd.xlane.f32.xlu1 %v4052_v53 }
 0x493   : > { %4234 = vrot.lane.b32.xlu0 %v4085_v2, %s6163_s13 }
 0x49c   : > { %4236 = vrot.lane.b32.xlu1 %v4086_v56, %s6163_s13 }
 0x4a0   : > { %4524 = vrot.lane.b32.xlu1 %v4373_v8, %s6163_s13 }
 0x4b2   : > { %4337 = vadd.xlane.f32.xlu0 %v4336_v13 }
 0x4c4   : > { %4093 = vadd.xlane.f32.xlu1 %v4092_v30 }
 0x4c8   : > { %4380 = vadd.xlane.f32.xlu1 %v4379_v19  ;;  %4522 = vrot.lane.b32.xlu0 %v4372_v5, %s6163_s13 }
 0x4d1   : > { %v7638_v16 = vpop.permute.xlu1 %4470 }
 0x4d5   : > { %v4185_v3 = vpop.permute.xlu1 %4184 }
 0x4d6   : > { %v4197_v53 = vsel %vm4048_vm0, %v4185_v3, 0.0 }
 0x4d9   : > { %4188 = vrot.lane.b32.xlu1 %v7603_v29, %s6163_s13  ;;  %v4473_v15 = vpop.permute.xlu1 %4472 }
 0x4da   : > { %v4485_v56 = vsel %vm4048_vm0, %v4473_v15, 0.0 }
 0x4dd   : > { %4476 = vrot.lane.b32.xlu1 %v7608_v44, %s6163_s13 }
 0x4e1   : > { %4240 = vrot.lane.b32.xlu1 %v4088_v28, %s6163_s13  ;;  %v4183_v28 = vpop.permute.xlu0 %4182 }
 0x4e5   : > { %4528 = vrot.lane.b32.xlu1 %v4375_v10, %s6163_s13 }
 0x4e7   : > { %4090 = vadd.xlane.f32.xlu0 %v4089_v37 }
 0x4eb   : > { %4340 = vadd.xlane.f32.xlu0 %v4339_v57 }
 0x4ef   : > { %4377 = vadd.xlane.f32.xlu0 %v4376_v4 }
 0x505   : > { %4186 = vrot.lane.b32.xlu0 %v7631_v45, %s6163_s13 }
 0x509   : > { %4059 = vadd.xlane.f32.xlu1 %v4058_v18  ;;  %4474 = vrot.lane.b32.xlu0 %v7636_v54, %s6163_s13 }
 0x50a   : > { %v4051_v37 = vpop.xlane.xlu0 %4050 }
 0x50b   : > { %v4061_v4 = vrot.slane %v4051_v37, 4 }
 0x50d   : > { %4346 = vadd.xlane.f32.xlu1 %v4345_v21  ;;  %v4062_v26 = vadd.f32 %v4061_v4, %v4051_v37  ;;  %v4194_v21 = vsel %vm4048_vm0, %v4183_v28, 0.0 }
 0x50e   : > { %v4235_v22 = vpop.permute.xlu0 %4234 }
 0x50f   : > { %v4063_v46 = vrot.slane %v4062_v26, 2 }
 0x511   : > { %4099 = vadd.xlane.f32.xlu1 %v4098_v38  ;;  %v4064_v38 = vadd.f32 %v4063_v46, %v4062_v26 }
 0x515   : > { %4386 = vadd.xlane.f32.xlu1 %v4385_v39 }
 0x518   : > { %v4054_v17 = vpop.xlane.xlu1 %4053 }
 0x519   : > { %4198 = vadd.xlane.f32.xlu1 %v4197_v53  ;;  %v4067_v7 = vrot.slane %v4054_v17, 4 }
 0x51b   : > { %v4068_v58 = vadd.f32 %v4067_v7, %v4054_v17  ;;  %v4482_v17 = vsel %vm4048_vm0, %v7638_v16, 0.0 }
 0x51c   : > { %v4237_v2 = vpop.permute.xlu1 %4236 }
 0x51d   : > { %4486 = vadd.xlane.f32.xlu1 %v4485_v56  ;;  %v4249_v8 = vsel %vm4048_vm0, %v4237_v2, 0.0  ;;  %v4069_v48 = vrot.slane %v4068_v58, 2  ;;  %v4065_v2 = vrot.slane %v4064_v38, 1 }
 0x51f   : > { %v4070_v55 = vadd.f32 %v4069_v48, %v4068_v58 }
 0x520   : > { %v4525_v13 = vpop.permute.xlu1 %4524 }
 0x521   : > { %4250 = vadd.xlane.f32.xlu1 %v4249_v8  ;;  %v4537_v31 = vsel %vm4048_vm0, %v4525_v13, 0.0  ;;  %v4071_v30 = vrot.slane %v4070_v55, 1  ;;  %v4246_v13 = vsel %vm4048_vm0, %v4235_v22, 0.0 }
 0x523   : > { %v4072_v61 = vadd.f32 %v4071_v30, %v4070_v55 }
 0x525   : > { %4538 = vadd.xlane.f32.xlu1 %v4537_v31  ;;  %v7660_v6 = vmul.f32 0.001953125, %v4072_v61 }
 0x527   : > { %v7665_v10 = vmul.f32 %v7660_v6, %v7660_v6 }
 0x528   : > { %4056 = vadd.xlane.f32.xlu0 %v4055_v62 }
 0x53e   : > { %4238 = vrot.lane.b32.xlu0 %v4087_v23, %s6163_s13 }
 0x53f   : > { %v4338_v11 = vpop.xlane.xlu0 %4337 }
 0x540   : > { %v4348_v18 = vrot.slane %v4338_v11, 4 }
 0x542   : > { %4526 = vrot.lane.b32.xlu0 %v4374_v20, %s6163_s13  ;;  %v4349_v15 = vadd.f32 %v4348_v18, %v4338_v11  ;;  %v4066_v20 = vadd.f32 %v4065_v2, %v4064_v38  ;;  %s5378_s13 = sshll.u32 %s6248_s23, 9  ;;  %s6164_s23 = smov [#allocation13]  }
 0x543   : > { %v4523_v39 = vpop.permute.xlu0 %4522  ;;  %s7958_s26 = scalar_lea.hbm %s8179_s28, %s5378_s13  ;;  %s6073_s11 = sshll.u32 %s6164_s23, 4  ;;  %s6074_s11 = int_to_ptr.vmem [resolvable:$false] %s6073_s11 }
 0x544   : > { %v4350_v56 = vrot.slane %v4349_v15, 2  ;;  %v4534_v48 = vsel %vm4048_vm0, %v4523_v39, 0.0  ;;  %s6075_s24 = scalar_lea.vmem %s6074_s11, 1024  ;;  %p6076_p13 = scmp.lt.s32.totalorder %s7953_s22, %s6074_s11 }
 0x546   : > { %v4351_v7 = vadd.f32 %v4350_v56, %v4349_v15 }
 0x551   : > { %v4094_v42 = vpop.xlane.xlu1 %4093 }
 0x552   : > { %v4107_v5 = vrot.slane %v4094_v42, 4 }
 0x554   : > { %v4108_v27 = vadd.f32 %v4107_v5, %v4094_v42 }
 0x555   : > { %v4381_v19 = vpop.xlane.xlu1 %4380 }
 0x556   : > { %v4109_v9 = vrot.slane %v4108_v27, 2  ;;  %v4394_v3 = vrot.slane %v4381_v19, 4 }
 0x558   : > { %v4110_v34 = vadd.f32 %v4109_v9, %v4108_v27  ;;  %v4395_v53 = vadd.f32 %v4394_v3, %v4381_v19  ;;  %v7683_v27 = vmul.f32 0.001953125, %v4066_v20  ;;  %v4352_v19 = vrot.slane %v4351_v7, 1 }
 0x559   : > { %v4189_v35 = vpop.permute.xlu1 %4188 }
 0x55a   : > { %v4111_v33 = vrot.slane %v4110_v34, 1  ;;  %v4203_v1 = vsel %vm4048_vm0, %v4189_v35, 0.0  ;;  %v4396_v62 = vrot.slane %v4395_v53, 2 }
 0x55b   : > { %4204 = vadd.xlane.f32.xlu1 %v4203_v1 }
 0x55c   : > { %v4112_v50 = vadd.f32 %v4111_v33, %v4110_v34  ;;  %v4397_v16 = vadd.f32 %v4396_v62, %v4395_v53 }
 0x55d   : > { %v4477_v32 = vpop.permute.xlu1 %4476 }
 0x55e   : > { %v7667_v0 = vmul.f32 0.001953125, %v4112_v50  ;;  %v4491_v51 = vsel %vm4048_vm0, %v4477_v32, 0.0  ;;  %v4398_v33 = vrot.slane %v4397_v16, 1  ;;  %v7687_v32 = vmul.f32 %v7683_v27, %v7683_v27 }
 0x55f   : > { %4492 = vadd.xlane.f32.xlu1 %v4491_v51  ;;  %v4353_v51 = vadd.f32 %v4352_v19, %v4351_v7  ;;  %v5740_v19 = vld [vmem:[#allocation11] sm:$0xff]  }
 0x560   : > { %v4139_v25 = vsub.f32 %v7667_v0, %v7665_v10 }
 0x561   : > { %v4241_v57 = vpop.permute.xlu1 %4240  ;;  %4343 = vadd.xlane.f32.xlu0 %v4342_v43 }
 0x562   : > { %v4255_v47 = vsel %vm4048_vm0, %v4241_v57, 0.0 }
 0x563   : > { %4256 = vadd.xlane.f32.xlu1 %v4255_v47 }
 0x565   : > { %v4529_v52 = vpop.permute.xlu1 %4528  ;;  %4096 = vadd.xlane.f32.xlu0 %v4095_v36  ;;  %v4399_v36 = vadd.f32 %v4398_v33, %v4397_v16 }
 0x566   : > { %v4543_v49 = vsel %vm4048_vm0, %v4529_v52, 0.0 }
 0x567   : > { %4544 = vadd.xlane.f32.xlu1 %v4543_v49 }
 0x569   : > { %4383 = vadd.xlane.f32.xlu0 %v4382_v24  ;;  %v7694_v24 = vmul.f32 0.001953125, %v4353_v51 }
 0x56b   : > { %v7707_v15 = vmul.f32 %v7694_v24, %v7694_v24 }
 0x56d   : > { %4195 = vadd.xlane.f32.xlu0 %v4194_v21  ;;  %v7699_v21 = vmul.f32 0.001953125, %v4399_v36 }
 0x571   : > { %4483 = vadd.xlane.f32.xlu0 %v4482_v17 }
 0x574   : > { %v4091_v8 = vpop.xlane.xlu0 %4090 }
 0x575   : > { %v4101_v31 = vrot.slane %v4091_v8, 4  ;;  %4247 = vadd.xlane.f32.xlu0 %v4246_v13 }
 0x577   : > { %v4102_v23 = vadd.f32 %v4101_v31, %v4091_v8 }
 0x578   : > { %v4341_v58 = vpop.xlane.xlu0 %4340 }
 0x579   : > { %v4103_v55 = vrot.slane %v4102_v23, 2  ;;  %v4354_v42 = vrot.slane %v4341_v58, 4  ;;  %4535 = vadd.xlane.f32.xlu0 %v4534_v48 }
 0x57b   : > { %v4104_v30 = vadd.f32 %v4103_v55, %v4102_v23  ;;  %v4355_v5 = vadd.f32 %v4354_v42, %v4341_v58 }
 0x57c   : > { %v4378_v61 = vpop.xlane.xlu0 %4377 }
 0x57d   : > { %v4105_v9 = vrot.slane %v4104_v30, 1  ;;  %v4356_v34 = vrot.slane %v4355_v5, 2  ;;  %v4388_v35 = vrot.slane %v4378_v61, 4 }
 0x57f   : > { %v4106_v1 = vadd.f32 %v4105_v9, %v4104_v30  ;;  %v4357_v28 = vadd.f32 %v4356_v34, %v4355_v5  ;;  %v4389_v50 = vadd.f32 %v4388_v35, %v4378_v61  ;;  %v5739_v5 = vld [vmem:[#allocation11 + $0x40] sm:$0xff]   ;;  %v5741_v61 = vld [vmem:[#allocation11 + $0x48] sm:$0xff]  }
 0x580   : > { %v4187_v37 = vpop.permute.xlu0 %4186  ;;  %5379 = vmatprep.subr.bf16.mxu1 %v5739_v5 }
 0x581   : > { %v7689_v43 = vmul.f32 0.001953125, %v4106_v1  ;;  %v4358_v57 = vrot.slane %v4357_v28, 1  ;;  %v4390_v47 = vrot.slane %v4389_v50, 2  ;;  %v4200_v4 = vsel %vm4048_vm0, %v4187_v37, 0.0  ;;  %5380 = vmatpush3.bf16.msra.mxu1 %v5740_v19  ;;  %v5743_v37 = vld [vmem:[#allocation11 + $0x50] sm:$0xff]  }
 0x582   : > { %4201 = vadd.xlane.f32.xlu0 %v4200_v4  ;;  %5381 = vmatprep.subr.bf16.mxu1 %v5741_v61 }
 0x583   : > { %v4138_v22 = vsub.f32 %v7689_v43, %v7687_v32  ;;  %v4359_v52 = vadd.f32 %v4358_v57, %v4357_v28  ;;  %v4391_v49 = vadd.f32 %v4390_v47, %v4389_v50  ;;  %v5742_v28 = vld [vmem:[#allocation11 + $0x8] sm:$0xff]  }
 0x584   : > { %v4475_v26 = vpop.permute.xlu0 %4474 }
 0x585   : > { %v7696_v11 = vmul.f32 0.001953125, %v4359_v52  ;;  %v4392_v46 = vrot.slane %v4391_v49, 1  ;;  %v4488_v18 = vsel %vm4048_vm0, %v4475_v26, 0.0  ;;  %5382 = vmatpush3.bf16.msra.mxu1 %v5742_v28 }
 0x586   : > { %4489 = vadd.xlane.f32.xlu0 %v4488_v18  ;;  %5383 = vmatprep.subr.bf16.mxu1 %v5743_v37 }
 0x587   : > { %v7703_v3 = vmul.f32 %v7696_v11, %v7696_v11  ;;  %v4393_v38 = vadd.f32 %v4392_v46, %v4391_v49  ;;  %v5744_v46 = vld [vmem:[#allocation11 + $0x10] sm:$0xff]  }
 0x589   : > { %v4425_v39 = vsub.f32 %v7699_v21, %v7703_v3  ;;  %v7711_v17 = vmul.f32 0.001953125, %v4393_v38  ;;  %5384 = vmatpush3.bf16.msra.mxu1 %v5744_v46  ;;  %v5751_v46 = vld [vmem:[#allocation11 + $0x70] sm:$0xff]  }
 0x58b   : > { %v4424_v53 = vsub.f32 %v7711_v17, %v7707_v15  ;;  %v4429_v10 = vmax.f32 %v4425_v39, 0.0  ;;  %v8176_v39 = vlaneseq }
 0x58d   : > { %v4428_v32 = vmax.f32 %v4424_v53, 0.0 }
 0x596   : > { %v4060_v2 = vpop.xlane.xlu1 %4059 }
 0x597   : > { %v4079_v56 = vrot.slane %v4060_v2, 4 }
 0x599   : > { %v4080_v8 = vadd.f32 %v4079_v56, %v4060_v2  ;;  %v5745_v2 = vld [vmem:[#allocation11 + $0x58] sm:$0xff]  }
 0x59a   : > { %v4347_v13 = vpop.xlane.xlu1 %4346  ;;  %5385 = vmatprep.subr.bf16.mxu1 %v5745_v2  ;;  %v4143_v2 = vmax.f32 %v4139_v25, 0.0 }
 0x59b   : > { %v4081_v31 = vrot.slane %v4080_v8, 2  ;;  %v4366_v62 = vrot.slane %v4347_v13, 4 }
 0x59d   : > { %v4082_v23 = vadd.f32 %v4081_v31, %v4080_v8  ;;  %v4367_v20 = vadd.f32 %v4366_v62, %v4347_v13 }
 0x59e   : > { %v4100_v7 = vpop.xlane.xlu1 %4099 }
 0x59f   : > { %v4083_v58 = vrot.slane %v4082_v23, 1  ;;  %v4368_v48 = vrot.slane %v4367_v20, 2  ;;  %v4119_v55 = vrot.slane %v4100_v7, 4 }
 0x5a1   : > { %v4369_v42 = vadd.f32 %v4368_v48, %v4367_v20  ;;  %v4120_v16 = vadd.f32 %v4119_v55, %v4100_v7  ;;  %v4084_v9 = vadd.f32 %v4083_v58, %v4082_v23  ;;  %v5746_v48 = vld [vmem:[#allocation11 + $0x18] sm:$0xff]  }
 0x5a2   : > { %v4387_v30 = vpop.xlane.xlu1 %4386  ;;  %5386 = vmatpush3.bf16.msra.mxu1 %v5746_v48 }
 0x5a3   : > { %v4121_v34 = vrot.slane %v4120_v16, 2  ;;  %v4406_v35 = vrot.slane %v4387_v30, 4  ;;  %v4370_v33 = vrot.slane %v4369_v42, 1  ;;  %v7715_v57 = vmul.f32 0.001953125, %v4084_v9 }
 0x5a5   : > { %v4122_v1 = vadd.f32 %v4121_v34, %v4120_v16  ;;  %v4407_v50 = vadd.f32 %v4406_v35, %v4387_v30  ;;  %v4371_v36 = vadd.f32 %v4370_v33, %v4369_v42  ;;  %v7719_v56 = vmul.f32 %v7715_v57, %v7715_v57  ;;  %v5747_v16 = vld [vmem:[#allocation11 + $0x60] sm:$0xff]  }
 0x5a6   : > { %v4199_v51 = vpop.xlane.xlu1 %4198  ;;  %v5748_v33 = vld [vmem:[#allocation11 + $0x20] sm:$0xff]   ;;  %5387 = vmatprep.subr.bf16.mxu1 %v5747_v16 }
 0x5a7   : > { %v4123_v47 = vrot.slane %v4122_v1, 1  ;;  %v4212_v4 = vrot.slane %v4199_v51, 4  ;;  %v4408_v52 = vrot.slane %v4407_v50, 2  ;;  %v7723_v62 = vmul.f32 0.001953125, %v4371_v36  ;;  %5388 = vmatpush3.bf16.msra.mxu1 %v5748_v33 }
 0x5a9   : > { %v4124_v49 = vadd.f32 %v4123_v47, %v4122_v1  ;;  %v4213_v26 = vadd.f32 %v4212_v4, %v4199_v51  ;;  %v4409_v18 = vadd.f32 %v4408_v52, %v4407_v50  ;;  %v7729_v61 = vmul.f32 %v7723_v62, %v7723_v62  ;;  %v5749_v50 = vld [vmem:[#allocation11 + $0x68] sm:$0xff]  }
 0x5aa   : > { %v4487_v38 = vpop.xlane.xlu1 %4486  ;;  %5389 = vmatprep.subr.bf16.mxu1 %v5749_v50 }
 0x5ab   : > { %v7721_v8 = vmul.f32 0.001953125, %v4124_v49  ;;  %v4214_v13 = vrot.slane %v4213_v26, 2  ;;  %v4500_v31 = vrot.slane %v4487_v38, 4  ;;  %v4410_v23 = vrot.slane %v4409_v18, 1  ;;  %v5750_v49 = vld [vmem:[#allocation11 + $0x28] sm:$0xff]  }
 0x5ac   : > { %5390 = vmatpush3.bf16.msra.mxu1 %v5750_v49  ;;  %v7746_v49 = vand.u32 127, %v8176_v39 }
 0x5ad   : > { %v4141_v20 = vsub.f32 %v7721_v8, %v7719_v56  ;;  %v4215_v7 = vadd.f32 %v4214_v13, %v4213_v26  ;;  %v4501_v58 = vadd.f32 %v4500_v31, %v4487_v38  ;;  %v4411_v55 = vadd.f32 %v4410_v23, %v4409_v18  ;;  %5391 = vmatprep.subr.bf16.mxu1 %v5751_v46 }
 0x5ae   : > { %v4251_v42 = vpop.xlane.xlu1 %4250  ;;  %vm4154_vm1 = vcmp.lt.s32.totalorder %v7746_v49, 64  ;;  %vm4310_vm2 = vcmp.ge.s32.totalorder %v7746_v49, 64 }
 0x5af   : > { %v4216_v30 = vrot.slane %v4215_v7, 1  ;;  %v4502_v5 = vrot.slane %v4501_v58, 2  ;;  %v4264_v19 = vrot.slane %v4251_v42, 4  ;;  %v7731_v9 = vmul.f32 0.001953125, %v4411_v55 }
 0x5b1   : > { %v4503_v34 = vadd.f32 %v4502_v5, %v4501_v58  ;;  %v4265_v35 = vadd.f32 %v4264_v19, %v4251_v42  ;;  %v4427_v1 = vsub.f32 %v7731_v9, %v7729_v61  ;;  %v4217_v51 = vadd.f32 %v4216_v30, %v4215_v7  ;;  %v5752_v58 = vld [vmem:[#allocation11 + $0x30] sm:$0xff]   ;;  %v5753_v42 = vld [vmem:[#allocation11 + $0x78] sm:$0xff]  }
 0x5b2   : > { %v4539_v28 = vpop.xlane.xlu1 %4538  ;;  %v4147_v5 = vadd.f32 1e-05, %v4143_v2  ;;  %5392 = vmatpush3.bf16.msra.mxu1 %v5752_v58  ;;  %v4172_v58 = vsel %vm4154_vm1, %v7660_v6, 0.0 }
 0x5b3   : > { %v4266_v37 = vrot.slane %v4265_v35, 2  ;;  %v4504_v47 = vrot.slane %v4503_v34, 1  ;;  %v4552_v4 = vrot.slane %v4539_v28, 4  ;;  %v4283_v18 = vmul.f32 0.001953125, %v4217_v51  ;;  %5393 = vmatprep.subr.bf16.mxu1 %v5753_v42 }
 0x5b4   : > { %5867 = vrsqrt.f32 %v4147_v5 }
 0x5b5   : > { %v4267_v36 = vadd.f32 %v4266_v37, %v4265_v35  ;;  %v7735_v52 = vpop.xlane.xlu0 %4056  ;;  %v4553_v26 = vadd.f32 %v4552_v4, %v4539_v28  ;;  %v4505_v13 = vadd.f32 %v4504_v47, %v4503_v34  ;;  %v4291_v16 = vmul.f32 %v4283_v18, %v4283_v18  ;;  %v5754_v34 = vld [vmem:[#allocation11 + $0x38] sm:$0xff]  }
 0x5b6   : > { %v4433_v47 = vadd.f32 1e-05, %v4429_v10  ;;  %5394 = vmatpush3.bf16.msra.mxu1 %v5754_v34 }
 0x5b7   : > { %v4268_v38 = vrot.slane %v4267_v36, 1  ;;  %v4554_v31 = vrot.slane %v4553_v26, 2  ;;  %v4571_v19 = vmul.f32 0.001953125, %v4505_v13  ;;  %v7756_v13 = vadd.s32 128, %v7746_v49 }
 0x5b9   : > { %v4269_v23 = vadd.f32 %v4268_v38, %v4267_v36  ;;  %v4239_v7 = vpop.permute.xlu0 %4238  ;;  %v4555_v48 = vadd.f32 %v4554_v31, %v4553_v26  ;;  %v4579_v51 = vmul.f32 %v4571_v19, %v4571_v19  ;;  %v4046_v26 = vld [vmem:[%s8009_s7] sm:$0x3]  ;;  %vm4443_vm3 = vcmp.lt.s32.totalorder %v7756_v13, 192 }
 0x5ba   : > { %v4252_v55 = vsel %vm4048_vm0, %v4239_v7, 0.0  ;;  %v7752_v38 = vrot.slane %v4046_v26, %v6516_v12  ;;  %v7770_v42 = vrot.slane %v4046_v26, %v6521_v14  ;;  %vm4599_vm4 = vcmp.ge.s32.totalorder %v7756_v13, 192 }
 0x5bb   : > { %v4287_v30 = vmul.f32 0.001953125, %v4269_v23  ;;  %4253 = vadd.xlane.f32.xlu0 %v4252_v55  ;;  %v4556_v35 = vrot.slane %v4555_v48, 1  ;;  %v4330_v55 = vsel %vm4310_vm2, %v4283_v18, %v4172_v58 }
 0x5bd   : > { %v4295_v0 = vsub.f32 %v4287_v30, %v4291_v16  ;;  %v4527_v25 = vpop.permute.xlu0 %4526  ;;  %v4557_v33 = vadd.f32 %v4556_v35, %v4555_v48  ;;  %v4461_v35 = vsel %vm4443_vm3, %v7696_v11, 0.0 }
 0x5be   : > { %v4540_v28 = vsel %vm4048_vm0, %v4527_v25, 0.0  ;;  %v5868_v46 = vpop.eup %5867  ;;  %v4617_v10 = vsel %vm4599_vm4, %v4571_v19, %v4461_v35 }
 0x5bf   : > { %v4299_v50 = vmax.f32 %v4295_v0, 0.0  ;;  %4541 = vadd.xlane.f32.xlu0 %v4540_v28  ;;  %v4575_v37 = vmul.f32 0.001953125, %v4557_v33  ;;  %v4164_v31 = vsel %vm4154_vm1, %v5868_v46, 0.0  ;;  %v7788_v33 = vld [vmem:[%s8177_s8] sm:$0x3]  ;;  %s6069_s8 = scalar_lea.vmem %s7953_s22, 512 }
 0x5c0   : > { %p6070_p7 = scmp.ne.s32.totalorder %s7953_s22, %s6069_s8  ;;  %p6077_p0 = scmp.lt.s32.totalorder %s6075_s24, %s6069_s8 }
 0x5c1   : > { %v4303_v4 = vadd.f32 1e-05, %v4299_v50  ;;  %v4583_v36 = vsub.f32 %v4575_v37, %v4579_v51 }
 0x5c2   : > { %p6071_p12 = pnand %p6070_p7, %p8180_p4  ;;  %p6078_p2 = por %p6077_p0, %p6076_p13 }
 0x5c3   : > { %5869 = vrsqrt.f32 %v4303_v4  ;;  %v4587_v21 = vmax.f32 %v4583_v36, 0.0 }
 0x5c4   : > { %5871 = vrsqrt.f32 %v4433_v47  ;;  %p6072_p1 = pneg %p6071_p12 }
 0x5c5   : > { %v4591_v3 = vadd.f32 1e-05, %v4587_v21 }
 0x5c6   : > { %p6079_p8 = pnand %p6078_p2, %p6072_p1 }
 0x5c7   : > { %5873 = vrsqrt.f32 %v4591_v3  ;;  %v4073_v3 = vrot.slane %v7735_v52, 4 }
 0x5c9   : > { %v4074_v39 = vadd.f32 %v4073_v3, %v7735_v52 }
 0x5cd   : > { %v5870_v2 = vpop.eup %5869 }
 0x5ce   : > { %v4322_v23 = vsel %vm4310_vm2, %v5870_v2, %v4164_v31  ;;  %v5872_v7 = vpop.eup %5871  ;;  %v4075_v2 = vrot.slane %v4074_v39, 2 }
 0x5cf   : > { %v4635_v48 = vmul.f32 %v7752_v38, %v4322_v23  ;;  %v4453_v5 = vsel %vm4443_vm3, %v5872_v7, 0.0 }
 0x5d1   : > { %v4643_v16 = vmul.f32 %v4635_v48, %v4330_v55  ;;  %v5874_v30 = vpop.eup %5873  ;;  %v4736_v11 = vrot.slane %v4635_v48, %v6516_v12  ;;  %v4076_v48 = vadd.f32 %v4075_v2, %v4074_v39  ;;  %v4145_v39 = vmax.f32 %v4141_v20, 0.0 }
 0x5d2   : > { %v4609_v6 = vsel %vm4599_vm4, %v5874_v30, %v4453_v5 }
 0x5d3   : > { %v4636_v18 = vmul.f32 %v7770_v42, %v4609_v6  ;;  %v4759_v4 = vmul.f32 %v4736_v11, %v7566_v59 }
 0x5d5   : > { %v4644_v0 = vmul.f32 %v4636_v18, %v4617_v10  ;;  %v4740_v50 = vrot.slane %v4636_v18, %v6516_v12 }
 0x5d7   : > { %v4672_v25 = vcombine.low %v4643_v16, %v4644_v0  ;;  %v4760_v37 = vmul.f32 %v4740_v50, %v7570_v60  ;;  %v4077_v0 = vrot.slane %v4076_v48, 1 }
 0x5d9   : > { %v4679_v34 = vrot.slane %v4672_v25, %v7065_v40 }
 0x5db   : > { %v4686_v28 = vrot.slane %v4679_v34, %v7065_v40 }
 0x5dd   : > { %v4722_v51 = vsub.f32 %v7788_v33, %v4686_v28 }
 0x5df   : > { %v4780_v19 = vrot.slane %v4722_v51, %v6516_v12  ;;  %v4784_v47 = vrot.slane %v4722_v51, %v6521_v14 }
 0x5e1   : > { %v7798_v36 = vadd.f32 %v4784_v47, %v4760_v37  ;;  %v7800_v21 = vadd.f32 %v4780_v19, %v4759_v4 }
 0x5e8   : > { %v4205_v26 = vpop.xlane.xlu1 %4204 }
 0x5e9   : > { %v4224_v46 = vrot.slane %v4205_v26, 4 }
 0x5eb   : > { %v4225_v31 = vadd.f32 %v4224_v46, %v4205_v26  ;;  %v4078_v26 = vadd.f32 %v4077_v0, %v4076_v48  ;;  %v4431_v0 = vmax.f32 %v4427_v1, 0.0 }
 0x5ec   : > { %v4493_v23 = vpop.xlane.xlu1 %4492 }
 0x5ed   : > { %v4226_v60 = vrot.slane %v4225_v31, 2  ;;  %v4512_v7 = vrot.slane %v4493_v23, 4 }
 0x5ee   : > { %v4344_v58 = vpop.xlane.xlu0 %4343 }
 0x5ef   : > { %v4227_v55 = vadd.f32 %v4226_v60, %v4225_v31  ;;  %v4513_v16 = vadd.f32 %v4512_v7, %v4493_v23  ;;  %v4360_v59 = vrot.slane %v4344_v58, 4 }
 0x5f0   : > { %v4257_v30 = vpop.xlane.xlu1 %4256 }
 0x5f1   : > { %v4228_v5 = vrot.slane %v4227_v55, 1  ;;  %v4514_v6 = vrot.slane %v4513_v16, 2  ;;  %v4361_v35 = vadd.f32 %v4360_v59, %v4344_v58  ;;  %v4276_v18 = vrot.slane %v4257_v30, 4 }
 0x5f2   : > { %v4097_v10 = vpop.xlane.xlu0 %4096 }
 0x5f3   : > { %v4515_v52 = vadd.f32 %v4514_v6, %v4513_v16  ;;  %v4362_v25 = vrot.slane %v4361_v35, 2  ;;  %v4277_v34 = vadd.f32 %v4276_v18, %v4257_v30  ;;  %v4113_v28 = vrot.slane %v4097_v10, 4 }
 0x5f4   : > { %v4545_v50 = vpop.xlane.xlu1 %4544  ;;  %v4229_v11 = vadd.f32 %v4228_v5, %v4227_v55  ;;  %v4149_v6 = vadd.f32 1e-05, %v4145_v39 }
 0x5f5   : > { %v4516_v51 = vrot.slane %v4515_v52, 1  ;;  %v4363_v37 = vadd.f32 %v4362_v25, %v4361_v35  ;;  %v4278_v19 = vrot.slane %v4277_v34, 2  ;;  %v4114_v47 = vadd.f32 %v4113_v28, %v4097_v10 }
 0x5f6   : > { %v4564_v4 = vrot.slane %v4545_v50, 4  ;;  %v4384_v3 = vpop.xlane.xlu0 %4383  ;;  %v7807_v7 = vmul.f32 0.001953125, %v4229_v11  ;;  %v7809_v35 = vmul.f32 0.001953125, %v4078_v26  ;;  %5875 = vrsqrt.f32 %v4149_v6 }
 0x5f7   : > { %v4364_v46 = vrot.slane %v4363_v37, 1  ;;  %v4279_v2 = vadd.f32 %v4278_v19, %v4277_v34  ;;  %v4115_v31 = vrot.slane %v4114_v47, 2  ;;  %v4400_v60 = vrot.slane %v4384_v3, 4 }
 0x5f8   : > { %v4565_v23 = vadd.f32 %v4564_v4, %v4545_v50  ;;  %v4517_v58 = vadd.f32 %v4516_v51, %v4515_v52  ;;  %v4293_v52 = vmul.f32 %v7807_v7, %v7807_v7  ;;  %v7820_v19 = vmul.f32 %v7809_v35, %v7809_v35 }
 0x5f9   : > { %v4280_v55 = vrot.slane %v4279_v2, 1  ;;  %v4116_v16 = vadd.f32 %v4115_v31, %v4114_v47  ;;  %v4401_v30 = vadd.f32 %v4400_v60, %v4384_v3  ;;  %v4365_v18 = vadd.f32 %v4364_v46, %v4363_v37 }
 0x5fa   : > { %v4566_v59 = vrot.slane %v4565_v23, 2  ;;  %v4196_v5 = vpop.xlane.xlu0 %4195  ;;  %v7816_v25 = vmul.f32 0.001953125, %v4517_v58 }
 0x5fb   : > { %v4206_v56 = vrot.slane %v4196_v5, 4  ;;  %v4281_v8 = vadd.f32 %v4280_v55, %v4279_v2  ;;  %v4117_v20 = vrot.slane %v4116_v16, 1  ;;  %v4402_v10 = vrot.slane %v4401_v30, 2 }
 0x5fc   : > { %v4567_v48 = vadd.f32 %v4566_v59, %v4565_v23  ;;  %v7822_v47 = vmul.f32 0.001953125, %v4365_v18  ;;  %v4581_v26 = vmul.f32 %v7816_v25, %v7816_v25 }
 0x5fd   : > { %v4207_v34 = vadd.f32 %v4206_v56, %v4196_v5  ;;  %v4289_v28 = vmul.f32 0.001953125, %v4281_v8  ;;  %v4118_v50 = vadd.f32 %v4117_v20, %v4116_v16  ;;  %v4403_v51 = vadd.f32 %v4402_v10, %v4401_v30 }
 0x5fe   : > { %v4568_v11 = vrot.slane %v4567_v48, 1  ;;  %v4484_v37 = vpop.xlane.xlu0 %4483  ;;  %v4435_v16 = vadd.f32 1e-05, %v4431_v0  ;;  %v7832_v18 = vmul.f32 %v7822_v47, %v7822_v47 }
 0x5ff   : > { %v4208_v4 = vrot.slane %v4207_v34, 2  ;;  %v4494_v61 = vrot.slane %v4484_v37, 4  ;;  %v4297_v9 = vsub.f32 %v4289_v28, %v4293_v52  ;;  %v7824_v1 = vmul.f32 0.001953125, %v4118_v50 }
 0x600   : > { %v4569_v3 = vadd.f32 %v4568_v11, %v4567_v48  ;;  %v4404_v39 = vrot.slane %v4403_v51, 1 }
 0x601   : > { %v4209_v46 = vadd.f32 %v4208_v4, %v4207_v34  ;;  %v4495_v2 = vadd.f32 %v4494_v61, %v4484_v37  ;;  %v4301_v31 = vmax.f32 %v4297_v9, 0.0  ;;  %v4140_v23 = vsub.f32 %v7824_v1, %v7820_v19  ;;  %v5876_v61 = vpop.eup %5875 }
 0x602   : > { %v4577_v60 = vmul.f32 0.001953125, %v4569_v3  ;;  %v4405_v58 = vadd.f32 %v4404_v39, %v4403_v51  ;;  %v4248_v55 = vpop.xlane.xlu0 %4247  ;;  %v4142_v9 = vmax.f32 %v4138_v22, 0.0 }
 0x603   : > { %v4210_v59 = vrot.slane %v4209_v46, 1  ;;  %v4496_v30 = vrot.slane %v4495_v2, 2  ;;  %v4258_v5 = vrot.slane %v4248_v55, 4  ;;  %v4305_v6 = vadd.f32 1e-05, %v4301_v31 }
 0x604   : > { %v4585_v56 = vsub.f32 %v4577_v60, %v4581_v26  ;;  %v7834_v8 = vmul.f32 0.001953125, %v4405_v58  ;;  %v4146_v58 = vadd.f32 1e-05, %v4142_v9 }
 0x605   : > { %v4497_v20 = vadd.f32 %v4496_v30, %v4495_v2  ;;  %v4259_v48 = vadd.f32 %v4258_v5, %v4248_v55  ;;  %5877 = vrsqrt.f32 %v4305_v6  ;;  %v4211_v0 = vadd.f32 %v4210_v59, %v4209_v46 }
 0x606   : > { %v4589_v10 = vmax.f32 %v4585_v56, 0.0  ;;  %v4426_v52 = vsub.f32 %v7834_v8, %v7832_v18  ;;  %v4536_v34 = vpop.xlane.xlu0 %4535  ;;  %5879 = vrsqrt.f32 %v4435_v16  ;;  %v4168_v59 = vsel %vm4154_vm1, %v5876_v61, 0.0 }
 0x607   : > { %v4260_v28 = vrot.slane %v4259_v48, 2  ;;  %v4546_v50 = vrot.slane %v4536_v34, 4  ;;  %v4498_v51 = vrot.slane %v4497_v20, 1  ;;  %v4282_v3 = vmul.f32 0.001953125, %v4211_v0 }
 0x608   : > { %v4593_v11 = vadd.f32 1e-05, %v4589_v10  ;;  %v4176_v56 = vsel %vm4154_vm1, %v7715_v57, 0.0 }
 0x609   : > { %v4261_v37 = vadd.f32 %v4260_v28, %v4259_v48  ;;  %v4547_v4 = vadd.f32 %v4546_v50, %v4536_v34  ;;  %v4499_v26 = vadd.f32 %v4498_v51, %v4497_v20  ;;  %v4290_v46 = vmul.f32 %v4282_v3, %v4282_v3 }
 0x60a   : > { %5881 = vrsqrt.f32 %v4593_v11  ;;  %v4334_v10 = vsel %vm4310_vm2, %v7807_v7, %v4176_v56  ;;  %v4432_v50 = vadd.f32 1e-05, %v4428_v32  ;;  %v4465_v51 = vsel %vm4443_vm3, %v7723_v62, 0.0 }
 0x60b   : > { %v4262_v39 = vrot.slane %v4261_v37, 1  ;;  %v4548_v2 = vrot.slane %v4547_v4, 2  ;;  %v4570_v30 = vmul.f32 0.001953125, %v4499_v26  ;;  %5883 = vrsqrt.f32 %v4146_v58 }
 0x60c   : > { %v4170_v32 = vsel %vm4154_vm1, %v7683_v27, 0.0 }
 0x60d   : > { %v4263_v31 = vadd.f32 %v4262_v39, %v4261_v37  ;;  %v4549_v60 = vadd.f32 %v4548_v2, %v4547_v4  ;;  %v4578_v15 = vmul.f32 %v4570_v30, %v4570_v30  ;;  %v4621_v4 = vsel %vm4599_vm4, %v7816_v25, %v4465_v51 }
 0x60f   : > { %v4286_v55 = vmul.f32 0.001953125, %v4263_v31  ;;  %v5878_v16 = vpop.eup %5877  ;;  %v4550_v5 = vrot.slane %v4549_v60, 1 }
 0x610   : > { %v5880_v6 = vpop.eup %5879  ;;  %v4326_v22 = vsel %vm4310_vm2, %v5878_v16, %v4168_v59 }
 0x611   : > { %v4294_v43 = vsub.f32 %v4286_v55, %v4290_v46  ;;  %v4551_v20 = vadd.f32 %v4550_v5, %v4549_v60  ;;  %v4639_v48 = vmul.f32 %v7752_v38, %v4326_v22  ;;  %v4457_v53 = vsel %vm4443_vm3, %v5880_v6, 0.0 }
 0x613   : > { %v4298_v34 = vmax.f32 %v4294_v43, 0.0  ;;  %v4574_v17 = vmul.f32 0.001953125, %v4551_v20  ;;  %v4647_v28 = vmul.f32 %v4639_v48, %v4334_v10  ;;  %v4752_v58 = vrot.slane %v4639_v48, %v6516_v12 }
 0x614   : > { %v5882_v0 = vpop.eup %5881  ;;  %v4328_v20 = vsel %vm4310_vm2, %v4282_v3, %v4170_v32 }
 0x615   : > { %v4302_v11 = vadd.f32 1e-05, %v4298_v34  ;;  %v4613_v57 = vsel %vm4599_vm4, %v5882_v0, %v4457_v53  ;;  %v4582_v37 = vsub.f32 %v4574_v17, %v4578_v15  ;;  %v5884_v31 = vpop.eup %5883  ;;  %v4763_v22 = vmul.f32 %v4752_v58, %v7603_v29 }
 0x616   : > { %v4640_v7 = vmul.f32 %v7770_v42, %v4613_v57  ;;  %v4162_v25 = vsel %vm4154_vm1, %v5884_v31, 0.0  ;;  %v4459_v29 = vsel %vm4443_vm3, %v7694_v24, 0.0 }
 0x617   : > { %5885 = vrsqrt.f32 %v4302_v11  ;;  %v4586_v61 = vmax.f32 %v4582_v37, 0.0  ;;  %v4615_v3 = vsel %vm4599_vm4, %v4570_v30, %v4459_v29  ;;  %v4202_v37 = vpop.xlane.xlu0 %4201 }
 0x618   : > { %v4648_v9 = vmul.f32 %v4640_v7, %v4621_v4  ;;  %5887 = vrsqrt.f32 %v4432_v50  ;;  %v4756_v62 = vrot.slane %v4640_v7, %v6516_v12 }
 0x619   : > { %v4590_v39 = vadd.f32 1e-05, %v4586_v61 }
 0x61a   : > { %v4702_v26 = vcombine.low %v4647_v28, %v4648_v9  ;;  %v4764_v59 = vmul.f32 %v4756_v62, %v7608_v44 }
 0x61b   : > { %5889 = vrsqrt.f32 %v4590_v39  ;;  %v4490_v31 = vpop.xlane.xlu0 %4489 }
 0x61c   : > { %v4709_v2 = vrot.slane %v4702_v26, %v7065_v40  ;;  %v4506_v62 = vrot.slane %v4490_v31, 4 }
 0x61e   : > { %v4716_v60 = vrot.slane %v4709_v2, %v7065_v40  ;;  %v4218_v2 = vrot.slane %v4202_v37, 4 }
 0x620   : > { %v4724_v46 = vsub.f32 %v7788_v33, %v4716_v60  ;;  %v4219_v60 = vadd.f32 %v4218_v2, %v4202_v37 }
 0x621   : > { %v5886_v55 = vpop.eup %5885 }
 0x622   : > { %v4320_v16 = vsel %vm4310_vm2, %v5886_v55, %v4162_v25  ;;  %v4800_v5 = vrot.slane %v4724_v46, %v6521_v14  ;;  %v5888_v6 = vpop.eup %5887  ;;  %v4796_v56 = vrot.slane %v4724_v46, %v6516_v12  ;;  %v4220_v58 = vrot.slane %v4219_v60, 2 }
 0x623   : > { %v4633_v43 = vmul.f32 %v7752_v38, %v4320_v16  ;;  %v4451_v0 = vsel %vm4443_vm3, %v5888_v6, 0.0 }
 0x624   : > { %v7885_v48 = vadd.f32 %v4800_v5, %v4764_v59  ;;  %v7887_v44 = vadd.f32 %v4796_v56, %v4763_v22  ;;  %v4221_v46 = vadd.f32 %v4220_v58, %v4219_v60 }
 0x625   : > { %v4641_v10 = vmul.f32 %v4633_v43, %v4328_v20  ;;  %v5890_v34 = vpop.eup %5889  ;;  %v4728_v57 = vrot.slane %v4633_v43, %v6516_v12 }
 0x626   : > { %v4607_v27 = vsel %vm4599_vm4, %v5890_v34, %v4451_v0  ;;  %v4222_v16 = vrot.slane %v4221_v46, 1 }
 0x627   : > { %v4634_v15 = vmul.f32 %v7770_v42, %v4607_v27  ;;  %v4757_v30 = vmul.f32 %v4728_v57, %v7558_v63  ;;  %v4144_v27 = vmax.f32 %v4140_v23, 0.0 }
 0x628   : > { %v4223_v32 = vadd.f32 %v4222_v16, %v4221_v46 }
 0x629   : > { %v4642_v17 = vmul.f32 %v4634_v15, %v4615_v3  ;;  %v4732_v11 = vrot.slane %v4634_v15, %v6516_v12 }
 0x62a   : > { %v4284_v20 = vmul.f32 0.001953125, %v4223_v32 }
 0x62b   : > { %v4657_v53 = vcombine.low %v4641_v10, %v4642_v17  ;;  %v4758_v24 = vmul.f32 %v4732_v11, %v7560_v41  ;;  %v4507_v41 = vadd.f32 %v4506_v62, %v4490_v31  ;;  %v4430_v11 = vmax.f32 %v4426_v52, 0.0 }
 0x62c   : > { %v4292_v3 = vmul.f32 %v4284_v20, %v4284_v20 }
 0x62d   : > { %v4664_v28 = vrot.slane %v4657_v53, %v7065_v40  ;;  %v4508_v55 = vrot.slane %v4507_v41, 2 }
 0x62f   : > { %v4671_v50 = vrot.slane %v4664_v28, %v7065_v40  ;;  %v4509_v59 = vadd.f32 %v4508_v55, %v4507_v41  ;;  %v4463_v41 = vsel %vm4443_vm3, %v7822_v47, 0.0 }
 0x631   : > { %v4721_v51 = vsub.f32 %v7788_v33, %v4671_v50  ;;  %v4148_v50 = vadd.f32 1e-05, %v4144_v27 }
 0x633   : > { %v4772_v7 = vrot.slane %v4721_v51, %v6516_v12  ;;  %v4776_v4 = vrot.slane %v4721_v51, %v6521_v14  ;;  %5891 = vrsqrt.f32 %v4148_v50 }
 0x635   : > { %v4810_v61 = vadd.f32 %v4776_v4, %v4758_v24  ;;  %v4809_v9 = vadd.f32 %v4772_v7, %v4757_v30  ;;  %v4434_v4 = vadd.f32 1e-05, %v4430_v11 }
 0x637   : > { %v4818_v39 = vpack.c.bf16 %v7798_v36, %v4810_v61  ;;  %v4817_v26 = vpack.c.bf16 %v7800_v21, %v4809_v9  ;;  %v4510_v36 = vrot.slane %v4509_v59, 1 }
 0x639   : > { %4988 = vmatprep.mubr.bf16.mxu1 %v4818_v39  ;;  %v4511_v10 = vadd.f32 %v4510_v36, %v4509_v59  ;;  %v4174_v39 = vsel %vm4154_vm1, %v7809_v35, 0.0 }
 0x63a   : > { %4989 = vmatmul.mubr.bf16.vlgmr.msra.gmra.mrb[32].mxu1 %v4817_v26  ;;  %v4332_v2 = vsel %vm4310_vm2, %v4284_v20, %v4174_v39 }
 0x63b   : > { %v4572_v17 = vmul.f32 0.001953125, %v4511_v10 }
 0x63d   : > { %v4580_v37 = vmul.f32 %v4572_v17, %v4572_v17  ;;  %v5892_v61 = vpop.eup %5891 }
 0x63e   : > { %v4166_v18 = vsel %vm4154_vm1, %v5892_v61, 0.0 }
 0x648   : > { %v4254_v25 = vpop.xlane.xlu0 %4253 }
 0x649   : > { %v4270_v63 = vrot.slane %v4254_v25, 4 }
 0x64b   : > { %v4271_v5 = vadd.f32 %v4270_v63, %v4254_v25 }
 0x64c   : > { %v4542_v6 = vpop.xlane.xlu0 %4541 }
 0x64d   : > { %v4272_v43 = vrot.slane %v4271_v5, 2  ;;  %v4558_v21 = vrot.slane %v4542_v6, 4 }
 0x64f   : > { %v4273_v22 = vadd.f32 %v4272_v43, %v4271_v5  ;;  %v4559_v56 = vadd.f32 %v4558_v21, %v4542_v6 }
 0x651   : > { %v4274_v34 = vrot.slane %v4273_v22, 1  ;;  %v4560_v0 = vrot.slane %v4559_v56, 2 }
 0x653   : > { %v4275_v29 = vadd.f32 %v4274_v34, %v4273_v22  ;;  %v4561_v15 = vadd.f32 %v4560_v0, %v4559_v56 }
 0x655   : > { %v4288_v53 = vmul.f32 0.001953125, %v4275_v29  ;;  %v4562_v28 = vrot.slane %v4561_v15, 1 }
 0x657   : > { %v4296_v57 = vsub.f32 %v4288_v53, %v4292_v3  ;;  %v4563_v51 = vadd.f32 %v4562_v28, %v4561_v15 }
 0x659   : > { %v4300_v24 = vmax.f32 %v4296_v57, 0.0  ;;  %v4576_v7 = vmul.f32 0.001953125, %v4563_v51 }
 0x65b   : > { %v4304_v19 = vadd.f32 1e-05, %v4300_v24  ;;  %v4584_v1 = vsub.f32 %v4576_v7, %v4580_v37 }
 0x65d   : > { %5893 = vrsqrt.f32 %v4304_v19  ;;  %v4588_v23 = vmax.f32 %v4584_v1, 0.0 }
 0x65e   : > { %5895 = vrsqrt.f32 %v4434_v4 }
 0x65f   : > { %v4592_v30 = vadd.f32 1e-05, %v4588_v23 }
 0x661   : > { %5897 = vrsqrt.f32 %v4592_v30 }
 0x667   : > { %v5894_v9 = vpop.eup %5893 }
 0x668   : > { %v5896_v8 = vpop.eup %5895  ;;  %v4324_v52 = vsel %vm4310_vm2, %v5894_v9, %v4166_v18 }
 0x669   : > { %v4637_v26 = vmul.f32 %v7752_v38, %v4324_v52  ;;  %v4455_v60 = vsel %vm4443_vm3, %v5896_v8, 0.0  ;;  %v4619_v38 = vsel %vm4599_vm4, %v4572_v17, %v4463_v41 }
 0x66b   : > { %v5898_v31 = vpop.eup %5897  ;;  %v4645_v62 = vmul.f32 %v4637_v26, %v4332_v2  ;;  %v4744_v59 = vrot.slane %v4637_v26, %v6516_v12 }
 0x66c   : > { %v4611_v58 = vsel %vm4599_vm4, %v5898_v31, %v4455_v60 }
 0x66d   : > { %v4638_v46 = vmul.f32 %v7770_v42, %v4611_v58  ;;  %v4761_v42 = vmul.f32 %v4744_v59, %v7631_v45 }
 0x66f   : > { %v4646_v35 = vmul.f32 %v4638_v46, %v4619_v38  ;;  %v4748_v16 = vrot.slane %v4638_v46, %v6516_v12 }
 0x671   : > { %v4687_v49 = vcombine.low %v4645_v62, %v4646_v35  ;;  %v4762_v5 = vmul.f32 %v4748_v16, %v7636_v54  ;;  %v5355_v54 = vld [vmem:[%s8178_s21] ss:$0 sm:$0xff] }
 0x673   : > { %v4694_v55 = vrot.slane %v4687_v49, %v7065_v40 }
 0x675   : > { %v4701_v25 = vrot.slane %v4694_v55, %v7065_v40 }
 0x677   : > { %v4723_v63 = vsub.f32 %v7788_v33, %v4701_v25 }
 0x679   : > { %v4792_v47 = vrot.slane %v4723_v63, %v6521_v14  ;;  %v4788_v13 = vrot.slane %v4723_v63, %v6516_v12 }
 0x67b   : > { %v4814_v6 = vadd.f32 %v4792_v47, %v4762_v5  ;;  %v4813_v32 = vadd.f32 %v4788_v13, %v4761_v42 }
 0x67d   : > { %v4820_v36 = vpack.c.bf16 %v7885_v48, %v4814_v6  ;;  %v4819_v40 = vpack.c.bf16 %v7887_v44, %v4813_v32 }
 0x67f   : > { %4996 = vmatprep.mubr.bf16.mxu1 %v4820_v36 }
 0x680   : > { %4997 = vmatmul.mubr.bf16.gmra.mrb[36].mxu1 %v4819_v40 }
 0x70d   : > { %v5395_v43 = vpop.f32.mrb[32].mxu1 }
 0x70e   : > { %v5396_v14 = vpop.f32.mrb[33].mxu1 }
 0x70f   : > { %v5397_v33 = vadd.f32 %v5396_v14, %v5395_v43  ;;  %v5398_v45 = vpop.f32.mrb[34].mxu1 }
 0x710   : > { %v5399_v21 = vpop.f32.mrb[35].mxu1 }
 0x711   : > { %v4991_v22 = vadd.f32 %v5397_v33, %v5355_v54  ;;  %v5400_v12 = vadd.f32 %v5399_v21, %v5398_v45 }
 0x713   : > { %5005 = vst [vmem:[%s473_s27] sm:$0xff] %v4991_v22  ;;  %v4994_v48 = vadd.f32 %v5400_v12, %v5355_v54 }
 0x715   : > { %5006 = vst [vmem:[%s473_s27 + $0x8] sm:$0xff] %v4994_v48 }
 0x753   : > { %v5401_v44 = vpop.f32.mrb[36].mxu1 }
 0x754   : > { %v5402_v56 = vpop.f32.mrb[37].mxu1 }
 0x755   : > { %v5403_v20 = vadd.f32 %v5402_v56, %v5401_v44  ;;  %v5404_v10 = vpop.f32.mrb[38].mxu1 }
 0x756   : > { %v5405_v34 = vpop.f32.mrb[39].mxu1 }
 0x757   : > { %v4999_v0 = vadd.f32 %v5403_v20, %v5355_v54  ;;  %v5406_v27 = vadd.f32 %v5405_v34, %v5404_v10 }
 0x759   : > { %5007 = vst [vmem:[%s473_s27 + $0x10] sm:$0xff] %v4999_v0  ;;  %v5002_v29 = vadd.f32 %v5406_v27, %v5355_v54 }
 0x75b   : > { %5008 = vst [vmem:[%s473_s27 + $0x18] sm:$0xff] %v5002_v29 }
 0x75c   : > { %6082 = shalt.err (!%p6079_p8)
}
 0x75d   : > { %s6083_s21 = scalar_lea.hbm %s7958_s26, 512  ;;  %s6087_s15 = scalar_lea.hbm %s8179_s28, 1024 }
 0x75e   : > { %p6084_p6 = scmp.ne.s32.totalorder %s7958_s26, %s6083_s21  ;;  %p6088_p3 = scmp.lt.u32.totalorder %s7958_s26, %s8179_s28 }
 0x75f   : > { %p6089_p5 = scmp.lt.u32.totalorder %s6087_s15, %s6083_s21  ;;  %p6091_p7 = scmp.lt.u32.totalorder %s6083_s21, %s7958_s26 }
 0x760   : > { %p6085_p10 = pnand %p6084_p6, %p8180_p4 }
 0x761   : > { %p6090_p9 = por %p6089_p5, %p6088_p3 }
 0x762   : > { %p6086_p11 = pneg %p6085_p10 }
 0x763   : > { %p6092_p12 = por %p6091_p7, %p6090_p9 }
 0x765   : > { %p6093_p1 = pnand %p6092_p12, %p6086_p11 }
 0x767   : > { %6096 = shalt.err (!%p6093_p1)
}
 0x768   : > { %s6165_s8 = smov 128   ;;  %s6166_s11 = smov 8  }
 0x769   : > { %5461 = dma.vmem_to_hbm [thread:$0]  (%p8180_p4), %s7953_s22, 512, %s7958_s26, %s5010_s16, %s6165_s8, %s6165_s8, %s6166_s11  }
 0x76a PF: > { %s5038_s24 = sand.u32 1, %s6135_s17   ;;  %p8181_p13 = scmp.ne.s32.totalorder %s8081_s29, 0 }
 0x76b   : > { %p8182_p0 = scmp.ge.s32.totalorder %s6147_s20, 2  ;;  %s5039_s21 = scalar_lea.sflag [#allocation4], %s5038_s24 }
 0x76d   : > { %p5484_p2 = pnand %p8182_p0, %p8181_p13 }
 0x76f   : > { %6130 = dma.done.wait (!%p5484_p2), %s5039_s21, 512  }
 0x770   : > { %6132 = vsyncadd (!%p5484_p2), %s5039_s21, 4294966784  ;;  %p27_p8 = scmp.ge.s32.totalorder %s6388_s30, 4   ;;  %s8183_s17 = smov %s6139_s18 }
 0x771   : > { %s8184_s18 = smov %s6143_s19  ;;  %s8185_s19 = smov %s6400_s14 }
 0x772   : > { %s8186_s20 = smov %s6388_s30  ;;  %29 = sbr.rel (!%p27_p8) target bundleno = 12 (0xc), region = 129 }
 0x779   :  { %5044 = vsyncpa [#allocation3], 1 }
 0x77a   :  { %5046 = vsyncpa [#allocation3 + $0x1], 1 }
 0x77b   :  { %5047 = vsyncpa [#allocation6], 1 }
 0x77c   :  { %5048 = vsyncpa [#allocation9], 1 }
 0x77d   :  { %5049 = vsyncpa [#allocation12], 1 }
 0x77e   :  { %5050 = vsyncpa [#allocation4], 1 }
 0x77f   :  { %5052 = vsyncpa [#allocation4 + $0x1], 1 }

</bundles_post_ra>
